<compile_context>
chip_gen: v6e
topology: v6e:2x2x1
jax: 0.10.0
libtpu: 0.0.40
codegen_flags: <defaults>
</compile_context>

<pallas_src>
import math

import jax
import jax.numpy as jnp
from jax.experimental import pallas as pl
from jax.experimental.pallas import tpu as pltpu


# conv layer static configs: (out_channels, kernel, stride, pad)
_LAYERS = ((32, 8, 4, 1), (64, 4, 2, 1), (64, 3, 1, 1))
_NT = 8  # batch tile (sublane) size; batch is zero-padded to a multiple of 8


def _conv_out(size, k, s, p):
    return (size + 2 * p - k) // s + 1


def _layer_dims(c_in, h, w):
    dims = []
    hh, ww, cc = h, w, c_in
    for (co, k, s, p) in _LAYERS:
        oh, ow = _conv_out(hh, k, s, p), _conv_out(ww, k, s, p)
        assert oh >= 1 and ow >= 1, "input spatial size too small for this CNN"
        dims.append(dict(cin=cc, cout=co, k=k, s=s, p=p,
                         hin=hh, win=ww, hout=oh, wout=ow))
        hh, ww, cc = oh, ow, co
    return dims


def _build_kernel(nt, c_in, h, w):
    """Build the fused kernel body + scratch shapes (all static)."""
    dims = _layer_dims(c_in, h, w)
    d1, d2, d3 = dims
    assert d3["hout"] == d3["hin"] and d3["wout"] == d3["win"]  # same-size conv

    def im2col_from_image(x_ref, col_ref, d):
        # x_ref  : (Hin, NT, Win*Cin)  channel-last image tile
        # col_ref: (Hout*Wout*NT, k*k*Cin), rows (oy, ox, b), cols (i, j, c).
        # Every copy below targets an 8-row-aligned, 8-row-tall block and the
        # k taps of one kernel row are merged into one lane-contiguous copy.
        cin, k, s, p = d["cin"], d["k"], d["s"], d["p"]
        hin, win, hout, wout = d["hin"], d["win"], d["hout"], d["wout"]
        for oy in range(hout):
            for ox in range(wout):
                r0 = (oy * wout + ox) * nt
                for i in range(k):
                    r = oy * s + i - p
                    c0 = i * k * cin
                    if r < 0 or r >= hin:
                        # padding row: zero just this tap-row block
                        col_ref[r0:r0 + nt, c0:c0 + k * cin] = jnp.zeros(
                            (nt, k * cin), col_ref.dtype)
                        continue
                    j0 = max(0, p - ox * s)
                    j1 = min(k, win + p - ox * s)
                    if j0 > 0 or j1 < k:
                        # boundary position: zero only this partial block
                        col_ref[r0:r0 + nt, c0:c0 + k * cin] = jnp.zeros(
                            (nt, k * cin), col_ref.dtype)
                    if j1 > j0:
                        s0 = (ox * s + j0 - p) * cin
                        s1 = (ox * s + j1 - p) * cin
                        col_ref[r0:r0 + nt, c0 + j0 * cin:c0 + j1 * cin] = \
                            x_ref[r, :, s0:s1]

    def im2col_from_act(a_ref, col_ref, d):
        # a_ref  : (Hin*Win*NT, Cin)  activation, rows ordered (h, w, b)
        # col_ref: (Hout*Wout*NT, k*k*Cin).  One 8-row-aligned copy per tap;
        # only padding taps get zeroed.
        cin, k, s, p = d["cin"], d["k"], d["s"], d["p"]
        hin, win, hout, wout = d["hin"], d["win"], d["hout"], d["wout"]
        for oy in range(hout):
            for ox in range(wout):
                r0 = (oy * wout + ox) * nt
                for i in range(k):
                    r = oy * s + i - p
                    for j in range(k):
                        c = ox * s + j - p
                        c0 = (i * k + j) * cin
                        if 0 <= r < hin and 0 <= c < win:
                            src0 = (r * win + c) * nt
                            col_ref[r0:r0 + nt, c0:c0 + cin] = \
                                a_ref[src0:src0 + nt, :]
                        else:
                            col_ref[r0:r0 + nt, c0:c0 + cin] = jnp.zeros(
                                (nt, cin), col_ref.dtype)

    def gemm_bias_relu(col_ref, w_ref, b_ref, out_ref):
        # One MXU GEMM per layer, dotted straight into the next layer's
        # activation ref: a single fully lane/sublane-dense store, no scatter.
        y = jnp.dot(col_ref[...], w_ref[...],
                    preferred_element_type=jnp.float32)
        out_ref[...] = jnp.maximum(y + b_ref[...], 0.0)

    def conv3_taps(a_ref, w_ref, b_ref, o_ref, d):
        # Layer 3 (k=3, s=1, p=1): no im2col.  9-tap accumulation reading the
        # (h, w, b, c)-ordered activation in place and accumulating into the
        # output ref; boundary taps restrict their (oy, ox) range so padding
        # contributes nothing (and no out-of-range rows are ever read).
        cin, cout, k, p = d["cin"], d["cout"], d["k"], d["p"]
        hin, win, hout, wout = d["hin"], d["win"], d["hout"], d["wout"]
        # Center tap covers every output position: plain assignment (no init).
        wc = w_ref[(p * k + p) * cin:(p * k + p + 1) * cin, :]
        o_ref[...] = jnp.dot(a_ref[...], wc,
                             preferred_element_type=jnp.float32)
        for i in range(k):
            di = i - p
            for j in range(k):
                dj = j - p
                if di == 0 and dj == 0:
                    continue
                oy_lo, oy_hi = max(0, -di), min(hout, hin - di)
                ox_lo, ox_hi = max(0, -dj), min(wout, win - dj)
                if oy_lo >= oy_hi or ox_lo >= ox_hi:
                    continue  # tap is entirely padding
                wij = w_ref[(i * k + j) * cin:(i * k + j + 1) * cin, :]
                n_ox = ox_hi - ox_lo
                for oy in range(oy_lo, oy_hi):
                    s0 = ((oy + di) * win + ox_lo + dj) * nt
                    contrib = jnp.dot(a_ref[s0:s0 + n_ox * nt, :], wij,
                                      preferred_element_type=jnp.float32)
                    d0 = (oy * wout + ox_lo) * nt
                    o_ref[d0:d0 + n_ox * nt, :] += contrib
        o_ref[...] = jnp.maximum(o_ref[...] + b_ref[...], 0.0)

    def kernel(x_ref, w1_ref, b1_ref, w2_ref, b2_ref, w3_ref, b3_ref,
               o_ref, col1, a1, col2, a2):
        im2col_from_image(x_ref, col1, d1)
        gemm_bias_relu(col1, w1_ref, b1_ref, a1)
        im2col_from_act(a1, col2, d2)
        gemm_bias_relu(col2, w2_ref, b2_ref, a2)
        conv3_taps(a2, w3_ref, b3_ref, o_ref, d3)

    scratch_shapes = [
        pltpu.VMEM((d1["hout"] * d1["wout"] * nt, d1["k"] ** 2 * d1["cin"]),
                   jnp.float32),                                    # col1
        pltpu.VMEM((d1["hout"] * d1["wout"] * nt, d1["cout"]),
                   jnp.float32),                                    # act1
        pltpu.VMEM((d2["hout"] * d2["wout"] * nt, d2["k"] ** 2 * d2["cin"]),
                   jnp.float32),                                    # col2
        pltpu.VMEM((d2["hout"] * d2["wout"] * nt, d2["cout"]),
                   jnp.float32),                                    # act2
    ]
    return kernel, scratch_shapes, dims


def _flat_w(wt):
    # OIHW -> (k*k*Cin, Cout), rows ordered (i, j, c) to match the col layout.
    co, ci, kh, kw = wt.shape
    return wt.transpose(2, 3, 1, 0).reshape(kh * kw * ci, co)


@jax.jit
def cnn_forward(x, params):
    """Equivalent of CNN.forward(x): x/255 -> 3x(conv+relu) -> flatten."""
    n, c, h, w = x.shape
    nt = _NT
    n_pad = ((n + nt - 1) // nt) * nt
    nb = n_pad // nt

    kernel, scratch_shapes, dims = _build_kernel(nt, c, h, w)
    d3 = dims[2]
    p3, c3 = d3["hout"] * d3["wout"], d3["cout"]

    w1 = _flat_w(params["cw1"]) * jnp.float32(1.0 / 255.0)  # fold x/255 into W1
    w2 = _flat_w(params["cw2"])
    w3 = _flat_w(params["cw3"])
    b1 = params["cb1"].reshape(1, -1)
    b2 = params["cb2"].reshape(1, -1)
    b3 = params["cb3"].reshape(1, -1)

    # Zero-pad batch to a multiple of 8, then lay the image out channel-last
    # as (H, Npad, W*C): one-time, wrapper-side layout plumbing.
    if n_pad != n:
        x = jnp.pad(x, ((0, n_pad - n), (0, 0), (0, 0), (0, 0)))
    xm = x.transpose(2, 0, 3, 1).reshape(h, n_pad, w * c)

    def full(arr):
        return pl.BlockSpec(arr.shape, lambda b: (0,) * arr.ndim)

    out = pl.pallas_call(
        kernel,
        grid=(nb,),
        in_specs=[
            pl.BlockSpec((h, nt, w * c), lambda b: (0, b, 0)),   # image tile
            full(w1), full(b1), full(w2), full(b2), full(w3), full(b3),
        ],
        out_specs=pl.BlockSpec((None, p3 * nt, c3), lambda b: (b, 0, 0)),
        out_shape=jax.ShapeDtypeStruct((nb, p3 * nt, c3), jnp.float32),
        scratch_shapes=scratch_shapes,
        compiler_params=pltpu.CompilerParams(
            dimension_semantics=("parallel",)),
    )(xm, w1, b1, w2, b2, w3, b3)

    # (batch-tile, (oy,ox,b_local), c) -> PyTorch nn.Flatten() of NCHW.
    out = out.reshape(nb, d3["hout"], d3["wout"], nt, c3)
    out = out.transpose(0, 3, 4, 1, 2).reshape(n_pad, -1)
    return out[:n]


# ----------------------------------------------------------------------------
# Deterministic parameter init (PyTorch-default-style uniform bounds)
# ----------------------------------------------------------------------------
def init_params(key, in_channels):
    def u(k, fan_in, shape):
        bound = 1.0 / math.sqrt(fan_in)
        return jax.random.uniform(k, shape, jnp.float32, -bound, bound)

    ks = jax.random.split(key, 6)
    return {
        "cw1": u(ks[0], in_channels * 8 * 8, (32, in_channels, 8, 8)),
        "cb1": u(ks[1], in_channels * 8 * 8, (32,)),
        "cw2": u(ks[2], 32 * 4 * 4, (64, 32, 4, 4)),
        "cb2": u(ks[3], 32 * 4 * 4, (64,)),
        "cw3": u(ks[4], 64 * 3 * 3, (64, 64, 3, 3)),
        "cb3": u(ks[5], 64 * 3 * 3, (64,)),
    }


# ----------------------------------------------------------------------------
# Pure-JAX reference for correctness check
# ----------------------------------------------------------------------------
def _ref_forward(x, p):
    def conv(y, w, b, stride, pad):
        out = jax.lax.conv_general_dilated(
            y, w, window_strides=(stride, stride),
            padding=((pad, pad), (pad, pad)),
            dimension_numbers=("NCHW", "OIHW", "NCHW"),
            precision=jax.lax.Precision.HIGHEST)
        return out + b.reshape(1, -1, 1, 1)

    y = x / 255.0
    y = jax.nn.relu(conv(y, p["cw1"], p["cb1"], 4, 1))
    y = jax.nn.relu(conv(y, p["cw2"], p["cb2"], 2, 1))
    y = jax.nn.relu(conv(y, p["cw3"], p["cb3"], 1, 1))
    return y.reshape(y.shape[0], -1)


if __name__ == "__main__":
    key = jax.random.PRNGKey(0)
    k_param, k_x = jax.random.split(key)

    # 20x20 input keeps everything tiny but exercises every boundary path
    # (padded rows/cols in both im2col layers and all 9 taps of layer 3).
    batch, in_channels, hw = 2, 4, 20
    params = init_params(k_param, in_channels)
    x = jax.random.uniform(k_x, (batch, in_channels, hw, hw), jnp.float32,
                           minval=0.0, maxval=255.0)

    out = jax.block_until_ready(cnn_forward(x, params))
    ref = jax.block_until_ready(_ref_forward(x, params))

    assert out.shape == ref.shape, (out.shape, ref.shape)
    assert bool(jnp.all(jnp.isfinite(out)))
    assert bool(jnp.allclose(out, ref, atol=1e-2, rtol=1e-2))

    print("KERNEL_OK")
</pallas_src>

<mosaic_0001>
module attributes {stable_mosaic.version = 11 : i64} {
  func.func @kernel(%arg0: i32, %arg1: memref<20x8x80xf32, #tpu.memory_space<vmem>>, %arg2: memref<256x32xf32, #tpu.memory_space<vmem>>, %arg3: memref<1x32xf32, #tpu.memory_space<vmem>>, %arg4: memref<512x64xf32, #tpu.memory_space<vmem>>, %arg5: memref<1x64xf32, #tpu.memory_space<vmem>>, %arg6: memref<576x64xf32, #tpu.memory_space<vmem>>, %arg7: memref<1x64xf32, #tpu.memory_space<vmem>>, %arg8: memref<1x32x64xf32, #tpu.memory_space<vmem>>, %arg9: memref<128x256xf32, #tpu.memory_space<vmem>>, %arg10: memref<128x32xf32, #tpu.memory_space<vmem>>, %arg11: memref<32x512xf32, #tpu.memory_space<vmem>>, %arg12: memref<32x64xf32, #tpu.memory_space<vmem>>) attributes {dimension_semantics = [#tpu.dimension_semantics<parallel>], iteration_bounds = array<i64: 1>, scalar_prefetch = 0 : i64, scratch_operands = 4 : i64, tpu.core_type = #tpu.core_type<tc>, window_params = [{transform_indices = @transform_0, window_bounds = array<i64: 20, 8, 80>}, {pipeline_mode = #tpu.pipeline_mode<synchronous>, transform_indices = @transform_1, window_bounds = array<i64: 256, 32>}, {pipeline_mode = #tpu.pipeline_mode<synchronous>, transform_indices = @transform_2, window_bounds = array<i64: 1, 32>}, {pipeline_mode = #tpu.pipeline_mode<synchronous>, transform_indices = @transform_3, window_bounds = array<i64: 512, 64>}, {pipeline_mode = #tpu.pipeline_mode<synchronous>, transform_indices = @transform_4, window_bounds = array<i64: 1, 64>}, {pipeline_mode = #tpu.pipeline_mode<synchronous>, transform_indices = @transform_5, window_bounds = array<i64: 576, 64>}, {pipeline_mode = #tpu.pipeline_mode<synchronous>, transform_indices = @transform_6, window_bounds = array<i64: 1, 64>}, {transform_indices = @transform_7, window_bounds = array<i64: 1, 32, 64>}]} {
    %cst = arith.constant 0.000000e+00 : f32
    %0 = vector.broadcast %cst : f32 to vector<8x32xf32>
    %c0 = arith.constant 0 : index
    %c0_0 = arith.constant 0 : index
    %1 = vector.load %arg9[%c0, %c0_0] : memref<128x256xf32, #tpu.memory_space<vmem>>, vector<8x32xf32>
    tpu.vector_store %arg9[%c0, %c0_0], %0 {strides = array<i32>} : memref<128x256xf32, #tpu.memory_space<vmem>>, vector<8x32xf32>,
    %cst_1 = arith.constant 0.000000e+00 : f32
    %2 = vector.broadcast %cst_1 : f32 to vector<8x32xf32>
    %c0_2 = arith.constant 0 : index
    %c32 = arith.constant 32 : index
    %3 = vector.load %arg9[%c0_2, %c32] : memref<128x256xf32, #tpu.memory_space<vmem>>, vector<8x32xf32>
    tpu.vector_store %arg9[%c0_2, %c32], %2 {strides = array<i32>} : memref<128x256xf32, #tpu.memory_space<vmem>>, vector<8x32xf32>,
    %c0_3 = arith.constant 0 : index
    %c0_4 = arith.constant 0 : index
    %c0_5 = arith.constant 0 : index
    %4 = vector.load %arg1[%c0_3, %c0_4, %c0_5] : memref<20x8x80xf32, #tpu.memory_space<vmem>>, vector<1x8x28xf32>
    %5 = vector.shape_cast %4 : vector<1x8x28xf32> to vector<8x28xf32>
    %c0_6 = arith.constant 0 : index
    %c36 = arith.constant 36 : index
    %6 = vector.load %arg9[%c0_6, %c36] : memref<128x256xf32, #tpu.memory_space<vmem>>, vector<8x28xf32>
    tpu.vector_store %arg9[%c0_6, %c36], %5 {strides = array<i32>} : memref<128x256xf32, #tpu.memory_space<vmem>>, vector<8x28xf32>,
    %cst_7 = arith.constant 0.000000e+00 : f32
    %7 = vector.broadcast %cst_7 : f32 to vector<8x32xf32>
    %c0_8 = arith.constant 0 : index
    %c64 = arith.constant 64 : index
    %8 = vector.load %arg9[%c0_8, %c64] : memref<128x256xf32, #tpu.memory_space<vmem>>, vector<8x32xf32>
    tpu.vector_store %arg9[%c0_8, %c64], %7 {strides = array<i32>} : memref<128x256xf32, #tpu.memory_space<vmem>>, vector<8x32xf32>,
    %c1 = arith.constant 1 : index
    %c0_9 = arith.constant 0 : index
    %c0_10 = arith.constant 0 : index
    %9 = vector.load %arg1[%c1, %c0_9, %c0_10] : memref<20x8x80xf32, #tpu.memory_space<vmem>>, vector<1x8x28xf32>
    %10 = vector.shape_cast %9 : vector<1x8x28xf32> to vector<8x28xf32>
    %c0_11 = arith.constant 0 : index
    %c68 = arith.constant 68 : index
    %11 = vector.load %arg9[%c0_11, %c68] : memref<128x256xf32, #tpu.memory_space<vmem>>, vector<8x28xf32>
    tpu.vector_store %arg9[%c0_11, %c68], %10 {strides = array<i32>} : memref<128x256xf32, #tpu.memory_space<vmem>>, vector<8x28xf32>,
    %cst_12 = arith.constant 0.000000e+00 : f32
    %12 = vector.broadcast %cst_12 : f32 to vector<8x32xf32>
    %c0_13 = arith.constant 0 : index
    %c96 = arith.constant 96 : index
    %13 = vector.load %arg9[%c0_13, %c96] : memref<128x256xf32, #tpu.memory_space<vmem>>, vector<8x32xf32>
    tpu.vector_store %arg9[%c0_13, %c96], %12 {strides = array<i32>} : memref<128x256xf32, #tpu.memory_space<vmem>>, vector<8x32xf32>,
    %c2 = arith.constant 2 : index
    %c0_14 = arith.constant 0 : index
    %c0_15 = arith.constant 0 : index
    %14 = vector.load %arg1[%c2, %c0_14, %c0_15] : memref<20x8x80xf32, #tpu.memory_space<vmem>>, vector<1x8x28xf32>
    %15 = vector.shape_cast %14 : vector<1x8x28xf32> to vector<8x28xf32>
    %c0_16 = arith.constant 0 : index
    %c100 = arith.constant 100 : index
    %16 = vector.load %arg9[%c0_16, %c100] : memref<128x256xf32, #tpu.memory_space<vmem>>, vector<8x28xf32>
    tpu.vector_store %arg9[%c0_16, %c100], %15 {strides = array<i32>} : memref<128x256xf32, #tpu.memory_space<vmem>>, vector<8x28xf32>,
    %cst_17 = arith.constant 0.000000e+00 : f32
    %17 = vector.broadcast %cst_17 : f32 to vector<8x32xf32>
    %c0_18 = arith.constant 0 : index
    %c128 = arith.constant 128 : index
    %18 = vector.load %arg9[%c0_18, %c128] : memref<128x256xf32, #tpu.memory_space<vmem>>, vector<8x32xf32>
    tpu.vector_store %arg9[%c0_18, %c128], %17 {strides = array<i32>} : memref<128x256xf32, #tpu.memory_space<vmem>>, vector<8x32xf32>,
    %c3 = arith.constant 3 : index
    %c0_19 = arith.constant 0 : index
    %c0_20 = arith.constant 0 : index
    %19 = vector.load %arg1[%c3, %c0_19, %c0_20] : memref<20x8x80xf32, #tpu.memory_space<vmem>>, vector<1x8x28xf32>
    %20 = vector.shape_cast %19 : vector<1x8x28xf32> to vector<8x28xf32>
    %c0_21 = arith.constant 0 : index
    %c132 = arith.constant 132 : index
    %21 = vector.load %arg9[%c0_21, %c132] : memref<128x256xf32, #tpu.memory_space<vmem>>, vector<8x28xf32>
    tpu.vector_store %arg9[%c0_21, %c132], %20 {strides = array<i32>} : memref<128x256xf32, #tpu.memory_space<vmem>>, vector<8x28xf32>,
    %cst_22 = arith.constant 0.000000e+00 : f32
    %22 = vector.broadcast %cst_22 : f32 to vector<8x32xf32>
    %c0_23 = arith.constant 0 : index
    %c160 = arith.constant 160 : index
    %23 = vector.load %arg9[%c0_23, %c160] : memref<128x256xf32, #tpu.memory_space<vmem>>, vector<8x32xf32>
    tpu.vector_store %arg9[%c0_23, %c160], %22 {strides = array<i32>} : memref<128x256xf32, #tpu.memory_space<vmem>>, vector<8x32xf32>,
    %c4 = arith.constant 4 : index
    %c0_24 = arith.constant 0 : index
    %c0_25 = arith.constant 0 : index
    %24 = vector.load %arg1[%c4, %c0_24, %c0_25] : memref<20x8x80xf32, #tpu.memory_space<vmem>>, vector<1x8x28xf32>
    %25 = vector.shape_cast %24 : vector<1x8x28xf32> to vector<8x28xf32>
    %c0_26 = arith.constant 0 : index
    %c164 = arith.constant 164 : index
    %26 = vector.load %arg9[%c0_26, %c164] : memref<128x256xf32, #tpu.memory_space<vmem>>, vector<8x28xf32>
    tpu.vector_store %arg9[%c0_26, %c164], %25 {strides = array<i32>} : memref<128x256xf32, #tpu.memory_space<vmem>>, vector<8x28xf32>,
    %cst_27 = arith.constant 0.000000e+00 : f32
    %27 = vector.broadcast %cst_27 : f32 to vector<8x32xf32>
    %c0_28 = arith.constant 0 : index
    %c192 = arith.constant 192 : index
    %28 = vector.load %arg9[%c0_28, %c192] : memref<128x256xf32, #tpu.memory_space<vmem>>, vector<8x32xf32>
    tpu.vector_store %arg9[%c0_28, %c192], %27 {strides = array<i32>} : memref<128x256xf32, #tpu.memory_space<vmem>>, vector<8x32xf32>,
    %c5 = arith.constant 5 : index
    %c0_29 = arith.constant 0 : index
    %c0_30 = arith.constant 0 : index
    %29 = vector.load %arg1[%c5, %c0_29, %c0_30] : memref<20x8x80xf32, #tpu.memory_space<vmem>>, vector<1x8x28xf32>
    %30 = vector.shape_cast %29 : vector<1x8x28xf32> to vector<8x28xf32>
    %c0_31 = arith.constant 0 : index
    %c196 = arith.constant 196 : index
    %31 = vector.load %arg9[%c0_31, %c196] : memref<128x256xf32, #tpu.memory_space<vmem>>, vector<8x28xf32>
    tpu.vector_store %arg9[%c0_31, %c196], %30 {strides = array<i32>} : memref<128x256xf32, #tpu.memory_space<vmem>>, vector<8x28xf32>,
    %cst_32 = arith.constant 0.000000e+00 : f32
    %32 = vector.broadcast %cst_32 : f32 to vector<8x32xf32>
    %c0_33 = arith.constant 0 : index
    %c224 = arith.constant 224 : index
    %33 = vector.load %arg9[%c0_33, %c224] : memref<128x256xf32, #tpu.memory_space<vmem>>, vector<8x32xf32>
    tpu.vector_store %arg9[%c0_33, %c224], %32 {strides = array<i32>} : memref<128x256xf32, #tpu.memory_space<vmem>>, vector<8x32xf32>,
    %c6 = arith.constant 6 : index
    %c0_34 = arith.constant 0 : index
    %c0_35 = arith.constant 0 : index
    %34 = vector.load %arg1[%c6, %c0_34, %c0_35] : memref<20x8x80xf32, #tpu.memory_space<vmem>>, vector<1x8x28xf32>
    %35 = vector.shape_cast %34 : vector<1x8x28xf32> to vector<8x28xf32>
    %c0_36 = arith.constant 0 : index
    %c228 = arith.constant 228 : index
    %36 = vector.load %arg9[%c0_36, %c228] : memref<128x256xf32, #tpu.memory_space<vmem>>, vector<8x28xf32>
    tpu.vector_store %arg9[%c0_36, %c228], %35 {strides = array<i32>} : memref<128x256xf32, #tpu.memory_space<vmem>>, vector<8x28xf32>,
    %cst_37 = arith.constant 0.000000e+00 : f32
    %37 = vector.broadcast %cst_37 : f32 to vector<8x32xf32>
    %c8 = arith.constant 8 : index
    %c0_38 = arith.constant 0 : index
    %38 = vector.load %arg9[%c8, %c0_38] : memref<128x256xf32, #tpu.memory_space<vmem>>, vector<8x32xf32>
    tpu.vector_store %arg9[%c8, %c0_38], %37 {strides = array<i32>} : memref<128x256xf32, #tpu.memory_space<vmem>>, vector<8x32xf32>,
    %c0_39 = arith.constant 0 : index
    %c0_40 = arith.constant 0 : index
    %c12 = arith.constant 12 : index
    %39 = vector.load %arg1[%c0_39, %c0_40, %c12] : memref<20x8x80xf32, #tpu.memory_space<vmem>>, vector<1x8x32xf32>
    %40 = vector.shape_cast %39 : vector<1x8x32xf32> to vector<8x32xf32>
    %c8_41 = arith.constant 8 : index
    %c32_42 = arith.constant 32 : index
    %41 = vector.load %arg9[%c8_41, %c32_42] : memref<128x256xf32, #tpu.memory_space<vmem>>, vector<8x32xf32>
    tpu.vector_store %arg9[%c8_41, %c32_42], %40 {strides = array<i32>} : memref<128x256xf32, #tpu.memory_space<vmem>>, vector<8x32xf32>,
    %c1_43 = arith.constant 1 : index
    %c0_44 = arith.constant 0 : index
    %c12_45 = arith.constant 12 : index
    %42 = vector.load %arg1[%c1_43, %c0_44, %c12_45] : memref<20x8x80xf32, #tpu.memory_space<vmem>>, vector<1x8x32xf32>
    %43 = vector.shape_cast %42 : vector<1x8x32xf32> to vector<8x32xf32>
    %c8_46 = arith.constant 8 : index
    %c64_47 = arith.constant 64 : index
    %44 = vector.load %arg9[%c8_46, %c64_47] : memref<128x256xf32, #tpu.memory_space<vmem>>, vector<8x32xf32>
    tpu.vector_store %arg9[%c8_46, %c64_47], %43 {strides = array<i32>} : memref<128x256xf32, #tpu.memory_space<vmem>>, vector<8x32xf32>,
    %c2_48 = arith.constant 2 : index
    %c0_49 = arith.constant 0 : index
    %c12_50 = arith.constant 12 : index
    %45 = vector.load %arg1[%c2_48, %c0_49, %c12_50] : memref<20x8x80xf32, #tpu.memory_space<vmem>>, vector<1x8x32xf32>
    %46 = vector.shape_cast %45 : vector<1x8x32xf32> to vector<8x32xf32>
    %c8_51 = arith.constant 8 : index
    %c96_52 = arith.constant 96 : index
    %47 = vector.load %arg9[%c8_51, %c96_52] : memref<128x256xf32, #tpu.memory_space<vmem>>, vector<8x32xf32>
    tpu.vector_store %arg9[%c8_51, %c96_52], %46 {strides = array<i32>} : memref<128x256xf32, #tpu.memory_space<vmem>>, vector<8x32xf32>,
    %c3_53 = arith.constant 3 : index
    %c0_54 = arith.constant 0 : index
    %c12_55 = arith.constant 12 : index
    %48 = vector.load %arg1[%c3_53, %c0_54, %c12_55] : memref<20x8x80xf32, #tpu.memory_space<vmem>>, vector<1x8x32xf32>
    %49 = vector.shape_cast %48 : vector<1x8x32xf32> to vector<8x32xf32>
    %c8_56 = arith.constant 8 : index
    %c128_57 = arith.constant 128 : index
    %50 = vector.load %arg9[%c8_56, %c128_57] : memref<128x256xf32, #tpu.memory_space<vmem>>, vector<8x32xf32>
    tpu.vector_store %arg9[%c8_56, %c128_57], %49 {strides = array<i32>} : memref<128x256xf32, #tpu.memory_space<vmem>>, vector<8x32xf32>,
    %c4_58 = arith.constant 4 : index
    %c0_59 = arith.constant 0 : index
    %c12_60 = arith.constant 12 : index
    %51 = vector.load %arg1[%c4_58, %c0_59, %c12_60] : memref<20x8x80xf32, #tpu.memory_space<vmem>>, vector<1x8x32xf32>
    %52 = vector.shape_cast %51 : vector<1x8x32xf32> to vector<8x32xf32>
    %c8_61 = arith.constant 8 : index
    %c160_62 = arith.constant 160 : index
    %53 = vector.load %arg9[%c8_61, %c160_62] : memref<128x256xf32, #tpu.memory_space<vmem>>, vector<8x32xf32>
    tpu.vector_store %arg9[%c8_61, %c160_62], %52 {strides = array<i32>} : memref<128x256xf32, #tpu.memory_space<vmem>>, vector<8x32xf32>,
    %c5_63 = arith.constant 5 : index
    %c0_64 = arith.constant 0 : index
    %c12_65 = arith.constant 12 : index
    %54 = vector.load %arg1[%c5_63, %c0_64, %c12_65] : memref<20x8x80xf32, #tpu.memory_space<vmem>>, vector<1x8x32xf32>
    %55 = vector.shape_cast %54 : vector<1x8x32xf32> to vector<8x32xf32>
    %c8_66 = arith.constant 8 : index
    %c192_67 = arith.constant 192 : index
    %56 = vector.load %arg9[%c8_66, %c192_67] : memref<128x256xf32, #tpu.memory_space<vmem>>, vector<8x32xf32>
    tpu.vector_store %arg9[%c8_66, %c192_67], %55 {strides = array<i32>} : memref<128x256xf32, #tpu.memory_space<vmem>>, vector<8x32xf32>,
    %c6_68 = arith.constant 6 : index
    %c0_69 = arith.constant 0 : index
    %c12_70 = arith.constant 12 : index
    %57 = vector.load %arg1[%c6_68, %c0_69, %c12_70] : memref<20x8x80xf32, #tpu.memory_space<vmem>>, vector<1x8x32xf32>
    %58 = vector.shape_cast %57 : vector<1x8x32xf32> to vector<8x32xf32>
    %c8_71 = arith.constant 8 : index
    %c224_72 = arith.constant 224 : index
    %59 = vector.load %arg9[%c8_71, %c224_72] : memref<128x256xf32, #tpu.memory_space<vmem>>, vector<8x32xf32>
    tpu.vector_store %arg9[%c8_71, %c224_72], %58 {strides = array<i32>} : memref<128x256xf32, #tpu.memory_space<vmem>>, vector<8x32xf32>,
    %cst_73 = arith.constant 0.000000e+00 : f32
    %60 = vector.broadcast %cst_73 : f32 to vector<8x32xf32>
    %c16 = arith.constant 16 : index
    %c0_74 = arith.constant 0 : index
    %61 = vector.load %arg9[%c16, %c0_74] : memref<128x256xf32, #tpu.memory_space<vmem>>, vector<8x32xf32>
    tpu.vector_store %arg9[%c16, %c0_74], %60 {strides = array<i32>} : memref<128x256xf32, #tpu.memory_space<vmem>>, vector<8x32xf32>,
    %c0_75 = arith.constant 0 : index
    %c0_76 = arith.constant 0 : index
    %c28 = arith.constant 28 : index
    %62 = vector.load %arg1[%c0_75, %c0_76, %c28] : memref<20x8x80xf32, #tpu.memory_space<vmem>>, vector<1x8x32xf32>
    %63 = vector.shape_cast %62 : vector<1x8x32xf32> to vector<8x32xf32>
    %c16_77 = arith.constant 16 : index
    %c32_78 = arith.constant 32 : index
    %64 = vector.load %arg9[%c16_77, %c32_78] : memref<128x256xf32, #tpu.memory_space<vmem>>, vector<8x32xf32>
    tpu.vector_store %arg9[%c16_77, %c32_78], %63 {strides = array<i32>} : memref<128x256xf32, #tpu.memory_space<vmem>>, vector<8x32xf32>,
    %c1_79 = arith.constant 1 : index
    %c0_80 = arith.constant 0 : index
    %c28_81 = arith.constant 28 : index
    %65 = vector.load %arg1[%c1_79, %c0_80, %c28_81] : memref<20x8x80xf32, #tpu.memory_space<vmem>>, vector<1x8x32xf32>
    %66 = vector.shape_cast %65 : vector<1x8x32xf32> to vector<8x32xf32>
    %c16_82 = arith.constant 16 : index
    %c64_83 = arith.constant 64 : index
    %67 = vector.load %arg9[%c16_82, %c64_83] : memref<128x256xf32, #tpu.memory_space<vmem>>, vector<8x32xf32>
    tpu.vector_store %arg9[%c16_82, %c64_83], %66 {strides = array<i32>} : memref<128x256xf32, #tpu.memory_space<vmem>>, vector<8x32xf32>,
    %c2_84 = arith.constant 2 : index
    %c0_85 = arith.constant 0 : index
    %c28_86 = arith.constant 28 : index
    %68 = vector.load %arg1[%c2_84, %c0_85, %c28_86] : memref<20x8x80xf32, #tpu.memory_space<vmem>>, vector<1x8x32xf32>
    %69 = vector.shape_cast %68 : vector<1x8x32xf32> to vector<8x32xf32>
    %c16_87 = arith.constant 16 : index
    %c96_88 = arith.constant 96 : index
    %70 = vector.load %arg9[%c16_87, %c96_88] : memref<128x256xf32, #tpu.memory_space<vmem>>, vector<8x32xf32>
    tpu.vector_store %arg9[%c16_87, %c96_88], %69 {strides = array<i32>} : memref<128x256xf32, #tpu.memory_space<vmem>>, vector<8x32xf32>,
    %c3_89 = arith.constant 3 : index
    %c0_90 = arith.constant 0 : index
    %c28_91 = arith.constant 28 : index
    %71 = vector.load %arg1[%c3_89, %c0_90, %c28_91] : memref<20x8x80xf32, #tpu.memory_space<vmem>>, vector<1x8x32xf32>
    %72 = vector.shape_cast %71 : vector<1x8x32xf32> to vector<8x32xf32>
    %c16_92 = arith.constant 16 : index
    %c128_93 = arith.constant 128 : index
    %73 = vector.load %arg9[%c16_92, %c128_93] : memref<128x256xf32, #tpu.memory_space<vmem>>, vector<8x32xf32>
    tpu.vector_store %arg9[%c16_92, %c128_93], %72 {strides = array<i32>} : memref<128x256xf32, #tpu.memory_space<vmem>>, vector<8x32xf32>,
    %c4_94 = arith.constant 4 : index
    %c0_95 = arith.constant 0 : index
    %c28_96 = arith.constant 28 : index
    %74 = vector.load %arg1[%c4_94, %c0_95, %c28_96] : memref<20x8x80xf32, #tpu.memory_space<vmem>>, vector<1x8x32xf32>
    %75 = vector.shape_cast %74 : vector<1x8x32xf32> to vector<8x32xf32>
    %c16_97 = arith.constant 16 : index
    %c160_98 = arith.constant 160 : index
    %76 = vector.load %arg9[%c16_97, %c160_98] : memref<128x256xf32, #tpu.memory_space<vmem>>, vector<8x32xf32>
    tpu.vector_store %arg9[%c16_97, %c160_98], %75 {strides = array<i32>} : memref<128x256xf32, #tpu.memory_space<vmem>>, vector<8x32xf32>,
    %c5_99 = arith.constant 5 : index
    %c0_100 = arith.constant 0 : index
    %c28_101 = arith.constant 28 : index
    %77 = vector.load %arg1[%c5_99, %c0_100, %c28_101] : memref<20x8x80xf32, #tpu.memory_space<vmem>>, vector<1x8x32xf32>
    %78 = vector.shape_cast %77 : vector<1x8x32xf32> to vector<8x32xf32>
    %c16_102 = arith.constant 16 : index
    %c192_103 = arith.constant 192 : index
    %79 = vector.load %arg9[%c16_102, %c192_103] : memref<128x256xf32, #tpu.memory_space<vmem>>, vector<8x32xf32>
    tpu.vector_store %arg9[%c16_102, %c192_103], %78 {strides = array<i32>} : memref<128x256xf32, #tpu.memory_space<vmem>>, vector<8x32xf32>,
    %c6_104 = arith.constant 6 : index
    %c0_105 = arith.constant 0 : index
    %c28_106 = arith.constant 28 : index
    %80 = vector.load %arg1[%c6_104, %c0_105, %c28_106] : memref<20x8x80xf32, #tpu.memory_space<vmem>>, vector<1x8x32xf32>
    %81 = vector.shape_cast %80 : vector<1x8x32xf32> to vector<8x32xf32>
    %c16_107 = arith.constant 16 : index
    %c224_108 = arith.constant 224 : index
    %82 = vector.load %arg9[%c16_107, %c224_108] : memref<128x256xf32, #tpu.memory_space<vmem>>, vector<8x32xf32>
    tpu.vector_store %arg9[%c16_107, %c224_108], %81 {strides = array<i32>} : memref<128x256xf32, #tpu.memory_space<vmem>>, vector<8x32xf32>,
    %cst_109 = arith.constant 0.000000e+00 : f32
    %83 = vector.broadcast %cst_109 : f32 to vector<8x32xf32>
    %c24 = arith.constant 24 : index
    %c0_110 = arith.constant 0 : index
    %84 = vector.load %arg9[%c24, %c0_110] : memref<128x256xf32, #tpu.memory_space<vmem>>, vector<8x32xf32>
    tpu.vector_store %arg9[%c24, %c0_110], %83 {strides = array<i32>} : memref<128x256xf32, #tpu.memory_space<vmem>>, vector<8x32xf32>,
    %c0_111 = arith.constant 0 : index
    %c0_112 = arith.constant 0 : index
    %c44 = arith.constant 44 : index
    %85 = vector.load %arg1[%c0_111, %c0_112, %c44] : memref<20x8x80xf32, #tpu.memory_space<vmem>>, vector<1x8x32xf32>
    %86 = vector.shape_cast %85 : vector<1x8x32xf32> to vector<8x32xf32>
    %c24_113 = arith.constant 24 : index
    %c32_114 = arith.constant 32 : index
    %87 = vector.load %arg9[%c24_113, %c32_114] : memref<128x256xf32, #tpu.memory_space<vmem>>, vector<8x32xf32>
    tpu.vector_store %arg9[%c24_113, %c32_114], %86 {strides = array<i32>} : memref<128x256xf32, #tpu.memory_space<vmem>>, vector<8x32xf32>,
    %c1_115 = arith.constant 1 : index
    %c0_116 = arith.constant 0 : index
    %c44_117 = arith.constant 44 : index
    %88 = vector.load %arg1[%c1_115, %c0_116, %c44_117] : memref<20x8x80xf32, #tpu.memory_space<vmem>>, vector<1x8x32xf32>
    %89 = vector.shape_cast %88 : vector<1x8x32xf32> to vector<8x32xf32>
    %c24_118 = arith.constant 24 : index
    %c64_119 = arith.constant 64 : index
    %90 = vector.load %arg9[%c24_118, %c64_119] : memref<128x256xf32, #tpu.memory_space<vmem>>, vector<8x32xf32>
    tpu.vector_store %arg9[%c24_118, %c64_119], %89 {strides = array<i32>} : memref<128x256xf32, #tpu.memory_space<vmem>>, vector<8x32xf32>,
    %c2_120 = arith.constant 2 : index
    %c0_121 = arith.constant 0 : index
    %c44_122 = arith.constant 44 : index
    %91 = vector.load %arg1[%c2_120, %c0_121, %c44_122] : memref<20x8x80xf32, #tpu.memory_space<vmem>>, vector<1x8x32xf32>
    %92 = vector.shape_cast %91 : vector<1x8x32xf32> to vector<8x32xf32>
    %c24_123 = arith.constant 24 : index
    %c96_124 = arith.constant 96 : index
    %93 = vector.load %arg9[%c24_123, %c96_124] : memref<128x256xf32, #tpu.memory_space<vmem>>, vector<8x32xf32>
    tpu.vector_store %arg9[%c24_123, %c96_124], %92 {strides = array<i32>} : memref<128x256xf32, #tpu.memory_space<vmem>>, vector<8x32xf32>,
    %c3_125 = arith.constant 3 : index
    %c0_126 = arith.constant 0 : index
    %c44_127 = arith.constant 44 : index
    %94 = vector.load %arg1[%c3_125, %c0_126, %c44_127] : memref<20x8x80xf32, #tpu.memory_space<vmem>>, vector<1x8x32xf32>
    %95 = vector.shape_cast %94 : vector<1x8x32xf32> to vector<8x32xf32>
    %c24_128 = arith.constant 24 : index
    %c128_129 = arith.constant 128 : index
    %96 = vector.load %arg9[%c24_128, %c128_129] : memref<128x256xf32, #tpu.memory_space<vmem>>, vector<8x32xf32>
    tpu.vector_store %arg9[%c24_128, %c128_129], %95 {strides = array<i32>} : memref<128x256xf32, #tpu.memory_space<vmem>>, vector<8x32xf32>,
    %c4_130 = arith.constant 4 : index
    %c0_131 = arith.constant 0 : index
    %c44_132 = arith.constant 44 : index
    %97 = vector.load %arg1[%c4_130, %c0_131, %c44_132] : memref<20x8x80xf32, #tpu.memory_space<vmem>>, vector<1x8x32xf32>
    %98 = vector.shape_cast %97 : vector<1x8x32xf32> to vector<8x32xf32>
    %c24_133 = arith.constant 24 : index
    %c160_134 = arith.constant 160 : index
    %99 = vector.load %arg9[%c24_133, %c160_134] : memref<128x256xf32, #tpu.memory_space<vmem>>, vector<8x32xf32>
    tpu.vector_store %arg9[%c24_133, %c160_134], %98 {strides = array<i32>} : memref<128x256xf32, #tpu.memory_space<vmem>>, vector<8x32xf32>,
    %c5_135 = arith.constant 5 : index
    %c0_136 = arith.constant 0 : index
    %c44_137 = arith.constant 44 : index
    %100 = vector.load %arg1[%c5_135, %c0_136, %c44_137] : memref<20x8x80xf32, #tpu.memory_space<vmem>>, vector<1x8x32xf32>
    %101 = vector.shape_cast %100 : vector<1x8x32xf32> to vector<8x32xf32>
    %c24_138 = arith.constant 24 : index
    %c192_139 = arith.constant 192 : index
    %102 = vector.load %arg9[%c24_138, %c192_139] : memref<128x256xf32, #tpu.memory_space<vmem>>, vector<8x32xf32>
    tpu.vector_store %arg9[%c24_138, %c192_139], %101 {strides = array<i32>} : memref<128x256xf32, #tpu.memory_space<vmem>>, vector<8x32xf32>,
    %c6_140 = arith.constant 6 : index
    %c0_141 = arith.constant 0 : index
    %c44_142 = arith.constant 44 : index
    %103 = vector.load %arg1[%c6_140, %c0_141, %c44_142] : memref<20x8x80xf32, #tpu.memory_space<vmem>>, vector<1x8x32xf32>
    %104 = vector.shape_cast %103 : vector<1x8x32xf32> to vector<8x32xf32>
    %c24_143 = arith.constant 24 : index
    %c224_144 = arith.constant 224 : index
    %105 = vector.load %arg9[%c24_143, %c224_144] : memref<128x256xf32, #tpu.memory_space<vmem>>, vector<8x32xf32>
    tpu.vector_store %arg9[%c24_143, %c224_144], %104 {strides = array<i32>} : memref<128x256xf32, #tpu.memory_space<vmem>>, vector<8x32xf32>,
    %cst_145 = arith.constant 0.000000e+00 : f32
    %106 = vector.broadcast %cst_145 : f32 to vector<8x32xf32>
    %c32_146 = arith.constant 32 : index
    %c0_147 = arith.constant 0 : index
    %107 = vector.load %arg9[%c32_146, %c0_147] : memref<128x256xf32, #tpu.memory_space<vmem>>, vector<8x32xf32>
    tpu.vector_store %arg9[%c32_146, %c0_147], %106 {strides = array<i32>} : memref<128x256xf32, #tpu.memory_space<vmem>>, vector<8x32xf32>,
    %c3_148 = arith.constant 3 : index
    %c0_149 = arith.constant 0 : index
    %c0_150 = arith.constant 0 : index
    %108 = vector.load %arg1[%c3_148, %c0_149, %c0_150] : memref<20x8x80xf32, #tpu.memory_space<vmem>>, vector<1x8x28xf32>
    %109 = vector.shape_cast %108 : vector<1x8x28xf32> to vector<8x28xf32>
    %c32_151 = arith.constant 32 : index
    %c4_152 = arith.constant 4 : index
    %110 = vector.load %arg9[%c32_151, %c4_152] : memref<128x256xf32, #tpu.memory_space<vmem>>, vector<8x28xf32>
    tpu.vector_store %arg9[%c32_151, %c4_152], %109 {strides = array<i32>} : memref<128x256xf32, #tpu.memory_space<vmem>>, vector<8x28xf32>,
    %cst_153 = arith.constant 0.000000e+00 : f32
    %111 = vector.broadcast %cst_153 : f32 to vector<8x32xf32>
    %c32_154 = arith.constant 32 : index
    %c32_155 = arith.constant 32 : index
    %112 = vector.load %arg9[%c32_154, %c32_155] : memref<128x256xf32, #tpu.memory_space<vmem>>, vector<8x32xf32>
    tpu.vector_store %arg9[%c32_154, %c32_155], %111 {strides = array<i32>} : memref<128x256xf32, #tpu.memory_space<vmem>>, vector<8x32xf32>,
    %c4_156 = arith.constant 4 : index
    %c0_157 = arith.constant 0 : index
    %c0_158 = arith.constant 0 : index
    %113 = vector.load %arg1[%c4_156, %c0_157, %c0_158] : memref<20x8x80xf32, #tpu.memory_space<vmem>>, vector<1x8x28xf32>
    %114 = vector.shape_cast %113 : vector<1x8x28xf32> to vector<8x28xf32>
    %c32_159 = arith.constant 32 : index
    %c36_160 = arith.constant 36 : index
    %115 = vector.load %arg9[%c32_159, %c36_160] : memref<128x256xf32, #tpu.memory_space<vmem>>, vector<8x28xf32>
    tpu.vector_store %arg9[%c32_159, %c36_160], %114 {strides = array<i32>} : memref<128x256xf32, #tpu.memory_space<vmem>>, vector<8x28xf32>,
    %cst_161 = arith.constant 0.000000e+00 : f32
    %116 = vector.broadcast %cst_161 : f32 to vector<8x32xf32>
    %c32_162 = arith.constant 32 : index
    %c64_163 = arith.constant 64 : index
    %117 = vector.load %arg9[%c32_162, %c64_163] : memref<128x256xf32, #tpu.memory_space<vmem>>, vector<8x32xf32>
    tpu.vector_store %arg9[%c32_162, %c64_163], %116 {strides = array<i32>} : memref<128x256xf32, #tpu.memory_space<vmem>>, vector<8x32xf32>,
    %c5_164 = arith.constant 5 : index
    %c0_165 = arith.constant 0 : index
    %c0_166 = arith.constant 0 : index
    %118 = vector.load %arg1[%c5_164, %c0_165, %c0_166] : memref<20x8x80xf32, #tpu.memory_space<vmem>>, vector<1x8x28xf32>
    %119 = vector.shape_cast %118 : vector<1x8x28xf32> to vector<8x28xf32>
    %c32_167 = arith.constant 32 : index
    %c68_168 = arith.constant 68 : index
    %120 = vector.load %arg9[%c32_167, %c68_168] : memref<128x256xf32, #tpu.memory_space<vmem>>, vector<8x28xf32>
    tpu.vector_store %arg9[%c32_167, %c68_168], %119 {strides = array<i32>} : memref<128x256xf32, #tpu.memory_space<vmem>>, vector<8x28xf32>,
    %cst_169 = arith.constant 0.000000e+00 : f32
    %121 = vector.broadcast %cst_169 : f32 to vector<8x32xf32>
    %c32_170 = arith.constant 32 : index
    %c96_171 = arith.constant 96 : index
    %122 = vector.load %arg9[%c32_170, %c96_171] : memref<128x256xf32, #tpu.memory_space<vmem>>, vector<8x32xf32>
    tpu.vector_store %arg9[%c32_170, %c96_171], %121 {strides = array<i32>} : memref<128x256xf32, #tpu.memory_space<vmem>>, vector<8x32xf32>,
    %c6_172 = arith.constant 6 : index
    %c0_173 = arith.constant 0 : index
    %c0_174 = arith.constant 0 : index
    %123 = vector.load %arg1[%c6_172, %c0_173, %c0_174] : memref<20x8x80xf32, #tpu.memory_space<vmem>>, vector<1x8x28xf32>
    %124 = vector.shape_cast %123 : vector<1x8x28xf32> to vector<8x28xf32>
    %c32_175 = arith.constant 32 : index
    %c100_176 = arith.constant 100 : index
    %125 = vector.load %arg9[%c32_175, %c100_176] : memref<128x256xf32, #tpu.memory_space<vmem>>, vector<8x28xf32>
    tpu.vector_store %arg9[%c32_175, %c100_176], %124 {strides = array<i32>} : memref<128x256xf32, #tpu.memory_space<vmem>>, vector<8x28xf32>,
    %cst_177 = arith.constant 0.000000e+00 : f32
    %126 = vector.broadcast %cst_177 : f32 to vector<8x32xf32>
    %c32_178 = arith.constant 32 : index
    %c128_179 = arith.constant 128 : index
    %127 = vector.load %arg9[%c32_178, %c128_179] : memref<128x256xf32, #tpu.memory_space<vmem>>, vector<8x32xf32>
    tpu.vector_store %arg9[%c32_178, %c128_179], %126 {strides = array<i32>} : memref<128x256xf32, #tpu.memory_space<vmem>>, vector<8x32xf32>,
    %c7 = arith.constant 7 : index
    %c0_180 = arith.constant 0 : index
    %c0_181 = arith.constant 0 : index
    %128 = vector.load %arg1[%c7, %c0_180, %c0_181] : memref<20x8x80xf32, #tpu.memory_space<vmem>>, vector<1x8x28xf32>
    %129 = vector.shape_cast %128 : vector<1x8x28xf32> to vector<8x28xf32>
    %c32_182 = arith.constant 32 : index
    %c132_183 = arith.constant 132 : index
    %130 = vector.load %arg9[%c32_182, %c132_183] : memref<128x256xf32, #tpu.memory_space<vmem>>, vector<8x28xf32>
    tpu.vector_store %arg9[%c32_182, %c132_183], %129 {strides = array<i32>} : memref<128x256xf32, #tpu.memory_space<vmem>>, vector<8x28xf32>,
    %cst_184 = arith.constant 0.000000e+00 : f32
    %131 = vector.broadcast %cst_184 : f32 to vector<8x32xf32>
    %c32_185 = arith.constant 32 : index
    %c160_186 = arith.constant 160 : index
    %132 = vector.load %arg9[%c32_185, %c160_186] : memref<128x256xf32, #tpu.memory_space<vmem>>, vector<8x32xf32>
    tpu.vector_store %arg9[%c32_185, %c160_186], %131 {strides = array<i32>} : memref<128x256xf32, #tpu.memory_space<vmem>>, vector<8x32xf32>,
    %c8_187 = arith.constant 8 : index
    %c0_188 = arith.constant 0 : index
    %c0_189 = arith.constant 0 : index
    %133 = vector.load %arg1[%c8_187, %c0_188, %c0_189] : memref<20x8x80xf32, #tpu.memory_space<vmem>>, vector<1x8x28xf32>
    %134 = vector.shape_cast %133 : vector<1x8x28xf32> to vector<8x28xf32>
    %c32_190 = arith.constant 32 : index
    %c164_191 = arith.constant 164 : index
    %135 = vector.load %arg9[%c32_190, %c164_191] : memref<128x256xf32, #tpu.memory_space<vmem>>, vector<8x28xf32>
    tpu.vector_store %arg9[%c32_190, %c164_191], %134 {strides = array<i32>} : memref<128x256xf32, #tpu.memory_space<vmem>>, vector<8x28xf32>,
    %cst_192 = arith.constant 0.000000e+00 : f32
    %136 = vector.broadcast %cst_192 : f32 to vector<8x32xf32>
    %c32_193 = arith.constant 32 : index
    %c192_194 = arith.constant 192 : index
    %137 = vector.load %arg9[%c32_193, %c192_194] : memref<128x256xf32, #tpu.memory_space<vmem>>, vector<8x32xf32>
    tpu.vector_store %arg9[%c32_193, %c192_194], %136 {strides = array<i32>} : memref<128x256xf32, #tpu.memory_space<vmem>>, vector<8x32xf32>,
    %c9 = arith.constant 9 : index
    %c0_195 = arith.constant 0 : index
    %c0_196 = arith.constant 0 : index
    %138 = vector.load %arg1[%c9, %c0_195, %c0_196] : memref<20x8x80xf32, #tpu.memory_space<vmem>>, vector<1x8x28xf32>
    %139 = vector.shape_cast %138 : vector<1x8x28xf32> to vector<8x28xf32>
    %c32_197 = arith.constant 32 : index
    %c196_198 = arith.constant 196 : index
    %140 = vector.load %arg9[%c32_197, %c196_198] : memref<128x256xf32, #tpu.memory_space<vmem>>, vector<8x28xf32>
    tpu.vector_store %arg9[%c32_197, %c196_198], %139 {strides = array<i32>} : memref<128x256xf32, #tpu.memory_space<vmem>>, vector<8x28xf32>,
    %cst_199 = arith.constant 0.000000e+00 : f32
    %141 = vector.broadcast %cst_199 : f32 to vector<8x32xf32>
    %c32_200 = arith.constant 32 : index
    %c224_201 = arith.constant 224 : index
    %142 = vector.load %arg9[%c32_200, %c224_201] : memref<128x256xf32, #tpu.memory_space<vmem>>, vector<8x32xf32>
    tpu.vector_store %arg9[%c32_200, %c224_201], %141 {strides = array<i32>} : memref<128x256xf32, #tpu.memory_space<vmem>>, vector<8x32xf32>,
    %c10 = arith.constant 10 : index
    %c0_202 = arith.constant 0 : index
    %c0_203 = arith.constant 0 : index
    %143 = vector.load %arg1[%c10, %c0_202, %c0_203] : memref<20x8x80xf32, #tpu.memory_space<vmem>>, vector<1x8x28xf32>
    %144 = vector.shape_cast %143 : vector<1x8x28xf32> to vector<8x28xf32>
    %c32_204 = arith.constant 32 : index
    %c228_205 = arith.constant 228 : index
    %145 = vector.load %arg9[%c32_204, %c228_205] : memref<128x256xf32, #tpu.memory_space<vmem>>, vector<8x28xf32>
    tpu.vector_store %arg9[%c32_204, %c228_205], %144 {strides = array<i32>} : memref<128x256xf32, #tpu.memory_space<vmem>>, vector<8x28xf32>,
    %c3_206 = arith.constant 3 : index
    %c0_207 = arith.constant 0 : index
    %c12_208 = arith.constant 12 : index
    %146 = vector.load %arg1[%c3_206, %c0_207, %c12_208] : memref<20x8x80xf32, #tpu.memory_space<vmem>>, vector<1x8x32xf32>
    %147 = vector.shape_cast %146 : vector<1x8x32xf32> to vector<8x32xf32>
    %c40 = arith.constant 40 : index
    %c0_209 = arith.constant 0 : index
    %148 = vector.load %arg9[%c40, %c0_209] : memref<128x256xf32, #tpu.memory_space<vmem>>, vector<8x32xf32>
    tpu.vector_store %arg9[%c40, %c0_209], %147 {strides = array<i32>} : memref<128x256xf32, #tpu.memory_space<vmem>>, vector<8x32xf32>,
    %c4_210 = arith.constant 4 : index
    %c0_211 = arith.constant 0 : index
    %c12_212 = arith.constant 12 : index
    %149 = vector.load %arg1[%c4_210, %c0_211, %c12_212] : memref<20x8x80xf32, #tpu.memory_space<vmem>>, vector<1x8x32xf32>
    %150 = vector.shape_cast %149 : vector<1x8x32xf32> to vector<8x32xf32>
    %c40_213 = arith.constant 40 : index
    %c32_214 = arith.constant 32 : index
    %151 = vector.load %arg9[%c40_213, %c32_214] : memref<128x256xf32, #tpu.memory_space<vmem>>, vector<8x32xf32>
    tpu.vector_store %arg9[%c40_213, %c32_214], %150 {strides = array<i32>} : memref<128x256xf32, #tpu.memory_space<vmem>>, vector<8x32xf32>,
    %c5_215 = arith.constant 5 : index
    %c0_216 = arith.constant 0 : index
    %c12_217 = arith.constant 12 : index
    %152 = vector.load %arg1[%c5_215, %c0_216, %c12_217] : memref<20x8x80xf32, #tpu.memory_space<vmem>>, vector<1x8x32xf32>
    %153 = vector.shape_cast %152 : vector<1x8x32xf32> to vector<8x32xf32>
    %c40_218 = arith.constant 40 : index
    %c64_219 = arith.constant 64 : index
    %154 = vector.load %arg9[%c40_218, %c64_219] : memref<128x256xf32, #tpu.memory_space<vmem>>, vector<8x32xf32>
    tpu.vector_store %arg9[%c40_218, %c64_219], %153 {strides = array<i32>} : memref<128x256xf32, #tpu.memory_space<vmem>>, vector<8x32xf32>,
    %c6_220 = arith.constant 6 : index
    %c0_221 = arith.constant 0 : index
    %c12_222 = arith.constant 12 : index
    %155 = vector.load %arg1[%c6_220, %c0_221, %c12_222] : memref<20x8x80xf32, #tpu.memory_space<vmem>>, vector<1x8x32xf32>
    %156 = vector.shape_cast %155 : vector<1x8x32xf32> to vector<8x32xf32>
    %c40_223 = arith.constant 40 : index
    %c96_224 = arith.constant 96 : index
    %157 = vector.load %arg9[%c40_223, %c96_224] : memref<128x256xf32, #tpu.memory_space<vmem>>, vector<8x32xf32>
    tpu.vector_store %arg9[%c40_223, %c96_224], %156 {strides = array<i32>} : memref<128x256xf32, #tpu.memory_space<vmem>>, vector<8x32xf32>,
    %c7_225 = arith.constant 7 : index
    %c0_226 = arith.constant 0 : index
    %c12_227 = arith.constant 12 : index
    %158 = vector.load %arg1[%c7_225, %c0_226, %c12_227] : memref<20x8x80xf32, #tpu.memory_space<vmem>>, vector<1x8x32xf32>
    %159 = vector.shape_cast %158 : vector<1x8x32xf32> to vector<8x32xf32>
    %c40_228 = arith.constant 40 : index
    %c128_229 = arith.constant 128 : index
    %160 = vector.load %arg9[%c40_228, %c128_229] : memref<128x256xf32, #tpu.memory_space<vmem>>, vector<8x32xf32>
    tpu.vector_store %arg9[%c40_228, %c128_229], %159 {strides = array<i32>} : memref<128x256xf32, #tpu.memory_space<vmem>>, vector<8x32xf32>,
    %c8_230 = arith.constant 8 : index
    %c0_231 = arith.constant 0 : index
    %c12_232 = arith.constant 12 : index
    %161 = vector.load %arg1[%c8_230, %c0_231, %c12_232] : memref<20x8x80xf32, #tpu.memory_space<vmem>>, vector<1x8x32xf32>
    %162 = vector.shape_cast %161 : vector<1x8x32xf32> to vector<8x32xf32>
    %c40_233 = arith.constant 40 : index
    %c160_234 = arith.constant 160 : index
    %163 = vector.load %arg9[%c40_233, %c160_234] : memref<128x256xf32, #tpu.memory_space<vmem>>, vector<8x32xf32>
    tpu.vector_store %arg9[%c40_233, %c160_234], %162 {strides = array<i32>} : memref<128x256xf32, #tpu.memory_space<vmem>>, vector<8x32xf32>,
    %c9_235 = arith.constant 9 : index
    %c0_236 = arith.constant 0 : index
    %c12_237 = arith.constant 12 : index
    %164 = vector.load %arg1[%c9_235, %c0_236, %c12_237] : memref<20x8x80xf32, #tpu.memory_space<vmem>>, vector<1x8x32xf32>
    %165 = vector.shape_cast %164 : vector<1x8x32xf32> to vector<8x32xf32>
    %c40_238 = arith.constant 40 : index
    %c192_239 = arith.constant 192 : index
    %166 = vector.load %arg9[%c40_238, %c192_239] : memref<128x256xf32, #tpu.memory_space<vmem>>, vector<8x32xf32>
    tpu.vector_store %arg9[%c40_238, %c192_239], %165 {strides = array<i32>} : memref<128x256xf32, #tpu.memory_space<vmem>>, vector<8x32xf32>,
    %c10_240 = arith.constant 10 : index
    %c0_241 = arith.constant 0 : index
    %c12_242 = arith.constant 12 : index
    %167 = vector.load %arg1[%c10_240, %c0_241, %c12_242] : memref<20x8x80xf32, #tpu.memory_space<vmem>>, vector<1x8x32xf32>
    %168 = vector.shape_cast %167 : vector<1x8x32xf32> to vector<8x32xf32>
    %c40_243 = arith.constant 40 : index
    %c224_244 = arith.constant 224 : index
    %169 = vector.load %arg9[%c40_243, %c224_244] : memref<128x256xf32, #tpu.memory_space<vmem>>, vector<8x32xf32>
    tpu.vector_store %arg9[%c40_243, %c224_244], %168 {strides = array<i32>} : memref<128x256xf32, #tpu.memory_space<vmem>>, vector<8x32xf32>,
    %c3_245 = arith.constant 3 : index
    %c0_246 = arith.constant 0 : index
    %c28_247 = arith.constant 28 : index
    %170 = vector.load %arg1[%c3_245, %c0_246, %c28_247] : memref<20x8x80xf32, #tpu.memory_space<vmem>>, vector<1x8x32xf32>
    %171 = vector.shape_cast %170 : vector<1x8x32xf32> to vector<8x32xf32>
    %c48 = arith.constant 48 : index
    %c0_248 = arith.constant 0 : index
    %172 = vector.load %arg9[%c48, %c0_248] : memref<128x256xf32, #tpu.memory_space<vmem>>, vector<8x32xf32>
    tpu.vector_store %arg9[%c48, %c0_248], %171 {strides = array<i32>} : memref<128x256xf32, #tpu.memory_space<vmem>>, vector<8x32xf32>,
    %c4_249 = arith.constant 4 : index
    %c0_250 = arith.constant 0 : index
    %c28_251 = arith.constant 28 : index
    %173 = vector.load %arg1[%c4_249, %c0_250, %c28_251] : memref<20x8x80xf32, #tpu.memory_space<vmem>>, vector<1x8x32xf32>
    %174 = vector.shape_cast %173 : vector<1x8x32xf32> to vector<8x32xf32>
    %c48_252 = arith.constant 48 : index
    %c32_253 = arith.constant 32 : index
    %175 = vector.load %arg9[%c48_252, %c32_253] : memref<128x256xf32, #tpu.memory_space<vmem>>, vector<8x32xf32>
    tpu.vector_store %arg9[%c48_252, %c32_253], %174 {strides = array<i32>} : memref<128x256xf32, #tpu.memory_space<vmem>>, vector<8x32xf32>,
    %c5_254 = arith.constant 5 : index
    %c0_255 = arith.constant 0 : index
    %c28_256 = arith.constant 28 : index
    %176 = vector.load %arg1[%c5_254, %c0_255, %c28_256] : memref<20x8x80xf32, #tpu.memory_space<vmem>>, vector<1x8x32xf32>
    %177 = vector.shape_cast %176 : vector<1x8x32xf32> to vector<8x32xf32>
    %c48_257 = arith.constant 48 : index
    %c64_258 = arith.constant 64 : index
    %178 = vector.load %arg9[%c48_257, %c64_258] : memref<128x256xf32, #tpu.memory_space<vmem>>, vector<8x32xf32>
    tpu.vector_store %arg9[%c48_257, %c64_258], %177 {strides = array<i32>} : memref<128x256xf32, #tpu.memory_space<vmem>>, vector<8x32xf32>,
    %c6_259 = arith.constant 6 : index
    %c0_260 = arith.constant 0 : index
    %c28_261 = arith.constant 28 : index
    %179 = vector.load %arg1[%c6_259, %c0_260, %c28_261] : memref<20x8x80xf32, #tpu.memory_space<vmem>>, vector<1x8x32xf32>
    %180 = vector.shape_cast %179 : vector<1x8x32xf32> to vector<8x32xf32>
    %c48_262 = arith.constant 48 : index
    %c96_263 = arith.constant 96 : index
    %181 = vector.load %arg9[%c48_262, %c96_263] : memref<128x256xf32, #tpu.memory_space<vmem>>, vector<8x32xf32>
    tpu.vector_store %arg9[%c48_262, %c96_263], %180 {strides = array<i32>} : memref<128x256xf32, #tpu.memory_space<vmem>>, vector<8x32xf32>,
    %c7_264 = arith.constant 7 : index
    %c0_265 = arith.constant 0 : index
    %c28_266 = arith.constant 28 : index
    %182 = vector.load %arg1[%c7_264, %c0_265, %c28_266] : memref<20x8x80xf32, #tpu.memory_space<vmem>>, vector<1x8x32xf32>
    %183 = vector.shape_cast %182 : vector<1x8x32xf32> to vector<8x32xf32>
    %c48_267 = arith.constant 48 : index
    %c128_268 = arith.constant 128 : index
    %184 = vector.load %arg9[%c48_267, %c128_268] : memref<128x256xf32, #tpu.memory_space<vmem>>, vector<8x32xf32>
    tpu.vector_store %arg9[%c48_267, %c128_268], %183 {strides = array<i32>} : memref<128x256xf32, #tpu.memory_space<vmem>>, vector<8x32xf32>,
    %c8_269 = arith.constant 8 : index
    %c0_270 = arith.constant 0 : index
    %c28_271 = arith.constant 28 : index
    %185 = vector.load %arg1[%c8_269, %c0_270, %c28_271] : memref<20x8x80xf32, #tpu.memory_space<vmem>>, vector<1x8x32xf32>
    %186 = vector.shape_cast %185 : vector<1x8x32xf32> to vector<8x32xf32>
    %c48_272 = arith.constant 48 : index
    %c160_273 = arith.constant 160 : index
    %187 = vector.load %arg9[%c48_272, %c160_273] : memref<128x256xf32, #tpu.memory_space<vmem>>, vector<8x32xf32>
    tpu.vector_store %arg9[%c48_272, %c160_273], %186 {strides = array<i32>} : memref<128x256xf32, #tpu.memory_space<vmem>>, vector<8x32xf32>,
    %c9_274 = arith.constant 9 : index
    %c0_275 = arith.constant 0 : index
    %c28_276 = arith.constant 28 : index
    %188 = vector.load %arg1[%c9_274, %c0_275, %c28_276] : memref<20x8x80xf32, #tpu.memory_space<vmem>>, vector<1x8x32xf32>
    %189 = vector.shape_cast %188 : vector<1x8x32xf32> to vector<8x32xf32>
    %c48_277 = arith.constant 48 : index
    %c192_278 = arith.constant 192 : index
    %190 = vector.load %arg9[%c48_277, %c192_278] : memref<128x256xf32, #tpu.memory_space<vmem>>, vector<8x32xf32>
    tpu.vector_store %arg9[%c48_277, %c192_278], %189 {strides = array<i32>} : memref<128x256xf32, #tpu.memory_space<vmem>>, vector<8x32xf32>,
    %c10_279 = arith.constant 10 : index
    %c0_280 = arith.constant 0 : index
    %c28_281 = arith.constant 28 : index
    %191 = vector.load %arg1[%c10_279, %c0_280, %c28_281] : memref<20x8x80xf32, #tpu.memory_space<vmem>>, vector<1x8x32xf32>
    %192 = vector.shape_cast %191 : vector<1x8x32xf32> to vector<8x32xf32>
    %c48_282 = arith.constant 48 : index
    %c224_283 = arith.constant 224 : index
    %193 = vector.load %arg9[%c48_282, %c224_283] : memref<128x256xf32, #tpu.memory_space<vmem>>, vector<8x32xf32>
    tpu.vector_store %arg9[%c48_282, %c224_283], %192 {strides = array<i32>} : memref<128x256xf32, #tpu.memory_space<vmem>>, vector<8x32xf32>,
    %c3_284 = arith.constant 3 : index
    %c0_285 = arith.constant 0 : index
    %c44_286 = arith.constant 44 : index
    %194 = vector.load %arg1[%c3_284, %c0_285, %c44_286] : memref<20x8x80xf32, #tpu.memory_space<vmem>>, vector<1x8x32xf32>
    %195 = vector.shape_cast %194 : vector<1x8x32xf32> to vector<8x32xf32>
    %c56 = arith.constant 56 : index
    %c0_287 = arith.constant 0 : index
    %196 = vector.load %arg9[%c56, %c0_287] : memref<128x256xf32, #tpu.memory_space<vmem>>, vector<8x32xf32>
    tpu.vector_store %arg9[%c56, %c0_287], %195 {strides = array<i32>} : memref<128x256xf32, #tpu.memory_space<vmem>>, vector<8x32xf32>,
    %c4_288 = arith.constant 4 : index
    %c0_289 = arith.constant 0 : index
    %c44_290 = arith.constant 44 : index
    %197 = vector.load %arg1[%c4_288, %c0_289, %c44_290] : memref<20x8x80xf32, #tpu.memory_space<vmem>>, vector<1x8x32xf32>
    %198 = vector.shape_cast %197 : vector<1x8x32xf32> to vector<8x32xf32>
    %c56_291 = arith.constant 56 : index
    %c32_292 = arith.constant 32 : index
    %199 = vector.load %arg9[%c56_291, %c32_292] : memref<128x256xf32, #tpu.memory_space<vmem>>, vector<8x32xf32>
    tpu.vector_store %arg9[%c56_291, %c32_292], %198 {strides = array<i32>} : memref<128x256xf32, #tpu.memory_space<vmem>>, vector<8x32xf32>,
    %c5_293 = arith.constant 5 : index
    %c0_294 = arith.constant 0 : index
    %c44_295 = arith.constant 44 : index
    %200 = vector.load %arg1[%c5_293, %c0_294, %c44_295] : memref<20x8x80xf32, #tpu.memory_space<vmem>>, vector<1x8x32xf32>
    %201 = vector.shape_cast %200 : vector<1x8x32xf32> to vector<8x32xf32>
    %c56_296 = arith.constant 56 : index
    %c64_297 = arith.constant 64 : index
    %202 = vector.load %arg9[%c56_296, %c64_297] : memref<128x256xf32, #tpu.memory_space<vmem>>, vector<8x32xf32>
    tpu.vector_store %arg9[%c56_296, %c64_297], %201 {strides = array<i32>} : memref<128x256xf32, #tpu.memory_space<vmem>>, vector<8x32xf32>,
    %c6_298 = arith.constant 6 : index
    %c0_299 = arith.constant 0 : index
    %c44_300 = arith.constant 44 : index
    %203 = vector.load %arg1[%c6_298, %c0_299, %c44_300] : memref<20x8x80xf32, #tpu.memory_space<vmem>>, vector<1x8x32xf32>
    %204 = vector.shape_cast %203 : vector<1x8x32xf32> to vector<8x32xf32>
    %c56_301 = arith.constant 56 : index
    %c96_302 = arith.constant 96 : index
    %205 = vector.load %arg9[%c56_301, %c96_302] : memref<128x256xf32, #tpu.memory_space<vmem>>, vector<8x32xf32>
    tpu.vector_store %arg9[%c56_301, %c96_302], %204 {strides = array<i32>} : memref<128x256xf32, #tpu.memory_space<vmem>>, vector<8x32xf32>,
    %c7_303 = arith.constant 7 : index
    %c0_304 = arith.constant 0 : index
    %c44_305 = arith.constant 44 : index
    %206 = vector.load %arg1[%c7_303, %c0_304, %c44_305] : memref<20x8x80xf32, #tpu.memory_space<vmem>>, vector<1x8x32xf32>
    %207 = vector.shape_cast %206 : vector<1x8x32xf32> to vector<8x32xf32>
    %c56_306 = arith.constant 56 : index
    %c128_307 = arith.constant 128 : index
    %208 = vector.load %arg9[%c56_306, %c128_307] : memref<128x256xf32, #tpu.memory_space<vmem>>, vector<8x32xf32>
    tpu.vector_store %arg9[%c56_306, %c128_307], %207 {strides = array<i32>} : memref<128x256xf32, #tpu.memory_space<vmem>>, vector<8x32xf32>,
    %c8_308 = arith.constant 8 : index
    %c0_309 = arith.constant 0 : index
    %c44_310 = arith.constant 44 : index
    %209 = vector.load %arg1[%c8_308, %c0_309, %c44_310] : memref<20x8x80xf32, #tpu.memory_space<vmem>>, vector<1x8x32xf32>
    %210 = vector.shape_cast %209 : vector<1x8x32xf32> to vector<8x32xf32>
    %c56_311 = arith.constant 56 : index
    %c160_312 = arith.constant 160 : index
    %211 = vector.load %arg9[%c56_311, %c160_312] : memref<128x256xf32, #tpu.memory_space<vmem>>, vector<8x32xf32>
    tpu.vector_store %arg9[%c56_311, %c160_312], %210 {strides = array<i32>} : memref<128x256xf32, #tpu.memory_space<vmem>>, vector<8x32xf32>,
    %c9_313 = arith.constant 9 : index
    %c0_314 = arith.constant 0 : index
    %c44_315 = arith.constant 44 : index
    %212 = vector.load %arg1[%c9_313, %c0_314, %c44_315] : memref<20x8x80xf32, #tpu.memory_space<vmem>>, vector<1x8x32xf32>
    %213 = vector.shape_cast %212 : vector<1x8x32xf32> to vector<8x32xf32>
    %c56_316 = arith.constant 56 : index
    %c192_317 = arith.constant 192 : index
    %214 = vector.load %arg9[%c56_316, %c192_317] : memref<128x256xf32, #tpu.memory_space<vmem>>, vector<8x32xf32>
    tpu.vector_store %arg9[%c56_316, %c192_317], %213 {strides = array<i32>} : memref<128x256xf32, #tpu.memory_space<vmem>>, vector<8x32xf32>,
    %c10_318 = arith.constant 10 : index
    %c0_319 = arith.constant 0 : index
    %c44_320 = arith.constant 44 : index
    %215 = vector.load %arg1[%c10_318, %c0_319, %c44_320] : memref<20x8x80xf32, #tpu.memory_space<vmem>>, vector<1x8x32xf32>
    %216 = vector.shape_cast %215 : vector<1x8x32xf32> to vector<8x32xf32>
    %c56_321 = arith.constant 56 : index
    %c224_322 = arith.constant 224 : index
    %217 = vector.load %arg9[%c56_321, %c224_322] : memref<128x256xf32, #tpu.memory_space<vmem>>, vector<8x32xf32>
    tpu.vector_store %arg9[%c56_321, %c224_322], %216 {strides = array<i32>} : memref<128x256xf32, #tpu.memory_space<vmem>>, vector<8x32xf32>,
    %cst_323 = arith.constant 0.000000e+00 : f32
    %218 = vector.broadcast %cst_323 : f32 to vector<8x32xf32>
    %c64_324 = arith.constant 64 : index
    %c0_325 = arith.constant 0 : index
    %219 = vector.load %arg9[%c64_324, %c0_325] : memref<128x256xf32, #tpu.memory_space<vmem>>, vector<8x32xf32>
    tpu.vector_store %arg9[%c64_324, %c0_325], %218 {strides = array<i32>} : memref<128x256xf32, #tpu.memory_space<vmem>>, vector<8x32xf32>,
    %c7_326 = arith.constant 7 : index
    %c0_327 = arith.constant 0 : index
    %c0_328 = arith.constant 0 : index
    %220 = vector.load %arg1[%c7_326, %c0_327, %c0_328] : memref<20x8x80xf32, #tpu.memory_space<vmem>>, vector<1x8x28xf32>
    %221 = vector.shape_cast %220 : vector<1x8x28xf32> to vector<8x28xf32>
    %c64_329 = arith.constant 64 : index
    %c4_330 = arith.constant 4 : index
    %222 = vector.load %arg9[%c64_329, %c4_330] : memref<128x256xf32, #tpu.memory_space<vmem>>, vector<8x28xf32>
    tpu.vector_store %arg9[%c64_329, %c4_330], %221 {strides = array<i32>} : memref<128x256xf32, #tpu.memory_space<vmem>>, vector<8x28xf32>,
    %cst_331 = arith.constant 0.000000e+00 : f32
    %223 = vector.broadcast %cst_331 : f32 to vector<8x32xf32>
    %c64_332 = arith.constant 64 : index
    %c32_333 = arith.constant 32 : index
    %224 = vector.load %arg9[%c64_332, %c32_333] : memref<128x256xf32, #tpu.memory_space<vmem>>, vector<8x32xf32>
    tpu.vector_store %arg9[%c64_332, %c32_333], %223 {strides = array<i32>} : memref<128x256xf32, #tpu.memory_space<vmem>>, vector<8x32xf32>,
    %c8_334 = arith.constant 8 : index
    %c0_335 = arith.constant 0 : index
    %c0_336 = arith.constant 0 : index
    %225 = vector.load %arg1[%c8_334, %c0_335, %c0_336] : memref<20x8x80xf32, #tpu.memory_space<vmem>>, vector<1x8x28xf32>
    %226 = vector.shape_cast %225 : vector<1x8x28xf32> to vector<8x28xf32>
    %c64_337 = arith.constant 64 : index
    %c36_338 = arith.constant 36 : index
    %227 = vector.load %arg9[%c64_337, %c36_338] : memref<128x256xf32, #tpu.memory_space<vmem>>, vector<8x28xf32>
    tpu.vector_store %arg9[%c64_337, %c36_338], %226 {strides = array<i32>} : memref<128x256xf32, #tpu.memory_space<vmem>>, vector<8x28xf32>,
    %cst_339 = arith.constant 0.000000e+00 : f32
    %228 = vector.broadcast %cst_339 : f32 to vector<8x32xf32>
    %c64_340 = arith.constant 64 : index
    %c64_341 = arith.constant 64 : index
    %229 = vector.load %arg9[%c64_340, %c64_341] : memref<128x256xf32, #tpu.memory_space<vmem>>, vector<8x32xf32>
    tpu.vector_store %arg9[%c64_340, %c64_341], %228 {strides = array<i32>} : memref<128x256xf32, #tpu.memory_space<vmem>>, vector<8x32xf32>,
    %c9_342 = arith.constant 9 : index
    %c0_343 = arith.constant 0 : index
    %c0_344 = arith.constant 0 : index
    %230 = vector.load %arg1[%c9_342, %c0_343, %c0_344] : memref<20x8x80xf32, #tpu.memory_space<vmem>>, vector<1x8x28xf32>
    %231 = vector.shape_cast %230 : vector<1x8x28xf32> to vector<8x28xf32>
    %c64_345 = arith.constant 64 : index
    %c68_346 = arith.constant 68 : index
    %232 = vector.load %arg9[%c64_345, %c68_346] : memref<128x256xf32, #tpu.memory_space<vmem>>, vector<8x28xf32>
    tpu.vector_store %arg9[%c64_345, %c68_346], %231 {strides = array<i32>} : memref<128x256xf32, #tpu.memory_space<vmem>>, vector<8x28xf32>,
    %cst_347 = arith.constant 0.000000e+00 : f32
    %233 = vector.broadcast %cst_347 : f32 to vector<8x32xf32>
    %c64_348 = arith.constant 64 : index
    %c96_349 = arith.constant 96 : index
    %234 = vector.load %arg9[%c64_348, %c96_349] : memref<128x256xf32, #tpu.memory_space<vmem>>, vector<8x32xf32>
    tpu.vector_store %arg9[%c64_348, %c96_349], %233 {strides = array<i32>} : memref<128x256xf32, #tpu.memory_space<vmem>>, vector<8x32xf32>,
    %c10_350 = arith.constant 10 : index
    %c0_351 = arith.constant 0 : index
    %c0_352 = arith.constant 0 : index
    %235 = vector.load %arg1[%c10_350, %c0_351, %c0_352] : memref<20x8x80xf32, #tpu.memory_space<vmem>>, vector<1x8x28xf32>
    %236 = vector.shape_cast %235 : vector<1x8x28xf32> to vector<8x28xf32>
    %c64_353 = arith.constant 64 : index
    %c100_354 = arith.constant 100 : index
    %237 = vector.load %arg9[%c64_353, %c100_354] : memref<128x256xf32, #tpu.memory_space<vmem>>, vector<8x28xf32>
    tpu.vector_store %arg9[%c64_353, %c100_354], %236 {strides = array<i32>} : memref<128x256xf32, #tpu.memory_space<vmem>>, vector<8x28xf32>,
    %cst_355 = arith.constant 0.000000e+00 : f32
    %238 = vector.broadcast %cst_355 : f32 to vector<8x32xf32>
    %c64_356 = arith.constant 64 : index
    %c128_357 = arith.constant 128 : index
    %239 = vector.load %arg9[%c64_356, %c128_357] : memref<128x256xf32, #tpu.memory_space<vmem>>, vector<8x32xf32>
    tpu.vector_store %arg9[%c64_356, %c128_357], %238 {strides = array<i32>} : memref<128x256xf32, #tpu.memory_space<vmem>>, vector<8x32xf32>,
    %c11 = arith.constant 11 : index
    %c0_358 = arith.constant 0 : index
    %c0_359 = arith.constant 0 : index
    %240 = vector.load %arg1[%c11, %c0_358, %c0_359] : memref<20x8x80xf32, #tpu.memory_space<vmem>>, vector<1x8x28xf32>
    %241 = vector.shape_cast %240 : vector<1x8x28xf32> to vector<8x28xf32>
    %c64_360 = arith.constant 64 : index
    %c132_361 = arith.constant 132 : index
    %242 = vector.load %arg9[%c64_360, %c132_361] : memref<128x256xf32, #tpu.memory_space<vmem>>, vector<8x28xf32>
    tpu.vector_store %arg9[%c64_360, %c132_361], %241 {strides = array<i32>} : memref<128x256xf32, #tpu.memory_space<vmem>>, vector<8x28xf32>,
    %cst_362 = arith.constant 0.000000e+00 : f32
    %243 = vector.broadcast %cst_362 : f32 to vector<8x32xf32>
    %c64_363 = arith.constant 64 : index
    %c160_364 = arith.constant 160 : index
    %244 = vector.load %arg9[%c64_363, %c160_364] : memref<128x256xf32, #tpu.memory_space<vmem>>, vector<8x32xf32>
    tpu.vector_store %arg9[%c64_363, %c160_364], %243 {strides = array<i32>} : memref<128x256xf32, #tpu.memory_space<vmem>>, vector<8x32xf32>,
    %c12_365 = arith.constant 12 : index
    %c0_366 = arith.constant 0 : index
    %c0_367 = arith.constant 0 : index
    %245 = vector.load %arg1[%c12_365, %c0_366, %c0_367] : memref<20x8x80xf32, #tpu.memory_space<vmem>>, vector<1x8x28xf32>
    %246 = vector.shape_cast %245 : vector<1x8x28xf32> to vector<8x28xf32>
    %c64_368 = arith.constant 64 : index
    %c164_369 = arith.constant 164 : index
    %247 = vector.load %arg9[%c64_368, %c164_369] : memref<128x256xf32, #tpu.memory_space<vmem>>, vector<8x28xf32>
    tpu.vector_store %arg9[%c64_368, %c164_369], %246 {strides = array<i32>} : memref<128x256xf32, #tpu.memory_space<vmem>>, vector<8x28xf32>,
    %cst_370 = arith.constant 0.000000e+00 : f32
    %248 = vector.broadcast %cst_370 : f32 to vector<8x32xf32>
    %c64_371 = arith.constant 64 : index
    %c192_372 = arith.constant 192 : index
    %249 = vector.load %arg9[%c64_371, %c192_372] : memref<128x256xf32, #tpu.memory_space<vmem>>, vector<8x32xf32>
    tpu.vector_store %arg9[%c64_371, %c192_372], %248 {strides = array<i32>} : memref<128x256xf32, #tpu.memory_space<vmem>>, vector<8x32xf32>,
    %c13 = arith.constant 13 : index
    %c0_373 = arith.constant 0 : index
    %c0_374 = arith.constant 0 : index
    %250 = vector.load %arg1[%c13, %c0_373, %c0_374] : memref<20x8x80xf32, #tpu.memory_space<vmem>>, vector<1x8x28xf32>
    %251 = vector.shape_cast %250 : vector<1x8x28xf32> to vector<8x28xf32>
    %c64_375 = arith.constant 64 : index
    %c196_376 = arith.constant 196 : index
    %252 = vector.load %arg9[%c64_375, %c196_376] : memref<128x256xf32, #tpu.memory_space<vmem>>, vector<8x28xf32>
    tpu.vector_store %arg9[%c64_375, %c196_376], %251 {strides = array<i32>} : memref<128x256xf32, #tpu.memory_space<vmem>>, vector<8x28xf32>,
    %cst_377 = arith.constant 0.000000e+00 : f32
    %253 = vector.broadcast %cst_377 : f32 to vector<8x32xf32>
    %c64_378 = arith.constant 64 : index
    %c224_379 = arith.constant 224 : index
    %254 = vector.load %arg9[%c64_378, %c224_379] : memref<128x256xf32, #tpu.memory_space<vmem>>, vector<8x32xf32>
    tpu.vector_store %arg9[%c64_378, %c224_379], %253 {strides = array<i32>} : memref<128x256xf32, #tpu.memory_space<vmem>>, vector<8x32xf32>,
    %c14 = arith.constant 14 : index
    %c0_380 = arith.constant 0 : index
    %c0_381 = arith.constant 0 : index
    %255 = vector.load %arg1[%c14, %c0_380, %c0_381] : memref<20x8x80xf32, #tpu.memory_space<vmem>>, vector<1x8x28xf32>
    %256 = vector.shape_cast %255 : vector<1x8x28xf32> to vector<8x28xf32>
    %c64_382 = arith.constant 64 : index
    %c228_383 = arith.constant 228 : index
    %257 = vector.load %arg9[%c64_382, %c228_383] : memref<128x256xf32, #tpu.memory_space<vmem>>, vector<8x28xf32>
    tpu.vector_store %arg9[%c64_382, %c228_383], %256 {strides = array<i32>} : memref<128x256xf32, #tpu.memory_space<vmem>>, vector<8x28xf32>,
    %c7_384 = arith.constant 7 : index
    %c0_385 = arith.constant 0 : index
    %c12_386 = arith.constant 12 : index
    %258 = vector.load %arg1[%c7_384, %c0_385, %c12_386] : memref<20x8x80xf32, #tpu.memory_space<vmem>>, vector<1x8x32xf32>
    %259 = vector.shape_cast %258 : vector<1x8x32xf32> to vector<8x32xf32>
    %c72 = arith.constant 72 : index
    %c0_387 = arith.constant 0 : index
    %260 = vector.load %arg9[%c72, %c0_387] : memref<128x256xf32, #tpu.memory_space<vmem>>, vector<8x32xf32>
    tpu.vector_store %arg9[%c72, %c0_387], %259 {strides = array<i32>} : memref<128x256xf32, #tpu.memory_space<vmem>>, vector<8x32xf32>,
    %c8_388 = arith.constant 8 : index
    %c0_389 = arith.constant 0 : index
    %c12_390 = arith.constant 12 : index
    %261 = vector.load %arg1[%c8_388, %c0_389, %c12_390] : memref<20x8x80xf32, #tpu.memory_space<vmem>>, vector<1x8x32xf32>
    %262 = vector.shape_cast %261 : vector<1x8x32xf32> to vector<8x32xf32>
    %c72_391 = arith.constant 72 : index
    %c32_392 = arith.constant 32 : index
    %263 = vector.load %arg9[%c72_391, %c32_392] : memref<128x256xf32, #tpu.memory_space<vmem>>, vector<8x32xf32>
    tpu.vector_store %arg9[%c72_391, %c32_392], %262 {strides = array<i32>} : memref<128x256xf32, #tpu.memory_space<vmem>>, vector<8x32xf32>,
    %c9_393 = arith.constant 9 : index
    %c0_394 = arith.constant 0 : index
    %c12_395 = arith.constant 12 : index
    %264 = vector.load %arg1[%c9_393, %c0_394, %c12_395] : memref<20x8x80xf32, #tpu.memory_space<vmem>>, vector<1x8x32xf32>
    %265 = vector.shape_cast %264 : vector<1x8x32xf32> to vector<8x32xf32>
    %c72_396 = arith.constant 72 : index
    %c64_397 = arith.constant 64 : index
    %266 = vector.load %arg9[%c72_396, %c64_397] : memref<128x256xf32, #tpu.memory_space<vmem>>, vector<8x32xf32>
    tpu.vector_store %arg9[%c72_396, %c64_397], %265 {strides = array<i32>} : memref<128x256xf32, #tpu.memory_space<vmem>>, vector<8x32xf32>,
    %c10_398 = arith.constant 10 : index
    %c0_399 = arith.constant 0 : index
    %c12_400 = arith.constant 12 : index
    %267 = vector.load %arg1[%c10_398, %c0_399, %c12_400] : memref<20x8x80xf32, #tpu.memory_space<vmem>>, vector<1x8x32xf32>
    %268 = vector.shape_cast %267 : vector<1x8x32xf32> to vector<8x32xf32>
    %c72_401 = arith.constant 72 : index
    %c96_402 = arith.constant 96 : index
    %269 = vector.load %arg9[%c72_401, %c96_402] : memref<128x256xf32, #tpu.memory_space<vmem>>, vector<8x32xf32>
    tpu.vector_store %arg9[%c72_401, %c96_402], %268 {strides = array<i32>} : memref<128x256xf32, #tpu.memory_space<vmem>>, vector<8x32xf32>,
    %c11_403 = arith.constant 11 : index
    %c0_404 = arith.constant 0 : index
    %c12_405 = arith.constant 12 : index
    %270 = vector.load %arg1[%c11_403, %c0_404, %c12_405] : memref<20x8x80xf32, #tpu.memory_space<vmem>>, vector<1x8x32xf32>
    %271 = vector.shape_cast %270 : vector<1x8x32xf32> to vector<8x32xf32>
    %c72_406 = arith.constant 72 : index
    %c128_407 = arith.constant 128 : index
    %272 = vector.load %arg9[%c72_406, %c128_407] : memref<128x256xf32, #tpu.memory_space<vmem>>, vector<8x32xf32>
    tpu.vector_store %arg9[%c72_406, %c128_407], %271 {strides = array<i32>} : memref<128x256xf32, #tpu.memory_space<vmem>>, vector<8x32xf32>,
    %c12_408 = arith.constant 12 : index
    %c0_409 = arith.constant 0 : index
    %c12_410 = arith.constant 12 : index
    %273 = vector.load %arg1[%c12_408, %c0_409, %c12_410] : memref<20x8x80xf32, #tpu.memory_space<vmem>>, vector<1x8x32xf32>
    %274 = vector.shape_cast %273 : vector<1x8x32xf32> to vector<8x32xf32>
    %c72_411 = arith.constant 72 : index
    %c160_412 = arith.constant 160 : index
    %275 = vector.load %arg9[%c72_411, %c160_412] : memref<128x256xf32, #tpu.memory_space<vmem>>, vector<8x32xf32>
    tpu.vector_store %arg9[%c72_411, %c160_412], %274 {strides = array<i32>} : memref<128x256xf32, #tpu.memory_space<vmem>>, vector<8x32xf32>,
    %c13_413 = arith.constant 13 : index
    %c0_414 = arith.constant 0 : index
    %c12_415 = arith.constant 12 : index
    %276 = vector.load %arg1[%c13_413, %c0_414, %c12_415] : memref<20x8x80xf32, #tpu.memory_space<vmem>>, vector<1x8x32xf32>
    %277 = vector.shape_cast %276 : vector<1x8x32xf32> to vector<8x32xf32>
    %c72_416 = arith.constant 72 : index
    %c192_417 = arith.constant 192 : index
    %278 = vector.load %arg9[%c72_416, %c192_417] : memref<128x256xf32, #tpu.memory_space<vmem>>, vector<8x32xf32>
    tpu.vector_store %arg9[%c72_416, %c192_417], %277 {strides = array<i32>} : memref<128x256xf32, #tpu.memory_space<vmem>>, vector<8x32xf32>,
    %c14_418 = arith.constant 14 : index
    %c0_419 = arith.constant 0 : index
    %c12_420 = arith.constant 12 : index
    %279 = vector.load %arg1[%c14_418, %c0_419, %c12_420] : memref<20x8x80xf32, #tpu.memory_space<vmem>>, vector<1x8x32xf32>
    %280 = vector.shape_cast %279 : vector<1x8x32xf32> to vector<8x32xf32>
    %c72_421 = arith.constant 72 : index
    %c224_422 = arith.constant 224 : index
    %281 = vector.load %arg9[%c72_421, %c224_422] : memref<128x256xf32, #tpu.memory_space<vmem>>, vector<8x32xf32>
    tpu.vector_store %arg9[%c72_421, %c224_422], %280 {strides = array<i32>} : memref<128x256xf32, #tpu.memory_space<vmem>>, vector<8x32xf32>,
    %c7_423 = arith.constant 7 : index
    %c0_424 = arith.constant 0 : index
    %c28_425 = arith.constant 28 : index
    %282 = vector.load %arg1[%c7_423, %c0_424, %c28_425] : memref<20x8x80xf32, #tpu.memory_space<vmem>>, vector<1x8x32xf32>
    %283 = vector.shape_cast %282 : vector<1x8x32xf32> to vector<8x32xf32>
    %c80 = arith.constant 80 : index
    %c0_426 = arith.constant 0 : index
    %284 = vector.load %arg9[%c80, %c0_426] : memref<128x256xf32, #tpu.memory_space<vmem>>, vector<8x32xf32>
    tpu.vector_store %arg9[%c80, %c0_426], %283 {strides = array<i32>} : memref<128x256xf32, #tpu.memory_space<vmem>>, vector<8x32xf32>,
    %c8_427 = arith.constant 8 : index
    %c0_428 = arith.constant 0 : index
    %c28_429 = arith.constant 28 : index
    %285 = vector.load %arg1[%c8_427, %c0_428, %c28_429] : memref<20x8x80xf32, #tpu.memory_space<vmem>>, vector<1x8x32xf32>
    %286 = vector.shape_cast %285 : vector<1x8x32xf32> to vector<8x32xf32>
    %c80_430 = arith.constant 80 : index
    %c32_431 = arith.constant 32 : index
    %287 = vector.load %arg9[%c80_430, %c32_431] : memref<128x256xf32, #tpu.memory_space<vmem>>, vector<8x32xf32>
    tpu.vector_store %arg9[%c80_430, %c32_431], %286 {strides = array<i32>} : memref<128x256xf32, #tpu.memory_space<vmem>>, vector<8x32xf32>,
    %c9_432 = arith.constant 9 : index
    %c0_433 = arith.constant 0 : index
    %c28_434 = arith.constant 28 : index
    %288 = vector.load %arg1[%c9_432, %c0_433, %c28_434] : memref<20x8x80xf32, #tpu.memory_space<vmem>>, vector<1x8x32xf32>
    %289 = vector.shape_cast %288 : vector<1x8x32xf32> to vector<8x32xf32>
    %c80_435 = arith.constant 80 : index
    %c64_436 = arith.constant 64 : index
    %290 = vector.load %arg9[%c80_435, %c64_436] : memref<128x256xf32, #tpu.memory_space<vmem>>, vector<8x32xf32>
    tpu.vector_store %arg9[%c80_435, %c64_436], %289 {strides = array<i32>} : memref<128x256xf32, #tpu.memory_space<vmem>>, vector<8x32xf32>,
    %c10_437 = arith.constant 10 : index
    %c0_438 = arith.constant 0 : index
    %c28_439 = arith.constant 28 : index
    %291 = vector.load %arg1[%c10_437, %c0_438, %c28_439] : memref<20x8x80xf32, #tpu.memory_space<vmem>>, vector<1x8x32xf32>
    %292 = vector.shape_cast %291 : vector<1x8x32xf32> to vector<8x32xf32>
    %c80_440 = arith.constant 80 : index
    %c96_441 = arith.constant 96 : index
    %293 = vector.load %arg9[%c80_440, %c96_441] : memref<128x256xf32, #tpu.memory_space<vmem>>, vector<8x32xf32>
    tpu.vector_store %arg9[%c80_440, %c96_441], %292 {strides = array<i32>} : memref<128x256xf32, #tpu.memory_space<vmem>>, vector<8x32xf32>,
    %c11_442 = arith.constant 11 : index
    %c0_443 = arith.constant 0 : index
    %c28_444 = arith.constant 28 : index
    %294 = vector.load %arg1[%c11_442, %c0_443, %c28_444] : memref<20x8x80xf32, #tpu.memory_space<vmem>>, vector<1x8x32xf32>
    %295 = vector.shape_cast %294 : vector<1x8x32xf32> to vector<8x32xf32>
    %c80_445 = arith.constant 80 : index
    %c128_446 = arith.constant 128 : index
    %296 = vector.load %arg9[%c80_445, %c128_446] : memref<128x256xf32, #tpu.memory_space<vmem>>, vector<8x32xf32>
    tpu.vector_store %arg9[%c80_445, %c128_446], %295 {strides = array<i32>} : memref<128x256xf32, #tpu.memory_space<vmem>>, vector<8x32xf32>,
    %c12_447 = arith.constant 12 : index
    %c0_448 = arith.constant 0 : index
    %c28_449 = arith.constant 28 : index
    %297 = vector.load %arg1[%c12_447, %c0_448, %c28_449] : memref<20x8x80xf32, #tpu.memory_space<vmem>>, vector<1x8x32xf32>
    %298 = vector.shape_cast %297 : vector<1x8x32xf32> to vector<8x32xf32>
    %c80_450 = arith.constant 80 : index
    %c160_451 = arith.constant 160 : index
    %299 = vector.load %arg9[%c80_450, %c160_451] : memref<128x256xf32, #tpu.memory_space<vmem>>, vector<8x32xf32>
    tpu.vector_store %arg9[%c80_450, %c160_451], %298 {strides = array<i32>} : memref<128x256xf32, #tpu.memory_space<vmem>>, vector<8x32xf32>,
    %c13_452 = arith.constant 13 : index
    %c0_453 = arith.constant 0 : index
    %c28_454 = arith.constant 28 : index
    %300 = vector.load %arg1[%c13_452, %c0_453, %c28_454] : memref<20x8x80xf32, #tpu.memory_space<vmem>>, vector<1x8x32xf32>
    %301 = vector.shape_cast %300 : vector<1x8x32xf32> to vector<8x32xf32>
    %c80_455 = arith.constant 80 : index
    %c192_456 = arith.constant 192 : index
    %302 = vector.load %arg9[%c80_455, %c192_456] : memref<128x256xf32, #tpu.memory_space<vmem>>, vector<8x32xf32>
    tpu.vector_store %arg9[%c80_455, %c192_456], %301 {strides = array<i32>} : memref<128x256xf32, #tpu.memory_space<vmem>>, vector<8x32xf32>,
    %c14_457 = arith.constant 14 : index
    %c0_458 = arith.constant 0 : index
    %c28_459 = arith.constant 28 : index
    %303 = vector.load %arg1[%c14_457, %c0_458, %c28_459] : memref<20x8x80xf32, #tpu.memory_space<vmem>>, vector<1x8x32xf32>
    %304 = vector.shape_cast %303 : vector<1x8x32xf32> to vector<8x32xf32>
    %c80_460 = arith.constant 80 : index
    %c224_461 = arith.constant 224 : index
    %305 = vector.load %arg9[%c80_460, %c224_461] : memref<128x256xf32, #tpu.memory_space<vmem>>, vector<8x32xf32>
    tpu.vector_store %arg9[%c80_460, %c224_461], %304 {strides = array<i32>} : memref<128x256xf32, #tpu.memory_space<vmem>>, vector<8x32xf32>,
    %c7_462 = arith.constant 7 : index
    %c0_463 = arith.constant 0 : index
    %c44_464 = arith.constant 44 : index
    %306 = vector.load %arg1[%c7_462, %c0_463, %c44_464] : memref<20x8x80xf32, #tpu.memory_space<vmem>>, vector<1x8x32xf32>
    %307 = vector.shape_cast %306 : vector<1x8x32xf32> to vector<8x32xf32>
    %c88 = arith.constant 88 : index
    %c0_465 = arith.constant 0 : index
    %308 = vector.load %arg9[%c88, %c0_465] : memref<128x256xf32, #tpu.memory_space<vmem>>, vector<8x32xf32>
    tpu.vector_store %arg9[%c88, %c0_465], %307 {strides = array<i32>} : memref<128x256xf32, #tpu.memory_space<vmem>>, vector<8x32xf32>,
    %c8_466 = arith.constant 8 : index
    %c0_467 = arith.constant 0 : index
    %c44_468 = arith.constant 44 : index
    %309 = vector.load %arg1[%c8_466, %c0_467, %c44_468] : memref<20x8x80xf32, #tpu.memory_space<vmem>>, vector<1x8x32xf32>
    %310 = vector.shape_cast %309 : vector<1x8x32xf32> to vector<8x32xf32>
    %c88_469 = arith.constant 88 : index
    %c32_470 = arith.constant 32 : index
    %311 = vector.load %arg9[%c88_469, %c32_470] : memref<128x256xf32, #tpu.memory_space<vmem>>, vector<8x32xf32>
    tpu.vector_store %arg9[%c88_469, %c32_470], %310 {strides = array<i32>} : memref<128x256xf32, #tpu.memory_space<vmem>>, vector<8x32xf32>,
    %c9_471 = arith.constant 9 : index
    %c0_472 = arith.constant 0 : index
    %c44_473 = arith.constant 44 : index
    %312 = vector.load %arg1[%c9_471, %c0_472, %c44_473] : memref<20x8x80xf32, #tpu.memory_space<vmem>>, vector<1x8x32xf32>
    %313 = vector.shape_cast %312 : vector<1x8x32xf32> to vector<8x32xf32>
    %c88_474 = arith.constant 88 : index
    %c64_475 = arith.constant 64 : index
    %314 = vector.load %arg9[%c88_474, %c64_475] : memref<128x256xf32, #tpu.memory_space<vmem>>, vector<8x32xf32>
    tpu.vector_store %arg9[%c88_474, %c64_475], %313 {strides = array<i32>} : memref<128x256xf32, #tpu.memory_space<vmem>>, vector<8x32xf32>,
    %c10_476 = arith.constant 10 : index
    %c0_477 = arith.constant 0 : index
    %c44_478 = arith.constant 44 : index
    %315 = vector.load %arg1[%c10_476, %c0_477, %c44_478] : memref<20x8x80xf32, #tpu.memory_space<vmem>>, vector<1x8x32xf32>
    %316 = vector.shape_cast %315 : vector<1x8x32xf32> to vector<8x32xf32>
    %c88_479 = arith.constant 88 : index
    %c96_480 = arith.constant 96 : index
    %317 = vector.load %arg9[%c88_479, %c96_480] : memref<128x256xf32, #tpu.memory_space<vmem>>, vector<8x32xf32>
    tpu.vector_store %arg9[%c88_479, %c96_480], %316 {strides = array<i32>} : memref<128x256xf32, #tpu.memory_space<vmem>>, vector<8x32xf32>,
    %c11_481 = arith.constant 11 : index
    %c0_482 = arith.constant 0 : index
    %c44_483 = arith.constant 44 : index
    %318 = vector.load %arg1[%c11_481, %c0_482, %c44_483] : memref<20x8x80xf32, #tpu.memory_space<vmem>>, vector<1x8x32xf32>
    %319 = vector.shape_cast %318 : vector<1x8x32xf32> to vector<8x32xf32>
    %c88_484 = arith.constant 88 : index
    %c128_485 = arith.constant 128 : index
    %320 = vector.load %arg9[%c88_484, %c128_485] : memref<128x256xf32, #tpu.memory_space<vmem>>, vector<8x32xf32>
    tpu.vector_store %arg9[%c88_484, %c128_485], %319 {strides = array<i32>} : memref<128x256xf32, #tpu.memory_space<vmem>>, vector<8x32xf32>,
    %c12_486 = arith.constant 12 : index
    %c0_487 = arith.constant 0 : index
    %c44_488 = arith.constant 44 : index
    %321 = vector.load %arg1[%c12_486, %c0_487, %c44_488] : memref<20x8x80xf32, #tpu.memory_space<vmem>>, vector<1x8x32xf32>
    %322 = vector.shape_cast %321 : vector<1x8x32xf32> to vector<8x32xf32>
    %c88_489 = arith.constant 88 : index
    %c160_490 = arith.constant 160 : index
    %323 = vector.load %arg9[%c88_489, %c160_490] : memref<128x256xf32, #tpu.memory_space<vmem>>, vector<8x32xf32>
    tpu.vector_store %arg9[%c88_489, %c160_490], %322 {strides = array<i32>} : memref<128x256xf32, #tpu.memory_space<vmem>>, vector<8x32xf32>,
    %c13_491 = arith.constant 13 : index
    %c0_492 = arith.constant 0 : index
    %c44_493 = arith.constant 44 : index
    %324 = vector.load %arg1[%c13_491, %c0_492, %c44_493] : memref<20x8x80xf32, #tpu.memory_space<vmem>>, vector<1x8x32xf32>
    %325 = vector.shape_cast %324 : vector<1x8x32xf32> to vector<8x32xf32>
    %c88_494 = arith.constant 88 : index
    %c192_495 = arith.constant 192 : index
    %326 = vector.load %arg9[%c88_494, %c192_495] : memref<128x256xf32, #tpu.memory_space<vmem>>, vector<8x32xf32>
    tpu.vector_store %arg9[%c88_494, %c192_495], %325 {strides = array<i32>} : memref<128x256xf32, #tpu.memory_space<vmem>>, vector<8x32xf32>,
    %c14_496 = arith.constant 14 : index
    %c0_497 = arith.constant 0 : index
    %c44_498 = arith.constant 44 : index
    %327 = vector.load %arg1[%c14_496, %c0_497, %c44_498] : memref<20x8x80xf32, #tpu.memory_space<vmem>>, vector<1x8x32xf32>
    %328 = vector.shape_cast %327 : vector<1x8x32xf32> to vector<8x32xf32>
    %c88_499 = arith.constant 88 : index
    %c224_500 = arith.constant 224 : index
    %329 = vector.load %arg9[%c88_499, %c224_500] : memref<128x256xf32, #tpu.memory_space<vmem>>, vector<8x32xf32>
    tpu.vector_store %arg9[%c88_499, %c224_500], %328 {strides = array<i32>} : memref<128x256xf32, #tpu.memory_space<vmem>>, vector<8x32xf32>,
    %cst_501 = arith.constant 0.000000e+00 : f32
    %330 = vector.broadcast %cst_501 : f32 to vector<8x32xf32>
    %c96_502 = arith.constant 96 : index
    %c0_503 = arith.constant 0 : index
    %331 = vector.load %arg9[%c96_502, %c0_503] : memref<128x256xf32, #tpu.memory_space<vmem>>, vector<8x32xf32>
    tpu.vector_store %arg9[%c96_502, %c0_503], %330 {strides = array<i32>} : memref<128x256xf32, #tpu.memory_space<vmem>>, vector<8x32xf32>,
    %c11_504 = arith.constant 11 : index
    %c0_505 = arith.constant 0 : index
    %c0_506 = arith.constant 0 : index
    %332 = vector.load %arg1[%c11_504, %c0_505, %c0_506] : memref<20x8x80xf32, #tpu.memory_space<vmem>>, vector<1x8x28xf32>
    %333 = vector.shape_cast %332 : vector<1x8x28xf32> to vector<8x28xf32>
    %c96_507 = arith.constant 96 : index
    %c4_508 = arith.constant 4 : index
    %334 = vector.load %arg9[%c96_507, %c4_508] : memref<128x256xf32, #tpu.memory_space<vmem>>, vector<8x28xf32>
    tpu.vector_store %arg9[%c96_507, %c4_508], %333 {strides = array<i32>} : memref<128x256xf32, #tpu.memory_space<vmem>>, vector<8x28xf32>,
    %cst_509 = arith.constant 0.000000e+00 : f32
    %335 = vector.broadcast %cst_509 : f32 to vector<8x32xf32>
    %c96_510 = arith.constant 96 : index
    %c32_511 = arith.constant 32 : index
    %336 = vector.load %arg9[%c96_510, %c32_511] : memref<128x256xf32, #tpu.memory_space<vmem>>, vector<8x32xf32>
    tpu.vector_store %arg9[%c96_510, %c32_511], %335 {strides = array<i32>} : memref<128x256xf32, #tpu.memory_space<vmem>>, vector<8x32xf32>,
    %c12_512 = arith.constant 12 : index
    %c0_513 = arith.constant 0 : index
    %c0_514 = arith.constant 0 : index
    %337 = vector.load %arg1[%c12_512, %c0_513, %c0_514] : memref<20x8x80xf32, #tpu.memory_space<vmem>>, vector<1x8x28xf32>
    %338 = vector.shape_cast %337 : vector<1x8x28xf32> to vector<8x28xf32>
    %c96_515 = arith.constant 96 : index
    %c36_516 = arith.constant 36 : index
    %339 = vector.load %arg9[%c96_515, %c36_516] : memref<128x256xf32, #tpu.memory_space<vmem>>, vector<8x28xf32>
    tpu.vector_store %arg9[%c96_515, %c36_516], %338 {strides = array<i32>} : memref<128x256xf32, #tpu.memory_space<vmem>>, vector<8x28xf32>,
    %cst_517 = arith.constant 0.000000e+00 : f32
    %340 = vector.broadcast %cst_517 : f32 to vector<8x32xf32>
    %c96_518 = arith.constant 96 : index
    %c64_519 = arith.constant 64 : index
    %341 = vector.load %arg9[%c96_518, %c64_519] : memref<128x256xf32, #tpu.memory_space<vmem>>, vector<8x32xf32>
    tpu.vector_store %arg9[%c96_518, %c64_519], %340 {strides = array<i32>} : memref<128x256xf32, #tpu.memory_space<vmem>>, vector<8x32xf32>,
    %c13_520 = arith.constant 13 : index
    %c0_521 = arith.constant 0 : index
    %c0_522 = arith.constant 0 : index
    %342 = vector.load %arg1[%c13_520, %c0_521, %c0_522] : memref<20x8x80xf32, #tpu.memory_space<vmem>>, vector<1x8x28xf32>
    %343 = vector.shape_cast %342 : vector<1x8x28xf32> to vector<8x28xf32>
    %c96_523 = arith.constant 96 : index
    %c68_524 = arith.constant 68 : index
    %344 = vector.load %arg9[%c96_523, %c68_524] : memref<128x256xf32, #tpu.memory_space<vmem>>, vector<8x28xf32>
    tpu.vector_store %arg9[%c96_523, %c68_524], %343 {strides = array<i32>} : memref<128x256xf32, #tpu.memory_space<vmem>>, vector<8x28xf32>,
    %cst_525 = arith.constant 0.000000e+00 : f32
    %345 = vector.broadcast %cst_525 : f32 to vector<8x32xf32>
    %c96_526 = arith.constant 96 : index
    %c96_527 = arith.constant 96 : index
    %346 = vector.load %arg9[%c96_526, %c96_527] : memref<128x256xf32, #tpu.memory_space<vmem>>, vector<8x32xf32>
    tpu.vector_store %arg9[%c96_526, %c96_527], %345 {strides = array<i32>} : memref<128x256xf32, #tpu.memory_space<vmem>>, vector<8x32xf32>,
    %c14_528 = arith.constant 14 : index
    %c0_529 = arith.constant 0 : index
    %c0_530 = arith.constant 0 : index
    %347 = vector.load %arg1[%c14_528, %c0_529, %c0_530] : memref<20x8x80xf32, #tpu.memory_space<vmem>>, vector<1x8x28xf32>
    %348 = vector.shape_cast %347 : vector<1x8x28xf32> to vector<8x28xf32>
    %c96_531 = arith.constant 96 : index
    %c100_532 = arith.constant 100 : index
    %349 = vector.load %arg9[%c96_531, %c100_532] : memref<128x256xf32, #tpu.memory_space<vmem>>, vector<8x28xf32>
    tpu.vector_store %arg9[%c96_531, %c100_532], %348 {strides = array<i32>} : memref<128x256xf32, #tpu.memory_space<vmem>>, vector<8x28xf32>,
    %cst_533 = arith.constant 0.000000e+00 : f32
    %350 = vector.broadcast %cst_533 : f32 to vector<8x32xf32>
    %c96_534 = arith.constant 96 : index
    %c128_535 = arith.constant 128 : index
    %351 = vector.load %arg9[%c96_534, %c128_535] : memref<128x256xf32, #tpu.memory_space<vmem>>, vector<8x32xf32>
    tpu.vector_store %arg9[%c96_534, %c128_535], %350 {strides = array<i32>} : memref<128x256xf32, #tpu.memory_space<vmem>>, vector<8x32xf32>,
    %c15 = arith.constant 15 : index
    %c0_536 = arith.constant 0 : index
    %c0_537 = arith.constant 0 : index
    %352 = vector.load %arg1[%c15, %c0_536, %c0_537] : memref<20x8x80xf32, #tpu.memory_space<vmem>>, vector<1x8x28xf32>
    %353 = vector.shape_cast %352 : vector<1x8x28xf32> to vector<8x28xf32>
    %c96_538 = arith.constant 96 : index
    %c132_539 = arith.constant 132 : index
    %354 = vector.load %arg9[%c96_538, %c132_539] : memref<128x256xf32, #tpu.memory_space<vmem>>, vector<8x28xf32>
    tpu.vector_store %arg9[%c96_538, %c132_539], %353 {strides = array<i32>} : memref<128x256xf32, #tpu.memory_space<vmem>>, vector<8x28xf32>,
    %cst_540 = arith.constant 0.000000e+00 : f32
    %355 = vector.broadcast %cst_540 : f32 to vector<8x32xf32>
    %c96_541 = arith.constant 96 : index
    %c160_542 = arith.constant 160 : index
    %356 = vector.load %arg9[%c96_541, %c160_542] : memref<128x256xf32, #tpu.memory_space<vmem>>, vector<8x32xf32>
    tpu.vector_store %arg9[%c96_541, %c160_542], %355 {strides = array<i32>} : memref<128x256xf32, #tpu.memory_space<vmem>>, vector<8x32xf32>,
    %c16_543 = arith.constant 16 : index
    %c0_544 = arith.constant 0 : index
    %c0_545 = arith.constant 0 : index
    %357 = vector.load %arg1[%c16_543, %c0_544, %c0_545] : memref<20x8x80xf32, #tpu.memory_space<vmem>>, vector<1x8x28xf32>
    %358 = vector.shape_cast %357 : vector<1x8x28xf32> to vector<8x28xf32>
    %c96_546 = arith.constant 96 : index
    %c164_547 = arith.constant 164 : index
    %359 = vector.load %arg9[%c96_546, %c164_547] : memref<128x256xf32, #tpu.memory_space<vmem>>, vector<8x28xf32>
    tpu.vector_store %arg9[%c96_546, %c164_547], %358 {strides = array<i32>} : memref<128x256xf32, #tpu.memory_space<vmem>>, vector<8x28xf32>,
    %cst_548 = arith.constant 0.000000e+00 : f32
    %360 = vector.broadcast %cst_548 : f32 to vector<8x32xf32>
    %c96_549 = arith.constant 96 : index
    %c192_550 = arith.constant 192 : index
    %361 = vector.load %arg9[%c96_549, %c192_550] : memref<128x256xf32, #tpu.memory_space<vmem>>, vector<8x32xf32>
    tpu.vector_store %arg9[%c96_549, %c192_550], %360 {strides = array<i32>} : memref<128x256xf32, #tpu.memory_space<vmem>>, vector<8x32xf32>,
    %c17 = arith.constant 17 : index
    %c0_551 = arith.constant 0 : index
    %c0_552 = arith.constant 0 : index
    %362 = vector.load %arg1[%c17, %c0_551, %c0_552] : memref<20x8x80xf32, #tpu.memory_space<vmem>>, vector<1x8x28xf32>
    %363 = vector.shape_cast %362 : vector<1x8x28xf32> to vector<8x28xf32>
    %c96_553 = arith.constant 96 : index
    %c196_554 = arith.constant 196 : index
    %364 = vector.load %arg9[%c96_553, %c196_554] : memref<128x256xf32, #tpu.memory_space<vmem>>, vector<8x28xf32>
    tpu.vector_store %arg9[%c96_553, %c196_554], %363 {strides = array<i32>} : memref<128x256xf32, #tpu.memory_space<vmem>>, vector<8x28xf32>,
    %cst_555 = arith.constant 0.000000e+00 : f32
    %365 = vector.broadcast %cst_555 : f32 to vector<8x32xf32>
    %c96_556 = arith.constant 96 : index
    %c224_557 = arith.constant 224 : index
    %366 = vector.load %arg9[%c96_556, %c224_557] : memref<128x256xf32, #tpu.memory_space<vmem>>, vector<8x32xf32>
    tpu.vector_store %arg9[%c96_556, %c224_557], %365 {strides = array<i32>} : memref<128x256xf32, #tpu.memory_space<vmem>>, vector<8x32xf32>,
    %c18 = arith.constant 18 : index
    %c0_558 = arith.constant 0 : index
    %c0_559 = arith.constant 0 : index
    %367 = vector.load %arg1[%c18, %c0_558, %c0_559] : memref<20x8x80xf32, #tpu.memory_space<vmem>>, vector<1x8x28xf32>
    %368 = vector.shape_cast %367 : vector<1x8x28xf32> to vector<8x28xf32>
    %c96_560 = arith.constant 96 : index
    %c228_561 = arith.constant 228 : index
    %369 = vector.load %arg9[%c96_560, %c228_561] : memref<128x256xf32, #tpu.memory_space<vmem>>, vector<8x28xf32>
    tpu.vector_store %arg9[%c96_560, %c228_561], %368 {strides = array<i32>} : memref<128x256xf32, #tpu.memory_space<vmem>>, vector<8x28xf32>,
    %c11_562 = arith.constant 11 : index
    %c0_563 = arith.constant 0 : index
    %c12_564 = arith.constant 12 : index
    %370 = vector.load %arg1[%c11_562, %c0_563, %c12_564] : memref<20x8x80xf32, #tpu.memory_space<vmem>>, vector<1x8x32xf32>
    %371 = vector.shape_cast %370 : vector<1x8x32xf32> to vector<8x32xf32>
    %c104 = arith.constant 104 : index
    %c0_565 = arith.constant 0 : index
    %372 = vector.load %arg9[%c104, %c0_565] : memref<128x256xf32, #tpu.memory_space<vmem>>, vector<8x32xf32>
    tpu.vector_store %arg9[%c104, %c0_565], %371 {strides = array<i32>} : memref<128x256xf32, #tpu.memory_space<vmem>>, vector<8x32xf32>,
    %c12_566 = arith.constant 12 : index
    %c0_567 = arith.constant 0 : index
    %c12_568 = arith.constant 12 : index
    %373 = vector.load %arg1[%c12_566, %c0_567, %c12_568] : memref<20x8x80xf32, #tpu.memory_space<vmem>>, vector<1x8x32xf32>
    %374 = vector.shape_cast %373 : vector<1x8x32xf32> to vector<8x32xf32>
    %c104_569 = arith.constant 104 : index
    %c32_570 = arith.constant 32 : index
    %375 = vector.load %arg9[%c104_569, %c32_570] : memref<128x256xf32, #tpu.memory_space<vmem>>, vector<8x32xf32>
    tpu.vector_store %arg9[%c104_569, %c32_570], %374 {strides = array<i32>} : memref<128x256xf32, #tpu.memory_space<vmem>>, vector<8x32xf32>,
    %c13_571 = arith.constant 13 : index
    %c0_572 = arith.constant 0 : index
    %c12_573 = arith.constant 12 : index
    %376 = vector.load %arg1[%c13_571, %c0_572, %c12_573] : memref<20x8x80xf32, #tpu.memory_space<vmem>>, vector<1x8x32xf32>
    %377 = vector.shape_cast %376 : vector<1x8x32xf32> to vector<8x32xf32>
    %c104_574 = arith.constant 104 : index
    %c64_575 = arith.constant 64 : index
    %378 = vector.load %arg9[%c104_574, %c64_575] : memref<128x256xf32, #tpu.memory_space<vmem>>, vector<8x32xf32>
    tpu.vector_store %arg9[%c104_574, %c64_575], %377 {strides = array<i32>} : memref<128x256xf32, #tpu.memory_space<vmem>>, vector<8x32xf32>,
    %c14_576 = arith.constant 14 : index
    %c0_577 = arith.constant 0 : index
    %c12_578 = arith.constant 12 : index
    %379 = vector.load %arg1[%c14_576, %c0_577, %c12_578] : memref<20x8x80xf32, #tpu.memory_space<vmem>>, vector<1x8x32xf32>
    %380 = vector.shape_cast %379 : vector<1x8x32xf32> to vector<8x32xf32>
    %c104_579 = arith.constant 104 : index
    %c96_580 = arith.constant 96 : index
    %381 = vector.load %arg9[%c104_579, %c96_580] : memref<128x256xf32, #tpu.memory_space<vmem>>, vector<8x32xf32>
    tpu.vector_store %arg9[%c104_579, %c96_580], %380 {strides = array<i32>} : memref<128x256xf32, #tpu.memory_space<vmem>>, vector<8x32xf32>,
    %c15_581 = arith.constant 15 : index
    %c0_582 = arith.constant 0 : index
    %c12_583 = arith.constant 12 : index
    %382 = vector.load %arg1[%c15_581, %c0_582, %c12_583] : memref<20x8x80xf32, #tpu.memory_space<vmem>>, vector<1x8x32xf32>
    %383 = vector.shape_cast %382 : vector<1x8x32xf32> to vector<8x32xf32>
    %c104_584 = arith.constant 104 : index
    %c128_585 = arith.constant 128 : index
    %384 = vector.load %arg9[%c104_584, %c128_585] : memref<128x256xf32, #tpu.memory_space<vmem>>, vector<8x32xf32>
    tpu.vector_store %arg9[%c104_584, %c128_585], %383 {strides = array<i32>} : memref<128x256xf32, #tpu.memory_space<vmem>>, vector<8x32xf32>,
    %c16_586 = arith.constant 16 : index
    %c0_587 = arith.constant 0 : index
    %c12_588 = arith.constant 12 : index
    %385 = vector.load %arg1[%c16_586, %c0_587, %c12_588] : memref<20x8x80xf32, #tpu.memory_space<vmem>>, vector<1x8x32xf32>
    %386 = vector.shape_cast %385 : vector<1x8x32xf32> to vector<8x32xf32>
    %c104_589 = arith.constant 104 : index
    %c160_590 = arith.constant 160 : index
    %387 = vector.load %arg9[%c104_589, %c160_590] : memref<128x256xf32, #tpu.memory_space<vmem>>, vector<8x32xf32>
    tpu.vector_store %arg9[%c104_589, %c160_590], %386 {strides = array<i32>} : memref<128x256xf32, #tpu.memory_space<vmem>>, vector<8x32xf32>,
    %c17_591 = arith.constant 17 : index
    %c0_592 = arith.constant 0 : index
    %c12_593 = arith.constant 12 : index
    %388 = vector.load %arg1[%c17_591, %c0_592, %c12_593] : memref<20x8x80xf32, #tpu.memory_space<vmem>>, vector<1x8x32xf32>
    %389 = vector.shape_cast %388 : vector<1x8x32xf32> to vector<8x32xf32>
    %c104_594 = arith.constant 104 : index
    %c192_595 = arith.constant 192 : index
    %390 = vector.load %arg9[%c104_594, %c192_595] : memref<128x256xf32, #tpu.memory_space<vmem>>, vector<8x32xf32>
    tpu.vector_store %arg9[%c104_594, %c192_595], %389 {strides = array<i32>} : memref<128x256xf32, #tpu.memory_space<vmem>>, vector<8x32xf32>,
    %c18_596 = arith.constant 18 : index
    %c0_597 = arith.constant 0 : index
    %c12_598 = arith.constant 12 : index
    %391 = vector.load %arg1[%c18_596, %c0_597, %c12_598] : memref<20x8x80xf32, #tpu.memory_space<vmem>>, vector<1x8x32xf32>
    %392 = vector.shape_cast %391 : vector<1x8x32xf32> to vector<8x32xf32>
    %c104_599 = arith.constant 104 : index
    %c224_600 = arith.constant 224 : index
    %393 = vector.load %arg9[%c104_599, %c224_600] : memref<128x256xf32, #tpu.memory_space<vmem>>, vector<8x32xf32>
    tpu.vector_store %arg9[%c104_599, %c224_600], %392 {strides = array<i32>} : memref<128x256xf32, #tpu.memory_space<vmem>>, vector<8x32xf32>,
    %c11_601 = arith.constant 11 : index
    %c0_602 = arith.constant 0 : index
    %c28_603 = arith.constant 28 : index
    %394 = vector.load %arg1[%c11_601, %c0_602, %c28_603] : memref<20x8x80xf32, #tpu.memory_space<vmem>>, vector<1x8x32xf32>
    %395 = vector.shape_cast %394 : vector<1x8x32xf32> to vector<8x32xf32>
    %c112 = arith.constant 112 : index
    %c0_604 = arith.constant 0 : index
    %396 = vector.load %arg9[%c112, %c0_604] : memref<128x256xf32, #tpu.memory_space<vmem>>, vector<8x32xf32>
    tpu.vector_store %arg9[%c112, %c0_604], %395 {strides = array<i32>} : memref<128x256xf32, #tpu.memory_space<vmem>>, vector<8x32xf32>,
    %c12_605 = arith.constant 12 : index
    %c0_606 = arith.constant 0 : index
    %c28_607 = arith.constant 28 : index
    %397 = vector.load %arg1[%c12_605, %c0_606, %c28_607] : memref<20x8x80xf32, #tpu.memory_space<vmem>>, vector<1x8x32xf32>
    %398 = vector.shape_cast %397 : vector<1x8x32xf32> to vector<8x32xf32>
    %c112_608 = arith.constant 112 : index
    %c32_609 = arith.constant 32 : index
    %399 = vector.load %arg9[%c112_608, %c32_609] : memref<128x256xf32, #tpu.memory_space<vmem>>, vector<8x32xf32>
    tpu.vector_store %arg9[%c112_608, %c32_609], %398 {strides = array<i32>} : memref<128x256xf32, #tpu.memory_space<vmem>>, vector<8x32xf32>,
    %c13_610 = arith.constant 13 : index
    %c0_611 = arith.constant 0 : index
    %c28_612 = arith.constant 28 : index
    %400 = vector.load %arg1[%c13_610, %c0_611, %c28_612] : memref<20x8x80xf32, #tpu.memory_space<vmem>>, vector<1x8x32xf32>
    %401 = vector.shape_cast %400 : vector<1x8x32xf32> to vector<8x32xf32>
    %c112_613 = arith.constant 112 : index
    %c64_614 = arith.constant 64 : index
    %402 = vector.load %arg9[%c112_613, %c64_614] : memref<128x256xf32, #tpu.memory_space<vmem>>, vector<8x32xf32>
    tpu.vector_store %arg9[%c112_613, %c64_614], %401 {strides = array<i32>} : memref<128x256xf32, #tpu.memory_space<vmem>>, vector<8x32xf32>,
    %c14_615 = arith.constant 14 : index
    %c0_616 = arith.constant 0 : index
    %c28_617 = arith.constant 28 : index
    %403 = vector.load %arg1[%c14_615, %c0_616, %c28_617] : memref<20x8x80xf32, #tpu.memory_space<vmem>>, vector<1x8x32xf32>
    %404 = vector.shape_cast %403 : vector<1x8x32xf32> to vector<8x32xf32>
    %c112_618 = arith.constant 112 : index
    %c96_619 = arith.constant 96 : index
    %405 = vector.load %arg9[%c112_618, %c96_619] : memref<128x256xf32, #tpu.memory_space<vmem>>, vector<8x32xf32>
    tpu.vector_store %arg9[%c112_618, %c96_619], %404 {strides = array<i32>} : memref<128x256xf32, #tpu.memory_space<vmem>>, vector<8x32xf32>,
    %c15_620 = arith.constant 15 : index
    %c0_621 = arith.constant 0 : index
    %c28_622 = arith.constant 28 : index
    %406 = vector.load %arg1[%c15_620, %c0_621, %c28_622] : memref<20x8x80xf32, #tpu.memory_space<vmem>>, vector<1x8x32xf32>
    %407 = vector.shape_cast %406 : vector<1x8x32xf32> to vector<8x32xf32>
    %c112_623 = arith.constant 112 : index
    %c128_624 = arith.constant 128 : index
    %408 = vector.load %arg9[%c112_623, %c128_624] : memref<128x256xf32, #tpu.memory_space<vmem>>, vector<8x32xf32>
    tpu.vector_store %arg9[%c112_623, %c128_624], %407 {strides = array<i32>} : memref<128x256xf32, #tpu.memory_space<vmem>>, vector<8x32xf32>,
    %c16_625 = arith.constant 16 : index
    %c0_626 = arith.constant 0 : index
    %c28_627 = arith.constant 28 : index
    %409 = vector.load %arg1[%c16_625, %c0_626, %c28_627] : memref<20x8x80xf32, #tpu.memory_space<vmem>>, vector<1x8x32xf32>
    %410 = vector.shape_cast %409 : vector<1x8x32xf32> to vector<8x32xf32>
    %c112_628 = arith.constant 112 : index
    %c160_629 = arith.constant 160 : index
    %411 = vector.load %arg9[%c112_628, %c160_629] : memref<128x256xf32, #tpu.memory_space<vmem>>, vector<8x32xf32>
    tpu.vector_store %arg9[%c112_628, %c160_629], %410 {strides = array<i32>} : memref<128x256xf32, #tpu.memory_space<vmem>>, vector<8x32xf32>,
    %c17_630 = arith.constant 17 : index
    %c0_631 = arith.constant 0 : index
    %c28_632 = arith.constant 28 : index
    %412 = vector.load %arg1[%c17_630, %c0_631, %c28_632] : memref<20x8x80xf32, #tpu.memory_space<vmem>>, vector<1x8x32xf32>
    %413 = vector.shape_cast %412 : vector<1x8x32xf32> to vector<8x32xf32>
    %c112_633 = arith.constant 112 : index
    %c192_634 = arith.constant 192 : index
    %414 = vector.load %arg9[%c112_633, %c192_634] : memref<128x256xf32, #tpu.memory_space<vmem>>, vector<8x32xf32>
    tpu.vector_store %arg9[%c112_633, %c192_634], %413 {strides = array<i32>} : memref<128x256xf32, #tpu.memory_space<vmem>>, vector<8x32xf32>,
    %c18_635 = arith.constant 18 : index
    %c0_636 = arith.constant 0 : index
    %c28_637 = arith.constant 28 : index
    %415 = vector.load %arg1[%c18_635, %c0_636, %c28_637] : memref<20x8x80xf32, #tpu.memory_space<vmem>>, vector<1x8x32xf32>
    %416 = vector.shape_cast %415 : vector<1x8x32xf32> to vector<8x32xf32>
    %c112_638 = arith.constant 112 : index
    %c224_639 = arith.constant 224 : index
    %417 = vector.load %arg9[%c112_638, %c224_639] : memref<128x256xf32, #tpu.memory_space<vmem>>, vector<8x32xf32>
    tpu.vector_store %arg9[%c112_638, %c224_639], %416 {strides = array<i32>} : memref<128x256xf32, #tpu.memory_space<vmem>>, vector<8x32xf32>,
    %c11_640 = arith.constant 11 : index
    %c0_641 = arith.constant 0 : index
    %c44_642 = arith.constant 44 : index
    %418 = vector.load %arg1[%c11_640, %c0_641, %c44_642] : memref<20x8x80xf32, #tpu.memory_space<vmem>>, vector<1x8x32xf32>
    %419 = vector.shape_cast %418 : vector<1x8x32xf32> to vector<8x32xf32>
    %c120 = arith.constant 120 : index
    %c0_643 = arith.constant 0 : index
    %420 = vector.load %arg9[%c120, %c0_643] : memref<128x256xf32, #tpu.memory_space<vmem>>, vector<8x32xf32>
    tpu.vector_store %arg9[%c120, %c0_643], %419 {strides = array<i32>} : memref<128x256xf32, #tpu.memory_space<vmem>>, vector<8x32xf32>,
    %c12_644 = arith.constant 12 : index
    %c0_645 = arith.constant 0 : index
    %c44_646 = arith.constant 44 : index
    %421 = vector.load %arg1[%c12_644, %c0_645, %c44_646] : memref<20x8x80xf32, #tpu.memory_space<vmem>>, vector<1x8x32xf32>
    %422 = vector.shape_cast %421 : vector<1x8x32xf32> to vector<8x32xf32>
    %c120_647 = arith.constant 120 : index
    %c32_648 = arith.constant 32 : index
    %423 = vector.load %arg9[%c120_647, %c32_648] : memref<128x256xf32, #tpu.memory_space<vmem>>, vector<8x32xf32>
    tpu.vector_store %arg9[%c120_647, %c32_648], %422 {strides = array<i32>} : memref<128x256xf32, #tpu.memory_space<vmem>>, vector<8x32xf32>,
    %c13_649 = arith.constant 13 : index
    %c0_650 = arith.constant 0 : index
    %c44_651 = arith.constant 44 : index
    %424 = vector.load %arg1[%c13_649, %c0_650, %c44_651] : memref<20x8x80xf32, #tpu.memory_space<vmem>>, vector<1x8x32xf32>
    %425 = vector.shape_cast %424 : vector<1x8x32xf32> to vector<8x32xf32>
    %c120_652 = arith.constant 120 : index
    %c64_653 = arith.constant 64 : index
    %426 = vector.load %arg9[%c120_652, %c64_653] : memref<128x256xf32, #tpu.memory_space<vmem>>, vector<8x32xf32>
    tpu.vector_store %arg9[%c120_652, %c64_653], %425 {strides = array<i32>} : memref<128x256xf32, #tpu.memory_space<vmem>>, vector<8x32xf32>,
    %c14_654 = arith.constant 14 : index
    %c0_655 = arith.constant 0 : index
    %c44_656 = arith.constant 44 : index
    %427 = vector.load %arg1[%c14_654, %c0_655, %c44_656] : memref<20x8x80xf32, #tpu.memory_space<vmem>>, vector<1x8x32xf32>
    %428 = vector.shape_cast %427 : vector<1x8x32xf32> to vector<8x32xf32>
    %c120_657 = arith.constant 120 : index
    %c96_658 = arith.constant 96 : index
    %429 = vector.load %arg9[%c120_657, %c96_658] : memref<128x256xf32, #tpu.memory_space<vmem>>, vector<8x32xf32>
    tpu.vector_store %arg9[%c120_657, %c96_658], %428 {strides = array<i32>} : memref<128x256xf32, #tpu.memory_space<vmem>>, vector<8x32xf32>,
    %c15_659 = arith.constant 15 : index
    %c0_660 = arith.constant 0 : index
    %c44_661 = arith.constant 44 : index
    %430 = vector.load %arg1[%c15_659, %c0_660, %c44_661] : memref<20x8x80xf32, #tpu.memory_space<vmem>>, vector<1x8x32xf32>
    %431 = vector.shape_cast %430 : vector<1x8x32xf32> to vector<8x32xf32>
    %c120_662 = arith.constant 120 : index
    %c128_663 = arith.constant 128 : index
    %432 = vector.load %arg9[%c120_662, %c128_663] : memref<128x256xf32, #tpu.memory_space<vmem>>, vector<8x32xf32>
    tpu.vector_store %arg9[%c120_662, %c128_663], %431 {strides = array<i32>} : memref<128x256xf32, #tpu.memory_space<vmem>>, vector<8x32xf32>,
    %c16_664 = arith.constant 16 : index
    %c0_665 = arith.constant 0 : index
    %c44_666 = arith.constant 44 : index
    %433 = vector.load %arg1[%c16_664, %c0_665, %c44_666] : memref<20x8x80xf32, #tpu.memory_space<vmem>>, vector<1x8x32xf32>
    %434 = vector.shape_cast %433 : vector<1x8x32xf32> to vector<8x32xf32>
    %c120_667 = arith.constant 120 : index
    %c160_668 = arith.constant 160 : index
    %435 = vector.load %arg9[%c120_667, %c160_668] : memref<128x256xf32, #tpu.memory_space<vmem>>, vector<8x32xf32>
    tpu.vector_store %arg9[%c120_667, %c160_668], %434 {strides = array<i32>} : memref<128x256xf32, #tpu.memory_space<vmem>>, vector<8x32xf32>,
    %c17_669 = arith.constant 17 : index
    %c0_670 = arith.constant 0 : index
    %c44_671 = arith.constant 44 : index
    %436 = vector.load %arg1[%c17_669, %c0_670, %c44_671] : memref<20x8x80xf32, #tpu.memory_space<vmem>>, vector<1x8x32xf32>
    %437 = vector.shape_cast %436 : vector<1x8x32xf32> to vector<8x32xf32>
    %c120_672 = arith.constant 120 : index
    %c192_673 = arith.constant 192 : index
    %438 = vector.load %arg9[%c120_672, %c192_673] : memref<128x256xf32, #tpu.memory_space<vmem>>, vector<8x32xf32>
    tpu.vector_store %arg9[%c120_672, %c192_673], %437 {strides = array<i32>} : memref<128x256xf32, #tpu.memory_space<vmem>>, vector<8x32xf32>,
    %c18_674 = arith.constant 18 : index
    %c0_675 = arith.constant 0 : index
    %c44_676 = arith.constant 44 : index
    %439 = vector.load %arg1[%c18_674, %c0_675, %c44_676] : memref<20x8x80xf32, #tpu.memory_space<vmem>>, vector<1x8x32xf32>
    %440 = vector.shape_cast %439 : vector<1x8x32xf32> to vector<8x32xf32>
    %c120_677 = arith.constant 120 : index
    %c224_678 = arith.constant 224 : index
    %441 = vector.load %arg9[%c120_677, %c224_678] : memref<128x256xf32, #tpu.memory_space<vmem>>, vector<8x32xf32>
    tpu.vector_store %arg9[%c120_677, %c224_678], %440 {strides = array<i32>} : memref<128x256xf32, #tpu.memory_space<vmem>>, vector<8x32xf32>,
    %c0_679 = arith.constant 0 : index
    %c0_680 = arith.constant 0 : index
    %442 = vector.load %arg9[%c0_679, %c0_680] : memref<128x256xf32, #tpu.memory_space<vmem>>, vector<128x256xf32>
    %c0_681 = arith.constant 0 : index
    %c0_682 = arith.constant 0 : index
    %443 = vector.load %arg2[%c0_681, %c0_682] : memref<256x32xf32, #tpu.memory_space<vmem>>, vector<256x32xf32>
    %cst_683 = arith.constant dense<0.000000e+00> : vector<128x32xf32>
    %444 = tpu.matmul %442, %443, %cst_683 {dimension_numbers = #tpu.dot_dimension_numbers<[1], [0], [0], [1], [0, 0, 1, 1], [], []>} : vector<128x256xf32>, vector<256x32xf32>, vector<128x32xf32> -> vector<128x32xf32>
    %c0_684 = arith.constant 0 : index
    %c0_685 = arith.constant 0 : index
    %445 = vector.load %arg3[%c0_684, %c0_685] : memref<1x32xf32, #tpu.memory_space<vmem>>, vector<1x32xf32>
    %446 = vector.broadcast %445 : vector<1x32xf32> to vector<128x32xf32>
    %447 = arith.addf %444, %446 : vector<128x32xf32>
    %cst_686 = arith.constant 0.000000e+00 : f32
    %448 = vector.broadcast %cst_686 : f32 to vector<128x32xf32>
    %449 = arith.maximumf %447, %448 : vector<128x32xf32>
    %c0_687 = arith.constant 0 : index
    %c0_688 = arith.constant 0 : index
    %450 = vector.load %arg10[%c0_687, %c0_688] : memref<128x32xf32, #tpu.memory_space<vmem>>, vector<128x32xf32>
    tpu.vector_store %arg10[%c0_687, %c0_688], %449 {strides = array<i32>} : memref<128x32xf32, #tpu.memory_space<vmem>>, vector<128x32xf32>,
    %cst_689 = arith.constant 0.000000e+00 : f32
    %451 = vector.broadcast %cst_689 : f32 to vector<8x32xf32>
    %c0_690 = arith.constant 0 : index
    %c0_691 = arith.constant 0 : index
    %452 = vector.load %arg11[%c0_690, %c0_691] : memref<32x512xf32, #tpu.memory_space<vmem>>, vector<8x32xf32>
    tpu.vector_store %arg11[%c0_690, %c0_691], %451 {strides = array<i32>} : memref<32x512xf32, #tpu.memory_space<vmem>>, vector<8x32xf32>,
    %cst_692 = arith.constant 0.000000e+00 : f32
    %453 = vector.broadcast %cst_692 : f32 to vector<8x32xf32>
    %c0_693 = arith.constant 0 : index
    %c32_694 = arith.constant 32 : index
    %454 = vector.load %arg11[%c0_693, %c32_694] : memref<32x512xf32, #tpu.memory_space<vmem>>, vector<8x32xf32>
    tpu.vector_store %arg11[%c0_693, %c32_694], %453 {strides = array<i32>} : memref<32x512xf32, #tpu.memory_space<vmem>>, vector<8x32xf32>,
    %cst_695 = arith.constant 0.000000e+00 : f32
    %455 = vector.broadcast %cst_695 : f32 to vector<8x32xf32>
    %c0_696 = arith.constant 0 : index
    %c64_697 = arith.constant 64 : index
    %456 = vector.load %arg11[%c0_696, %c64_697] : memref<32x512xf32, #tpu.memory_space<vmem>>, vector<8x32xf32>
    tpu.vector_store %arg11[%c0_696, %c64_697], %455 {strides = array<i32>} : memref<32x512xf32, #tpu.memory_space<vmem>>, vector<8x32xf32>,
    %cst_698 = arith.constant 0.000000e+00 : f32
    %457 = vector.broadcast %cst_698 : f32 to vector<8x32xf32>
    %c0_699 = arith.constant 0 : index
    %c96_700 = arith.constant 96 : index
    %458 = vector.load %arg11[%c0_699, %c96_700] : memref<32x512xf32, #tpu.memory_space<vmem>>, vector<8x32xf32>
    tpu.vector_store %arg11[%c0_699, %c96_700], %457 {strides = array<i32>} : memref<32x512xf32, #tpu.memory_space<vmem>>, vector<8x32xf32>,
    %cst_701 = arith.constant 0.000000e+00 : f32
    %459 = vector.broadcast %cst_701 : f32 to vector<8x32xf32>
    %c0_702 = arith.constant 0 : index
    %c128_703 = arith.constant 128 : index
    %460 = vector.load %arg11[%c0_702, %c128_703] : memref<32x512xf32, #tpu.memory_space<vmem>>, vector<8x32xf32>
    tpu.vector_store %arg11[%c0_702, %c128_703], %459 {strides = array<i32>} : memref<32x512xf32, #tpu.memory_space<vmem>>, vector<8x32xf32>,
    %c0_704 = arith.constant 0 : index
    %c0_705 = arith.constant 0 : index
    %461 = vector.load %arg10[%c0_704, %c0_705] : memref<128x32xf32, #tpu.memory_space<vmem>>, vector<8x32xf32>
    %c0_706 = arith.constant 0 : index
    %c160_707 = arith.constant 160 : index
    %462 = vector.load %arg11[%c0_706, %c160_707] : memref<32x512xf32, #tpu.memory_space<vmem>>, vector<8x32xf32>
    tpu.vector_store %arg11[%c0_706, %c160_707], %461 {strides = array<i32>} : memref<32x512xf32, #tpu.memory_space<vmem>>, vector<8x32xf32>,
    %c8_708 = arith.constant 8 : index
    %c0_709 = arith.constant 0 : index
    %463 = vector.load %arg10[%c8_708, %c0_709] : memref<128x32xf32, #tpu.memory_space<vmem>>, vector<8x32xf32>
    %c0_710 = arith.constant 0 : index
    %c192_711 = arith.constant 192 : index
    %464 = vector.load %arg11[%c0_710, %c192_711] : memref<32x512xf32, #tpu.memory_space<vmem>>, vector<8x32xf32>
    tpu.vector_store %arg11[%c0_710, %c192_711], %463 {strides = array<i32>} : memref<32x512xf32, #tpu.memory_space<vmem>>, vector<8x32xf32>,
    %c16_712 = arith.constant 16 : index
    %c0_713 = arith.constant 0 : index
    %465 = vector.load %arg10[%c16_712, %c0_713] : memref<128x32xf32, #tpu.memory_space<vmem>>, vector<8x32xf32>
    %c0_714 = arith.constant 0 : index
    %c224_715 = arith.constant 224 : index
    %466 = vector.load %arg11[%c0_714, %c224_715] : memref<32x512xf32, #tpu.memory_space<vmem>>, vector<8x32xf32>
    tpu.vector_store %arg11[%c0_714, %c224_715], %465 {strides = array<i32>} : memref<32x512xf32, #tpu.memory_space<vmem>>, vector<8x32xf32>,
    %cst_716 = arith.constant 0.000000e+00 : f32
    %467 = vector.broadcast %cst_716 : f32 to vector<8x32xf32>
    %c0_717 = arith.constant 0 : index
    %c256 = arith.constant 256 : index
    %468 = vector.load %arg11[%c0_717, %c256] : memref<32x512xf32, #tpu.memory_space<vmem>>, vector<8x32xf32>
    tpu.vector_store %arg11[%c0_717, %c256], %467 {strides = array<i32>} : memref<32x512xf32, #tpu.memory_space<vmem>>, vector<8x32xf32>,
    %c32_718 = arith.constant 32 : index
    %c0_719 = arith.constant 0 : index
    %469 = vector.load %arg10[%c32_718, %c0_719] : memref<128x32xf32, #tpu.memory_space<vmem>>, vector<8x32xf32>
    %c0_720 = arith.constant 0 : index
    %c288 = arith.constant 288 : index
    %470 = vector.load %arg11[%c0_720, %c288] : memref<32x512xf32, #tpu.memory_space<vmem>>, vector<8x32xf32>
    tpu.vector_store %arg11[%c0_720, %c288], %469 {strides = array<i32>} : memref<32x512xf32, #tpu.memory_space<vmem>>, vector<8x32xf32>,
    %c40_721 = arith.constant 40 : index
    %c0_722 = arith.constant 0 : index
    %471 = vector.load %arg10[%c40_721, %c0_722] : memref<128x32xf32, #tpu.memory_space<vmem>>, vector<8x32xf32>
    %c0_723 = arith.constant 0 : index
    %c320 = arith.constant 320 : index
    %472 = vector.load %arg11[%c0_723, %c320] : memref<32x512xf32, #tpu.memory_space<vmem>>, vector<8x32xf32>
    tpu.vector_store %arg11[%c0_723, %c320], %471 {strides = array<i32>} : memref<32x512xf32, #tpu.memory_space<vmem>>, vector<8x32xf32>,
    %c48_724 = arith.constant 48 : index
    %c0_725 = arith.constant 0 : index
    %473 = vector.load %arg10[%c48_724, %c0_725] : memref<128x32xf32, #tpu.memory_space<vmem>>, vector<8x32xf32>
    %c0_726 = arith.constant 0 : index
    %c352 = arith.constant 352 : index
    %474 = vector.load %arg11[%c0_726, %c352] : memref<32x512xf32, #tpu.memory_space<vmem>>, vector<8x32xf32>
    tpu.vector_store %arg11[%c0_726, %c352], %473 {strides = array<i32>} : memref<32x512xf32, #tpu.memory_space<vmem>>, vector<8x32xf32>,
    %cst_727 = arith.constant 0.000000e+00 : f32
    %475 = vector.broadcast %cst_727 : f32 to vector<8x32xf32>
    %c0_728 = arith.constant 0 : index
    %c384 = arith.constant 384 : index
    %476 = vector.load %arg11[%c0_728, %c384] : memref<32x512xf32, #tpu.memory_space<vmem>>, vector<8x32xf32>
    tpu.vector_store %arg11[%c0_728, %c384], %475 {strides = array<i32>} : memref<32x512xf32, #tpu.memory_space<vmem>>, vector<8x32xf32>,
    %c64_729 = arith.constant 64 : index
    %c0_730 = arith.constant 0 : index
    %477 = vector.load %arg10[%c64_729, %c0_730] : memref<128x32xf32, #tpu.memory_space<vmem>>, vector<8x32xf32>
    %c0_731 = arith.constant 0 : index
    %c416 = arith.constant 416 : index
    %478 = vector.load %arg11[%c0_731, %c416] : memref<32x512xf32, #tpu.memory_space<vmem>>, vector<8x32xf32>
    tpu.vector_store %arg11[%c0_731, %c416], %477 {strides = array<i32>} : memref<32x512xf32, #tpu.memory_space<vmem>>, vector<8x32xf32>,
    %c72_732 = arith.constant 72 : index
    %c0_733 = arith.constant 0 : index
    %479 = vector.load %arg10[%c72_732, %c0_733] : memref<128x32xf32, #tpu.memory_space<vmem>>, vector<8x32xf32>
    %c0_734 = arith.constant 0 : index
    %c448 = arith.constant 448 : index
    %480 = vector.load %arg11[%c0_734, %c448] : memref<32x512xf32, #tpu.memory_space<vmem>>, vector<8x32xf32>
    tpu.vector_store %arg11[%c0_734, %c448], %479 {strides = array<i32>} : memref<32x512xf32, #tpu.memory_space<vmem>>, vector<8x32xf32>,
    %c80_735 = arith.constant 80 : index
    %c0_736 = arith.constant 0 : index
    %481 = vector.load %arg10[%c80_735, %c0_736] : memref<128x32xf32, #tpu.memory_space<vmem>>, vector<8x32xf32>
    %c0_737 = arith.constant 0 : index
    %c480 = arith.constant 480 : index
    %482 = vector.load %arg11[%c0_737, %c480] : memref<32x512xf32, #tpu.memory_space<vmem>>, vector<8x32xf32>
    tpu.vector_store %arg11[%c0_737, %c480], %481 {strides = array<i32>} : memref<32x512xf32, #tpu.memory_space<vmem>>, vector<8x32xf32>,
    %cst_738 = arith.constant 0.000000e+00 : f32
    %483 = vector.broadcast %cst_738 : f32 to vector<8x32xf32>
    %c8_739 = arith.constant 8 : index
    %c0_740 = arith.constant 0 : index
    %484 = vector.load %arg11[%c8_739, %c0_740] : memref<32x512xf32, #tpu.memory_space<vmem>>, vector<8x32xf32>
    tpu.vector_store %arg11[%c8_739, %c0_740], %483 {strides = array<i32>} : memref<32x512xf32, #tpu.memory_space<vmem>>, vector<8x32xf32>,
    %cst_741 = arith.constant 0.000000e+00 : f32
    %485 = vector.broadcast %cst_741 : f32 to vector<8x32xf32>
    %c8_742 = arith.constant 8 : index
    %c32_743 = arith.constant 32 : index
    %486 = vector.load %arg11[%c8_742, %c32_743] : memref<32x512xf32, #tpu.memory_space<vmem>>, vector<8x32xf32>
    tpu.vector_store %arg11[%c8_742, %c32_743], %485 {strides = array<i32>} : memref<32x512xf32, #tpu.memory_space<vmem>>, vector<8x32xf32>,
    %cst_744 = arith.constant 0.000000e+00 : f32
    %487 = vector.broadcast %cst_744 : f32 to vector<8x32xf32>
    %c8_745 = arith.constant 8 : index
    %c64_746 = arith.constant 64 : index
    %488 = vector.load %arg11[%c8_745, %c64_746] : memref<32x512xf32, #tpu.memory_space<vmem>>, vector<8x32xf32>
    tpu.vector_store %arg11[%c8_745, %c64_746], %487 {strides = array<i32>} : memref<32x512xf32, #tpu.memory_space<vmem>>, vector<8x32xf32>,
    %cst_747 = arith.constant 0.000000e+00 : f32
    %489 = vector.broadcast %cst_747 : f32 to vector<8x32xf32>
    %c8_748 = arith.constant 8 : index
    %c96_749 = arith.constant 96 : index
    %490 = vector.load %arg11[%c8_748, %c96_749] : memref<32x512xf32, #tpu.memory_space<vmem>>, vector<8x32xf32>
    tpu.vector_store %arg11[%c8_748, %c96_749], %489 {strides = array<i32>} : memref<32x512xf32, #tpu.memory_space<vmem>>, vector<8x32xf32>,
    %c8_750 = arith.constant 8 : index
    %c0_751 = arith.constant 0 : index
    %491 = vector.load %arg10[%c8_750, %c0_751] : memref<128x32xf32, #tpu.memory_space<vmem>>, vector<8x32xf32>
    %c8_752 = arith.constant 8 : index
    %c128_753 = arith.constant 128 : index
    %492 = vector.load %arg11[%c8_752, %c128_753] : memref<32x512xf32, #tpu.memory_space<vmem>>, vector<8x32xf32>
    tpu.vector_store %arg11[%c8_752, %c128_753], %491 {strides = array<i32>} : memref<32x512xf32, #tpu.memory_space<vmem>>, vector<8x32xf32>,
    %c16_754 = arith.constant 16 : index
    %c0_755 = arith.constant 0 : index
    %493 = vector.load %arg10[%c16_754, %c0_755] : memref<128x32xf32, #tpu.memory_space<vmem>>, vector<8x32xf32>
    %c8_756 = arith.constant 8 : index
    %c160_757 = arith.constant 160 : index
    %494 = vector.load %arg11[%c8_756, %c160_757] : memref<32x512xf32, #tpu.memory_space<vmem>>, vector<8x32xf32>
    tpu.vector_store %arg11[%c8_756, %c160_757], %493 {strides = array<i32>} : memref<32x512xf32, #tpu.memory_space<vmem>>, vector<8x32xf32>,
    %c24_758 = arith.constant 24 : index
    %c0_759 = arith.constant 0 : index
    %495 = vector.load %arg10[%c24_758, %c0_759] : memref<128x32xf32, #tpu.memory_space<vmem>>, vector<8x32xf32>
    %c8_760 = arith.constant 8 : index
    %c192_761 = arith.constant 192 : index
    %496 = vector.load %arg11[%c8_760, %c192_761] : memref<32x512xf32, #tpu.memory_space<vmem>>, vector<8x32xf32>
    tpu.vector_store %arg11[%c8_760, %c192_761], %495 {strides = array<i32>} : memref<32x512xf32, #tpu.memory_space<vmem>>, vector<8x32xf32>,
    %cst_762 = arith.constant 0.000000e+00 : f32
    %497 = vector.broadcast %cst_762 : f32 to vector<8x32xf32>
    %c8_763 = arith.constant 8 : index
    %c224_764 = arith.constant 224 : index
    %498 = vector.load %arg11[%c8_763, %c224_764] : memref<32x512xf32, #tpu.memory_space<vmem>>, vector<8x32xf32>
    tpu.vector_store %arg11[%c8_763, %c224_764], %497 {strides = array<i32>} : memref<32x512xf32, #tpu.memory_space<vmem>>, vector<8x32xf32>,
    %c40_765 = arith.constant 40 : index
    %c0_766 = arith.constant 0 : index
    %499 = vector.load %arg10[%c40_765, %c0_766] : memref<128x32xf32, #tpu.memory_space<vmem>>, vector<8x32xf32>
    %c8_767 = arith.constant 8 : index
    %c256_768 = arith.constant 256 : index
    %500 = vector.load %arg11[%c8_767, %c256_768] : memref<32x512xf32, #tpu.memory_space<vmem>>, vector<8x32xf32>
    tpu.vector_store %arg11[%c8_767, %c256_768], %499 {strides = array<i32>} : memref<32x512xf32, #tpu.memory_space<vmem>>, vector<8x32xf32>,
    %c48_769 = arith.constant 48 : index
    %c0_770 = arith.constant 0 : index
    %501 = vector.load %arg10[%c48_769, %c0_770] : memref<128x32xf32, #tpu.memory_space<vmem>>, vector<8x32xf32>
    %c8_771 = arith.constant 8 : index
    %c288_772 = arith.constant 288 : index
    %502 = vector.load %arg11[%c8_771, %c288_772] : memref<32x512xf32, #tpu.memory_space<vmem>>, vector<8x32xf32>
    tpu.vector_store %arg11[%c8_771, %c288_772], %501 {strides = array<i32>} : memref<32x512xf32, #tpu.memory_space<vmem>>, vector<8x32xf32>,
    %c56_773 = arith.constant 56 : index
    %c0_774 = arith.constant 0 : index
    %503 = vector.load %arg10[%c56_773, %c0_774] : memref<128x32xf32, #tpu.memory_space<vmem>>, vector<8x32xf32>
    %c8_775 = arith.constant 8 : index
    %c320_776 = arith.constant 320 : index
    %504 = vector.load %arg11[%c8_775, %c320_776] : memref<32x512xf32, #tpu.memory_space<vmem>>, vector<8x32xf32>
    tpu.vector_store %arg11[%c8_775, %c320_776], %503 {strides = array<i32>} : memref<32x512xf32, #tpu.memory_space<vmem>>, vector<8x32xf32>,
    %cst_777 = arith.constant 0.000000e+00 : f32
    %505 = vector.broadcast %cst_777 : f32 to vector<8x32xf32>
    %c8_778 = arith.constant 8 : index
    %c352_779 = arith.constant 352 : index
    %506 = vector.load %arg11[%c8_778, %c352_779] : memref<32x512xf32, #tpu.memory_space<vmem>>, vector<8x32xf32>
    tpu.vector_store %arg11[%c8_778, %c352_779], %505 {strides = array<i32>} : memref<32x512xf32, #tpu.memory_space<vmem>>, vector<8x32xf32>,
    %c72_780 = arith.constant 72 : index
    %c0_781 = arith.constant 0 : index
    %507 = vector.load %arg10[%c72_780, %c0_781] : memref<128x32xf32, #tpu.memory_space<vmem>>, vector<8x32xf32>
    %c8_782 = arith.constant 8 : index
    %c384_783 = arith.constant 384 : index
    %508 = vector.load %arg11[%c8_782, %c384_783] : memref<32x512xf32, #tpu.memory_space<vmem>>, vector<8x32xf32>
    tpu.vector_store %arg11[%c8_782, %c384_783], %507 {strides = array<i32>} : memref<32x512xf32, #tpu.memory_space<vmem>>, vector<8x32xf32>,
    %c80_784 = arith.constant 80 : index
    %c0_785 = arith.constant 0 : index
    %509 = vector.load %arg10[%c80_784, %c0_785] : memref<128x32xf32, #tpu.memory_space<vmem>>, vector<8x32xf32>
    %c8_786 = arith.constant 8 : index
    %c416_787 = arith.constant 416 : index
    %510 = vector.load %arg11[%c8_786, %c416_787] : memref<32x512xf32, #tpu.memory_space<vmem>>, vector<8x32xf32>
    tpu.vector_store %arg11[%c8_786, %c416_787], %509 {strides = array<i32>} : memref<32x512xf32, #tpu.memory_space<vmem>>, vector<8x32xf32>,
    %c88_788 = arith.constant 88 : index
    %c0_789 = arith.constant 0 : index
    %511 = vector.load %arg10[%c88_788, %c0_789] : memref<128x32xf32, #tpu.memory_space<vmem>>, vector<8x32xf32>
    %c8_790 = arith.constant 8 : index
    %c448_791 = arith.constant 448 : index
    %512 = vector.load %arg11[%c8_790, %c448_791] : memref<32x512xf32, #tpu.memory_space<vmem>>, vector<8x32xf32>
    tpu.vector_store %arg11[%c8_790, %c448_791], %511 {strides = array<i32>} : memref<32x512xf32, #tpu.memory_space<vmem>>, vector<8x32xf32>,
    %cst_792 = arith.constant 0.000000e+00 : f32
    %513 = vector.broadcast %cst_792 : f32 to vector<8x32xf32>
    %c8_793 = arith.constant 8 : index
    %c480_794 = arith.constant 480 : index
    %514 = vector.load %arg11[%c8_793, %c480_794] : memref<32x512xf32, #tpu.memory_space<vmem>>, vector<8x32xf32>
    tpu.vector_store %arg11[%c8_793, %c480_794], %513 {strides = array<i32>} : memref<32x512xf32, #tpu.memory_space<vmem>>, vector<8x32xf32>,
    %cst_795 = arith.constant 0.000000e+00 : f32
    %515 = vector.broadcast %cst_795 : f32 to vector<8x32xf32>
    %c16_796 = arith.constant 16 : index
    %c0_797 = arith.constant 0 : index
    %516 = vector.load %arg11[%c16_796, %c0_797] : memref<32x512xf32, #tpu.memory_space<vmem>>, vector<8x32xf32>
    tpu.vector_store %arg11[%c16_796, %c0_797], %515 {strides = array<i32>} : memref<32x512xf32, #tpu.memory_space<vmem>>, vector<8x32xf32>,
    %c32_798 = arith.constant 32 : index
    %c0_799 = arith.constant 0 : index
    %517 = vector.load %arg10[%c32_798, %c0_799] : memref<128x32xf32, #tpu.memory_space<vmem>>, vector<8x32xf32>
    %c16_800 = arith.constant 16 : index
    %c32_801 = arith.constant 32 : index
    %518 = vector.load %arg11[%c16_800, %c32_801] : memref<32x512xf32, #tpu.memory_space<vmem>>, vector<8x32xf32>
    tpu.vector_store %arg11[%c16_800, %c32_801], %517 {strides = array<i32>} : memref<32x512xf32, #tpu.memory_space<vmem>>, vector<8x32xf32>,
    %c40_802 = arith.constant 40 : index
    %c0_803 = arith.constant 0 : index
    %519 = vector.load %arg10[%c40_802, %c0_803] : memref<128x32xf32, #tpu.memory_space<vmem>>, vector<8x32xf32>
    %c16_804 = arith.constant 16 : index
    %c64_805 = arith.constant 64 : index
    %520 = vector.load %arg11[%c16_804, %c64_805] : memref<32x512xf32, #tpu.memory_space<vmem>>, vector<8x32xf32>
    tpu.vector_store %arg11[%c16_804, %c64_805], %519 {strides = array<i32>} : memref<32x512xf32, #tpu.memory_space<vmem>>, vector<8x32xf32>,
    %c48_806 = arith.constant 48 : index
    %c0_807 = arith.constant 0 : index
    %521 = vector.load %arg10[%c48_806, %c0_807] : memref<128x32xf32, #tpu.memory_space<vmem>>, vector<8x32xf32>
    %c16_808 = arith.constant 16 : index
    %c96_809 = arith.constant 96 : index
    %522 = vector.load %arg11[%c16_808, %c96_809] : memref<32x512xf32, #tpu.memory_space<vmem>>, vector<8x32xf32>
    tpu.vector_store %arg11[%c16_808, %c96_809], %521 {strides = array<i32>} : memref<32x512xf32, #tpu.memory_space<vmem>>, vector<8x32xf32>,
    %cst_810 = arith.constant 0.000000e+00 : f32
    %523 = vector.broadcast %cst_810 : f32 to vector<8x32xf32>
    %c16_811 = arith.constant 16 : index
    %c128_812 = arith.constant 128 : index
    %524 = vector.load %arg11[%c16_811, %c128_812] : memref<32x512xf32, #tpu.memory_space<vmem>>, vector<8x32xf32>
    tpu.vector_store %arg11[%c16_811, %c128_812], %523 {strides = array<i32>} : memref<32x512xf32, #tpu.memory_space<vmem>>, vector<8x32xf32>,
    %c64_813 = arith.constant 64 : index
    %c0_814 = arith.constant 0 : index
    %525 = vector.load %arg10[%c64_813, %c0_814] : memref<128x32xf32, #tpu.memory_space<vmem>>, vector<8x32xf32>
    %c16_815 = arith.constant 16 : index
    %c160_816 = arith.constant 160 : index
    %526 = vector.load %arg11[%c16_815, %c160_816] : memref<32x512xf32, #tpu.memory_space<vmem>>, vector<8x32xf32>
    tpu.vector_store %arg11[%c16_815, %c160_816], %525 {strides = array<i32>} : memref<32x512xf32, #tpu.memory_space<vmem>>, vector<8x32xf32>,
    %c72_817 = arith.constant 72 : index
    %c0_818 = arith.constant 0 : index
    %527 = vector.load %arg10[%c72_817, %c0_818] : memref<128x32xf32, #tpu.memory_space<vmem>>, vector<8x32xf32>
    %c16_819 = arith.constant 16 : index
    %c192_820 = arith.constant 192 : index
    %528 = vector.load %arg11[%c16_819, %c192_820] : memref<32x512xf32, #tpu.memory_space<vmem>>, vector<8x32xf32>
    tpu.vector_store %arg11[%c16_819, %c192_820], %527 {strides = array<i32>} : memref<32x512xf32, #tpu.memory_space<vmem>>, vector<8x32xf32>,
    %c80_821 = arith.constant 80 : index
    %c0_822 = arith.constant 0 : index
    %529 = vector.load %arg10[%c80_821, %c0_822] : memref<128x32xf32, #tpu.memory_space<vmem>>, vector<8x32xf32>
    %c16_823 = arith.constant 16 : index
    %c224_824 = arith.constant 224 : index
    %530 = vector.load %arg11[%c16_823, %c224_824] : memref<32x512xf32, #tpu.memory_space<vmem>>, vector<8x32xf32>
    tpu.vector_store %arg11[%c16_823, %c224_824], %529 {strides = array<i32>} : memref<32x512xf32, #tpu.memory_space<vmem>>, vector<8x32xf32>,
    %cst_825 = arith.constant 0.000000e+00 : f32
    %531 = vector.broadcast %cst_825 : f32 to vector<8x32xf32>
    %c16_826 = arith.constant 16 : index
    %c256_827 = arith.constant 256 : index
    %532 = vector.load %arg11[%c16_826, %c256_827] : memref<32x512xf32, #tpu.memory_space<vmem>>, vector<8x32xf32>
    tpu.vector_store %arg11[%c16_826, %c256_827], %531 {strides = array<i32>} : memref<32x512xf32, #tpu.memory_space<vmem>>, vector<8x32xf32>,
    %c96_828 = arith.constant 96 : index
    %c0_829 = arith.constant 0 : index
    %533 = vector.load %arg10[%c96_828, %c0_829] : memref<128x32xf32, #tpu.memory_space<vmem>>, vector<8x32xf32>
    %c16_830 = arith.constant 16 : index
    %c288_831 = arith.constant 288 : index
    %534 = vector.load %arg11[%c16_830, %c288_831] : memref<32x512xf32, #tpu.memory_space<vmem>>, vector<8x32xf32>
    tpu.vector_store %arg11[%c16_830, %c288_831], %533 {strides = array<i32>} : memref<32x512xf32, #tpu.memory_space<vmem>>, vector<8x32xf32>,
    %c104_832 = arith.constant 104 : index
    %c0_833 = arith.constant 0 : index
    %535 = vector.load %arg10[%c104_832, %c0_833] : memref<128x32xf32, #tpu.memory_space<vmem>>, vector<8x32xf32>
    %c16_834 = arith.constant 16 : index
    %c320_835 = arith.constant 320 : index
    %536 = vector.load %arg11[%c16_834, %c320_835] : memref<32x512xf32, #tpu.memory_space<vmem>>, vector<8x32xf32>
    tpu.vector_store %arg11[%c16_834, %c320_835], %535 {strides = array<i32>} : memref<32x512xf32, #tpu.memory_space<vmem>>, vector<8x32xf32>,
    %c112_836 = arith.constant 112 : index
    %c0_837 = arith.constant 0 : index
    %537 = vector.load %arg10[%c112_836, %c0_837] : memref<128x32xf32, #tpu.memory_space<vmem>>, vector<8x32xf32>
    %c16_838 = arith.constant 16 : index
    %c352_839 = arith.constant 352 : index
    %538 = vector.load %arg11[%c16_838, %c352_839] : memref<32x512xf32, #tpu.memory_space<vmem>>, vector<8x32xf32>
    tpu.vector_store %arg11[%c16_838, %c352_839], %537 {strides = array<i32>} : memref<32x512xf32, #tpu.memory_space<vmem>>, vector<8x32xf32>,
    %cst_840 = arith.constant 0.000000e+00 : f32
    %539 = vector.broadcast %cst_840 : f32 to vector<8x32xf32>
    %c16_841 = arith.constant 16 : index
    %c384_842 = arith.constant 384 : index
    %540 = vector.load %arg11[%c16_841, %c384_842] : memref<32x512xf32, #tpu.memory_space<vmem>>, vector<8x32xf32>
    tpu.vector_store %arg11[%c16_841, %c384_842], %539 {strides = array<i32>} : memref<32x512xf32, #tpu.memory_space<vmem>>, vector<8x32xf32>,
    %cst_843 = arith.constant 0.000000e+00 : f32
    %541 = vector.broadcast %cst_843 : f32 to vector<8x32xf32>
    %c16_844 = arith.constant 16 : index
    %c416_845 = arith.constant 416 : index
    %542 = vector.load %arg11[%c16_844, %c416_845] : memref<32x512xf32, #tpu.memory_space<vmem>>, vector<8x32xf32>
    tpu.vector_store %arg11[%c16_844, %c416_845], %541 {strides = array<i32>} : memref<32x512xf32, #tpu.memory_space<vmem>>, vector<8x32xf32>,
    %cst_846 = arith.constant 0.000000e+00 : f32
    %543 = vector.broadcast %cst_846 : f32 to vector<8x32xf32>
    %c16_847 = arith.constant 16 : index
    %c448_848 = arith.constant 448 : index
    %544 = vector.load %arg11[%c16_847, %c448_848] : memref<32x512xf32, #tpu.memory_space<vmem>>, vector<8x32xf32>
    tpu.vector_store %arg11[%c16_847, %c448_848], %543 {strides = array<i32>} : memref<32x512xf32, #tpu.memory_space<vmem>>, vector<8x32xf32>,
    %cst_849 = arith.constant 0.000000e+00 : f32
    %545 = vector.broadcast %cst_849 : f32 to vector<8x32xf32>
    %c16_850 = arith.constant 16 : index
    %c480_851 = arith.constant 480 : index
    %546 = vector.load %arg11[%c16_850, %c480_851] : memref<32x512xf32, #tpu.memory_space<vmem>>, vector<8x32xf32>
    tpu.vector_store %arg11[%c16_850, %c480_851], %545 {strides = array<i32>} : memref<32x512xf32, #tpu.memory_space<vmem>>, vector<8x32xf32>,
    %c40_852 = arith.constant 40 : index
    %c0_853 = arith.constant 0 : index
    %547 = vector.load %arg10[%c40_852, %c0_853] : memref<128x32xf32, #tpu.memory_space<vmem>>, vector<8x32xf32>
    %c24_854 = arith.constant 24 : index
    %c0_855 = arith.constant 0 : index
    %548 = vector.load %arg11[%c24_854, %c0_855] : memref<32x512xf32, #tpu.memory_space<vmem>>, vector<8x32xf32>
    tpu.vector_store %arg11[%c24_854, %c0_855], %547 {strides = array<i32>} : memref<32x512xf32, #tpu.memory_space<vmem>>, vector<8x32xf32>,
    %c48_856 = arith.constant 48 : index
    %c0_857 = arith.constant 0 : index
    %549 = vector.load %arg10[%c48_856, %c0_857] : memref<128x32xf32, #tpu.memory_space<vmem>>, vector<8x32xf32>
    %c24_858 = arith.constant 24 : index
    %c32_859 = arith.constant 32 : index
    %550 = vector.load %arg11[%c24_858, %c32_859] : memref<32x512xf32, #tpu.memory_space<vmem>>, vector<8x32xf32>
    tpu.vector_store %arg11[%c24_858, %c32_859], %549 {strides = array<i32>} : memref<32x512xf32, #tpu.memory_space<vmem>>, vector<8x32xf32>,
    %c56_860 = arith.constant 56 : index
    %c0_861 = arith.constant 0 : index
    %551 = vector.load %arg10[%c56_860, %c0_861] : memref<128x32xf32, #tpu.memory_space<vmem>>, vector<8x32xf32>
    %c24_862 = arith.constant 24 : index
    %c64_863 = arith.constant 64 : index
    %552 = vector.load %arg11[%c24_862, %c64_863] : memref<32x512xf32, #tpu.memory_space<vmem>>, vector<8x32xf32>
    tpu.vector_store %arg11[%c24_862, %c64_863], %551 {strides = array<i32>} : memref<32x512xf32, #tpu.memory_space<vmem>>, vector<8x32xf32>,
    %cst_864 = arith.constant 0.000000e+00 : f32
    %553 = vector.broadcast %cst_864 : f32 to vector<8x32xf32>
    %c24_865 = arith.constant 24 : index
    %c96_866 = arith.constant 96 : index
    %554 = vector.load %arg11[%c24_865, %c96_866] : memref<32x512xf32, #tpu.memory_space<vmem>>, vector<8x32xf32>
    tpu.vector_store %arg11[%c24_865, %c96_866], %553 {strides = array<i32>} : memref<32x512xf32, #tpu.memory_space<vmem>>, vector<8x32xf32>,
    %c72_867 = arith.constant 72 : index
    %c0_868 = arith.constant 0 : index
    %555 = vector.load %arg10[%c72_867, %c0_868] : memref<128x32xf32, #tpu.memory_space<vmem>>, vector<8x32xf32>
    %c24_869 = arith.constant 24 : index
    %c128_870 = arith.constant 128 : index
    %556 = vector.load %arg11[%c24_869, %c128_870] : memref<32x512xf32, #tpu.memory_space<vmem>>, vector<8x32xf32>
    tpu.vector_store %arg11[%c24_869, %c128_870], %555 {strides = array<i32>} : memref<32x512xf32, #tpu.memory_space<vmem>>, vector<8x32xf32>,
    %c80_871 = arith.constant 80 : index
    %c0_872 = arith.constant 0 : index
    %557 = vector.load %arg10[%c80_871, %c0_872] : memref<128x32xf32, #tpu.memory_space<vmem>>, vector<8x32xf32>
    %c24_873 = arith.constant 24 : index
    %c160_874 = arith.constant 160 : index
    %558 = vector.load %arg11[%c24_873, %c160_874] : memref<32x512xf32, #tpu.memory_space<vmem>>, vector<8x32xf32>
    tpu.vector_store %arg11[%c24_873, %c160_874], %557 {strides = array<i32>} : memref<32x512xf32, #tpu.memory_space<vmem>>, vector<8x32xf32>,
    %c88_875 = arith.constant 88 : index
    %c0_876 = arith.constant 0 : index
    %559 = vector.load %arg10[%c88_875, %c0_876] : memref<128x32xf32, #tpu.memory_space<vmem>>, vector<8x32xf32>
    %c24_877 = arith.constant 24 : index
    %c192_878 = arith.constant 192 : index
    %560 = vector.load %arg11[%c24_877, %c192_878] : memref<32x512xf32, #tpu.memory_space<vmem>>, vector<8x32xf32>
    tpu.vector_store %arg11[%c24_877, %c192_878], %559 {strides = array<i32>} : memref<32x512xf32, #tpu.memory_space<vmem>>, vector<8x32xf32>,
    %cst_879 = arith.constant 0.000000e+00 : f32
    %561 = vector.broadcast %cst_879 : f32 to vector<8x32xf32>
    %c24_880 = arith.constant 24 : index
    %c224_881 = arith.constant 224 : index
    %562 = vector.load %arg11[%c24_880, %c224_881] : memref<32x512xf32, #tpu.memory_space<vmem>>, vector<8x32xf32>
    tpu.vector_store %arg11[%c24_880, %c224_881], %561 {strides = array<i32>} : memref<32x512xf32, #tpu.memory_space<vmem>>, vector<8x32xf32>,
    %c104_882 = arith.constant 104 : index
    %c0_883 = arith.constant 0 : index
    %563 = vector.load %arg10[%c104_882, %c0_883] : memref<128x32xf32, #tpu.memory_space<vmem>>, vector<8x32xf32>
    %c24_884 = arith.constant 24 : index
    %c256_885 = arith.constant 256 : index
    %564 = vector.load %arg11[%c24_884, %c256_885] : memref<32x512xf32, #tpu.memory_space<vmem>>, vector<8x32xf32>
    tpu.vector_store %arg11[%c24_884, %c256_885], %563 {strides = array<i32>} : memref<32x512xf32, #tpu.memory_space<vmem>>, vector<8x32xf32>,
    %c112_886 = arith.constant 112 : index
    %c0_887 = arith.constant 0 : index
    %565 = vector.load %arg10[%c112_886, %c0_887] : memref<128x32xf32, #tpu.memory_space<vmem>>, vector<8x32xf32>
    %c24_888 = arith.constant 24 : index
    %c288_889 = arith.constant 288 : index
    %566 = vector.load %arg11[%c24_888, %c288_889] : memref<32x512xf32, #tpu.memory_space<vmem>>, vector<8x32xf32>
    tpu.vector_store %arg11[%c24_888, %c288_889], %565 {strides = array<i32>} : memref<32x512xf32, #tpu.memory_space<vmem>>, vector<8x32xf32>,
    %c120_890 = arith.constant 120 : index
    %c0_891 = arith.constant 0 : index
    %567 = vector.load %arg10[%c120_890, %c0_891] : memref<128x32xf32, #tpu.memory_space<vmem>>, vector<8x32xf32>
    %c24_892 = arith.constant 24 : index
    %c320_893 = arith.constant 320 : index
    %568 = vector.load %arg11[%c24_892, %c320_893] : memref<32x512xf32, #tpu.memory_space<vmem>>, vector<8x32xf32>
    tpu.vector_store %arg11[%c24_892, %c320_893], %567 {strides = array<i32>} : memref<32x512xf32, #tpu.memory_space<vmem>>, vector<8x32xf32>,
    %cst_894 = arith.constant 0.000000e+00 : f32
    %569 = vector.broadcast %cst_894 : f32 to vector<8x32xf32>
    %c24_895 = arith.constant 24 : index
    %c352_896 = arith.constant 352 : index
    %570 = vector.load %arg11[%c24_895, %c352_896] : memref<32x512xf32, #tpu.memory_space<vmem>>, vector<8x32xf32>
    tpu.vector_store %arg11[%c24_895, %c352_896], %569 {strides = array<i32>} : memref<32x512xf32, #tpu.memory_space<vmem>>, vector<8x32xf32>,
    %cst_897 = arith.constant 0.000000e+00 : f32
    %571 = vector.broadcast %cst_897 : f32 to vector<8x32xf32>
    %c24_898 = arith.constant 24 : index
    %c384_899 = arith.constant 384 : index
    %572 = vector.load %arg11[%c24_898, %c384_899] : memref<32x512xf32, #tpu.memory_space<vmem>>, vector<8x32xf32>
    tpu.vector_store %arg11[%c24_898, %c384_899], %571 {strides = array<i32>} : memref<32x512xf32, #tpu.memory_space<vmem>>, vector<8x32xf32>,
    %cst_900 = arith.constant 0.000000e+00 : f32
    %573 = vector.broadcast %cst_900 : f32 to vector<8x32xf32>
    %c24_901 = arith.constant 24 : index
    %c416_902 = arith.constant 416 : index
    %574 = vector.load %arg11[%c24_901, %c416_902] : memref<32x512xf32, #tpu.memory_space<vmem>>, vector<8x32xf32>
    tpu.vector_store %arg11[%c24_901, %c416_902], %573 {strides = array<i32>} : memref<32x512xf32, #tpu.memory_space<vmem>>, vector<8x32xf32>,
    %cst_903 = arith.constant 0.000000e+00 : f32
    %575 = vector.broadcast %cst_903 : f32 to vector<8x32xf32>
    %c24_904 = arith.constant 24 : index
    %c448_905 = arith.constant 448 : index
    %576 = vector.load %arg11[%c24_904, %c448_905] : memref<32x512xf32, #tpu.memory_space<vmem>>, vector<8x32xf32>
    tpu.vector_store %arg11[%c24_904, %c448_905], %575 {strides = array<i32>} : memref<32x512xf32, #tpu.memory_space<vmem>>, vector<8x32xf32>,
    %cst_906 = arith.constant 0.000000e+00 : f32
    %577 = vector.broadcast %cst_906 : f32 to vector<8x32xf32>
    %c24_907 = arith.constant 24 : index
    %c480_908 = arith.constant 480 : index
    %578 = vector.load %arg11[%c24_907, %c480_908] : memref<32x512xf32, #tpu.memory_space<vmem>>, vector<8x32xf32>
    tpu.vector_store %arg11[%c24_907, %c480_908], %577 {strides = array<i32>} : memref<32x512xf32, #tpu.memory_space<vmem>>, vector<8x32xf32>,
    %c0_909 = arith.constant 0 : index
    %c0_910 = arith.constant 0 : index
    %579 = vector.load %arg11[%c0_909, %c0_910] : memref<32x512xf32, #tpu.memory_space<vmem>>, vector<32x512xf32>
    %c0_911 = arith.constant 0 : index
    %c0_912 = arith.constant 0 : index
    %580 = vector.load %arg4[%c0_911, %c0_912] : memref<512x64xf32, #tpu.memory_space<vmem>>, vector<512x64xf32>
    %cst_913 = arith.constant dense<0.000000e+00> : vector<32x64xf32>
    %581 = tpu.matmul %579, %580, %cst_913 {dimension_numbers = #tpu.dot_dimension_numbers<[1], [0], [0], [1], [0, 0, 1, 1], [], []>} : vector<32x512xf32>, vector<512x64xf32>, vector<32x64xf32> -> vector<32x64xf32>
    %c0_914 = arith.constant 0 : index
    %c0_915 = arith.constant 0 : index
    %582 = vector.load %arg5[%c0_914, %c0_915] : memref<1x64xf32, #tpu.memory_space<vmem>>, vector<1x64xf32>
    %583 = vector.broadcast %582 : vector<1x64xf32> to vector<32x64xf32>
    %584 = arith.addf %581, %583 : vector<32x64xf32>
    %cst_916 = arith.constant 0.000000e+00 : f32
    %585 = vector.broadcast %cst_916 : f32 to vector<32x64xf32>
    %586 = arith.maximumf %584, %585 : vector<32x64xf32>
    %c0_917 = arith.constant 0 : index
    %c0_918 = arith.constant 0 : index
    %587 = vector.load %arg12[%c0_917, %c0_918] : memref<32x64xf32, #tpu.memory_space<vmem>>, vector<32x64xf32>
    tpu.vector_store %arg12[%c0_917, %c0_918], %586 {strides = array<i32>} : memref<32x64xf32, #tpu.memory_space<vmem>>, vector<32x64xf32>,
    %c256_919 = arith.constant 256 : index
    %c0_920 = arith.constant 0 : index
    %588 = vector.load %arg6[%c256_919, %c0_920] : memref<576x64xf32, #tpu.memory_space<vmem>>, vector<64x64xf32>
    %c0_921 = arith.constant 0 : index
    %c0_922 = arith.constant 0 : index
    %589 = vector.load %arg12[%c0_921, %c0_922] : memref<32x64xf32, #tpu.memory_space<vmem>>, vector<32x64xf32>
    %cst_923 = arith.constant dense<0.000000e+00> : vector<32x64xf32>
    %590 = tpu.matmul %589, %588, %cst_923 {dimension_numbers = #tpu.dot_dimension_numbers<[1], [0], [0], [1], [0, 0, 1, 1], [], []>} : vector<32x64xf32>, vector<64x64xf32>, vector<32x64xf32> -> vector<32x64xf32>
    %c0_924 = arith.constant 0 : index
    %c0_925 = arith.constant 0 : index
    %c0_926 = arith.constant 0 : index
    %591 = vector.load %arg8[%c0_924, %c0_925, %c0_926] : memref<1x32x64xf32, #tpu.memory_space<vmem>>, vector<1x32x64xf32>
    %592 = vector.shape_cast %591 : vector<1x32x64xf32> to vector<32x64xf32>
    %593 = vector.shape_cast %590 : vector<32x64xf32> to vector<1x32x64xf32>
    tpu.vector_store %arg8[%c0_924, %c0_925, %c0_926], %593 {strides = array<i32>} : memref<1x32x64xf32, #tpu.memory_space<vmem>>, vector<1x32x64xf32>,
    %c0_927 = arith.constant 0 : index
    %c0_928 = arith.constant 0 : index
    %594 = vector.load %arg6[%c0_927, %c0_928] : memref<576x64xf32, #tpu.memory_space<vmem>>, vector<64x64xf32>
    %c0_929 = arith.constant 0 : index
    %c0_930 = arith.constant 0 : index
    %595 = vector.load %arg12[%c0_929, %c0_930] : memref<32x64xf32, #tpu.memory_space<vmem>>, vector<8x64xf32>
    %cst_931 = arith.constant dense<0.000000e+00> : vector<8x64xf32>
    %596 = tpu.matmul %595, %594, %cst_931 {dimension_numbers = #tpu.dot_dimension_numbers<[1], [0], [0], [1], [0, 0, 1, 1], [], []>} : vector<8x64xf32>, vector<64x64xf32>, vector<8x64xf32> -> vector<8x64xf32>
    %c0_932 = arith.constant 0 : index
    %c24_933 = arith.constant 24 : index
    %c0_934 = arith.constant 0 : index
    %597 = vector.load %arg8[%c0_932, %c24_933, %c0_934] : memref<1x32x64xf32, #tpu.memory_space<vmem>>, vector<1x8x64xf32>
    %598 = vector.shape_cast %597 : vector<1x8x64xf32> to vector<8x64xf32>
    %599 = arith.addf %598, %596 : vector<8x64xf32>
    %c0_935 = arith.constant 0 : index
    %c24_936 = arith.constant 24 : index
    %c0_937 = arith.constant 0 : index
    %600 = vector.load %arg8[%c0_935, %c24_936, %c0_937] : memref<1x32x64xf32, #tpu.memory_space<vmem>>, vector<1x8x64xf32>
    %601 = vector.shape_cast %600 : vector<1x8x64xf32> to vector<8x64xf32>
    %602 = vector.shape_cast %599 : vector<8x64xf32> to vector<1x8x64xf32>
    tpu.vector_store %arg8[%c0_935, %c24_936, %c0_937], %602 {strides = array<i32>} : memref<1x32x64xf32, #tpu.memory_space<vmem>>, vector<1x8x64xf32>,
    %c64_938 = arith.constant 64 : index
    %c0_939 = arith.constant 0 : index
    %603 = vector.load %arg6[%c64_938, %c0_939] : memref<576x64xf32, #tpu.memory_space<vmem>>, vector<64x64xf32>
    %c0_940 = arith.constant 0 : index
    %c0_941 = arith.constant 0 : index
    %604 = vector.load %arg12[%c0_940, %c0_941] : memref<32x64xf32, #tpu.memory_space<vmem>>, vector<16x64xf32>
    %cst_942 = arith.constant dense<0.000000e+00> : vector<16x64xf32>
    %605 = tpu.matmul %604, %603, %cst_942 {dimension_numbers = #tpu.dot_dimension_numbers<[1], [0], [0], [1], [0, 0, 1, 1], [], []>} : vector<16x64xf32>, vector<64x64xf32>, vector<16x64xf32> -> vector<16x64xf32>
    %c0_943 = arith.constant 0 : index
    %c16_944 = arith.constant 16 : index
    %c0_945 = arith.constant 0 : index
    %606 = vector.load %arg8[%c0_943, %c16_944, %c0_945] : memref<1x32x64xf32, #tpu.memory_space<vmem>>, vector<1x16x64xf32>
    %607 = vector.shape_cast %606 : vector<1x16x64xf32> to vector<16x64xf32>
    %608 = arith.addf %607, %605 : vector<16x64xf32>
    %c0_946 = arith.constant 0 : index
    %c16_947 = arith.constant 16 : index
    %c0_948 = arith.constant 0 : index
    %609 = vector.load %arg8[%c0_946, %c16_947, %c0_948] : memref<1x32x64xf32, #tpu.memory_space<vmem>>, vector<1x16x64xf32>
    %610 = vector.shape_cast %609 : vector<1x16x64xf32> to vector<16x64xf32>
    %611 = vector.shape_cast %608 : vector<16x64xf32> to vector<1x16x64xf32>
    tpu.vector_store %arg8[%c0_946, %c16_947, %c0_948], %611 {strides = array<i32>} : memref<1x32x64xf32, #tpu.memory_space<vmem>>, vector<1x16x64xf32>,
    %c128_949 = arith.constant 128 : index
    %c0_950 = arith.constant 0 : index
    %612 = vector.load %arg6[%c128_949, %c0_950] : memref<576x64xf32, #tpu.memory_space<vmem>>, vector<64x64xf32>
    %c8_951 = arith.constant 8 : index
    %c0_952 = arith.constant 0 : index
    %613 = vector.load %arg12[%c8_951, %c0_952] : memref<32x64xf32, #tpu.memory_space<vmem>>, vector<8x64xf32>
    %cst_953 = arith.constant dense<0.000000e+00> : vector<8x64xf32>
    %614 = tpu.matmul %613, %612, %cst_953 {dimension_numbers = #tpu.dot_dimension_numbers<[1], [0], [0], [1], [0, 0, 1, 1], [], []>} : vector<8x64xf32>, vector<64x64xf32>, vector<8x64xf32> -> vector<8x64xf32>
    %c0_954 = arith.constant 0 : index
    %c16_955 = arith.constant 16 : index
    %c0_956 = arith.constant 0 : index
    %615 = vector.load %arg8[%c0_954, %c16_955, %c0_956] : memref<1x32x64xf32, #tpu.memory_space<vmem>>, vector<1x8x64xf32>
    %616 = vector.shape_cast %615 : vector<1x8x64xf32> to vector<8x64xf32>
    %617 = arith.addf %616, %614 : vector<8x64xf32>
    %c0_957 = arith.constant 0 : index
    %c16_958 = arith.constant 16 : index
    %c0_959 = arith.constant 0 : index
    %618 = vector.load %arg8[%c0_957, %c16_958, %c0_959] : memref<1x32x64xf32, #tpu.memory_space<vmem>>, vector<1x8x64xf32>
    %619 = vector.shape_cast %618 : vector<1x8x64xf32> to vector<8x64xf32>
    %620 = vector.shape_cast %617 : vector<8x64xf32> to vector<1x8x64xf32>
    tpu.vector_store %arg8[%c0_957, %c16_958, %c0_959], %620 {strides = array<i32>} : memref<1x32x64xf32, #tpu.memory_space<vmem>>, vector<1x8x64xf32>,
    %c192_960 = arith.constant 192 : index
    %c0_961 = arith.constant 0 : index
    %621 = vector.load %arg6[%c192_960, %c0_961] : memref<576x64xf32, #tpu.memory_space<vmem>>, vector<64x64xf32>
    %c0_962 = arith.constant 0 : index
    %c0_963 = arith.constant 0 : index
    %622 = vector.load %arg12[%c0_962, %c0_963] : memref<32x64xf32, #tpu.memory_space<vmem>>, vector<8x64xf32>
    %cst_964 = arith.constant dense<0.000000e+00> : vector<8x64xf32>
    %623 = tpu.matmul %622, %621, %cst_964 {dimension_numbers = #tpu.dot_dimension_numbers<[1], [0], [0], [1], [0, 0, 1, 1], [], []>} : vector<8x64xf32>, vector<64x64xf32>, vector<8x64xf32> -> vector<8x64xf32>
    %c0_965 = arith.constant 0 : index
    %c8_966 = arith.constant 8 : index
    %c0_967 = arith.constant 0 : index
    %624 = vector.load %arg8[%c0_965, %c8_966, %c0_967] : memref<1x32x64xf32, #tpu.memory_space<vmem>>, vector<1x8x64xf32>
    %625 = vector.shape_cast %624 : vector<1x8x64xf32> to vector<8x64xf32>
    %626 = arith.addf %625, %623 : vector<8x64xf32>
    %c0_968 = arith.constant 0 : index
    %c8_969 = arith.constant 8 : index
    %c0_970 = arith.constant 0 : index
    %627 = vector.load %arg8[%c0_968, %c8_969, %c0_970] : memref<1x32x64xf32, #tpu.memory_space<vmem>>, vector<1x8x64xf32>
    %628 = vector.shape_cast %627 : vector<1x8x64xf32> to vector<8x64xf32>
    %629 = vector.shape_cast %626 : vector<8x64xf32> to vector<1x8x64xf32>
    tpu.vector_store %arg8[%c0_968, %c8_969, %c0_970], %629 {strides = array<i32>} : memref<1x32x64xf32, #tpu.memory_space<vmem>>, vector<1x8x64xf32>,
    %c16_971 = arith.constant 16 : index
    %c0_972 = arith.constant 0 : index
    %630 = vector.load %arg12[%c16_971, %c0_972] : memref<32x64xf32, #tpu.memory_space<vmem>>, vector<8x64xf32>
    %cst_973 = arith.constant dense<0.000000e+00> : vector<8x64xf32>
    %631 = tpu.matmul %630, %621, %cst_973 {dimension_numbers = #tpu.dot_dimension_numbers<[1], [0], [0], [1], [0, 0, 1, 1], [], []>} : vector<8x64xf32>, vector<64x64xf32>, vector<8x64xf32> -> vector<8x64xf32>
    %c0_974 = arith.constant 0 : index
    %c24_975 = arith.constant 24 : index
    %c0_976 = arith.constant 0 : index
    %632 = vector.load %arg8[%c0_974, %c24_975, %c0_976] : memref<1x32x64xf32, #tpu.memory_space<vmem>>, vector<1x8x64xf32>
    %633 = vector.shape_cast %632 : vector<1x8x64xf32> to vector<8x64xf32>
    %634 = arith.addf %633, %631 : vector<8x64xf32>
    %c0_977 = arith.constant 0 : index
    %c24_978 = arith.constant 24 : index
    %c0_979 = arith.constant 0 : index
    %635 = vector.load %arg8[%c0_977, %c24_978, %c0_979] : memref<1x32x64xf32, #tpu.memory_space<vmem>>, vector<1x8x64xf32>
    %636 = vector.shape_cast %635 : vector<1x8x64xf32> to vector<8x64xf32>
    %637 = vector.shape_cast %634 : vector<8x64xf32> to vector<1x8x64xf32>
    tpu.vector_store %arg8[%c0_977, %c24_978, %c0_979], %637 {strides = array<i32>} : memref<1x32x64xf32, #tpu.memory_space<vmem>>, vector<1x8x64xf32>,
    %c320_980 = arith.constant 320 : index
    %c0_981 = arith.constant 0 : index
    %638 = vector.load %arg6[%c320_980, %c0_981] : memref<576x64xf32, #tpu.memory_space<vmem>>, vector<64x64xf32>
    %c8_982 = arith.constant 8 : index
    %c0_983 = arith.constant 0 : index
    %639 = vector.load %arg12[%c8_982, %c0_983] : memref<32x64xf32, #tpu.memory_space<vmem>>, vector<8x64xf32>
    %cst_984 = arith.constant dense<0.000000e+00> : vector<8x64xf32>
    %640 = tpu.matmul %639, %638, %cst_984 {dimension_numbers = #tpu.dot_dimension_numbers<[1], [0], [0], [1], [0, 0, 1, 1], [], []>} : vector<8x64xf32>, vector<64x64xf32>, vector<8x64xf32> -> vector<8x64xf32>
    %c0_985 = arith.constant 0 : index
    %c0_986 = arith.constant 0 : index
    %c0_987 = arith.constant 0 : index
    %641 = vector.load %arg8[%c0_985, %c0_986, %c0_987] : memref<1x32x64xf32, #tpu.memory_space<vmem>>, vector<1x8x64xf32>
    %642 = vector.shape_cast %641 : vector<1x8x64xf32> to vector<8x64xf32>
    %643 = arith.addf %642, %640 : vector<8x64xf32>
    %c0_988 = arith.constant 0 : index
    %c0_989 = arith.constant 0 : index
    %c0_990 = arith.constant 0 : index
    %644 = vector.load %arg8[%c0_988, %c0_989, %c0_990] : memref<1x32x64xf32, #tpu.memory_space<vmem>>, vector<1x8x64xf32>
    %645 = vector.shape_cast %644 : vector<1x8x64xf32> to vector<8x64xf32>
    %646 = vector.shape_cast %643 : vector<8x64xf32> to vector<1x8x64xf32>
    tpu.vector_store %arg8[%c0_988, %c0_989, %c0_990], %646 {strides = array<i32>} : memref<1x32x64xf32, #tpu.memory_space<vmem>>, vector<1x8x64xf32>,
    %c24_991 = arith.constant 24 : index
    %c0_992 = arith.constant 0 : index
    %647 = vector.load %arg12[%c24_991, %c0_992] : memref<32x64xf32, #tpu.memory_space<vmem>>, vector<8x64xf32>
    %cst_993 = arith.constant dense<0.000000e+00> : vector<8x64xf32>
    %648 = tpu.matmul %647, %638, %cst_993 {dimension_numbers = #tpu.dot_dimension_numbers<[1], [0], [0], [1], [0, 0, 1, 1], [], []>} : vector<8x64xf32>, vector<64x64xf32>, vector<8x64xf32> -> vector<8x64xf32>
    %c0_994 = arith.constant 0 : index
    %c16_995 = arith.constant 16 : index
    %c0_996 = arith.constant 0 : index
    %649 = vector.load %arg8[%c0_994, %c16_995, %c0_996] : memref<1x32x64xf32, #tpu.memory_space<vmem>>, vector<1x8x64xf32>
    %650 = vector.shape_cast %649 : vector<1x8x64xf32> to vector<8x64xf32>
    %651 = arith.addf %650, %648 : vector<8x64xf32>
    %c0_997 = arith.constant 0 : index
    %c16_998 = arith.constant 16 : index
    %c0_999 = arith.constant 0 : index
    %652 = vector.load %arg8[%c0_997, %c16_998, %c0_999] : memref<1x32x64xf32, #tpu.memory_space<vmem>>, vector<1x8x64xf32>
    %653 = vector.shape_cast %652 : vector<1x8x64xf32> to vector<8x64xf32>
    %654 = vector.shape_cast %651 : vector<8x64xf32> to vector<1x8x64xf32>
    tpu.vector_store %arg8[%c0_997, %c16_998, %c0_999], %654 {strides = array<i32>} : memref<1x32x64xf32, #tpu.memory_space<vmem>>, vector<1x8x64xf32>,
    %c384_1000 = arith.constant 384 : index
    %c0_1001 = arith.constant 0 : index
    %655 = vector.load %arg6[%c384_1000, %c0_1001] : memref<576x64xf32, #tpu.memory_space<vmem>>, vector<64x64xf32>
    %c16_1002 = arith.constant 16 : index
    %c0_1003 = arith.constant 0 : index
    %656 = vector.load %arg12[%c16_1002, %c0_1003] : memref<32x64xf32, #tpu.memory_space<vmem>>, vector<8x64xf32>
    %cst_1004 = arith.constant dense<0.000000e+00> : vector<8x64xf32>
    %657 = tpu.matmul %656, %655, %cst_1004 {dimension_numbers = #tpu.dot_dimension_numbers<[1], [0], [0], [1], [0, 0, 1, 1], [], []>} : vector<8x64xf32>, vector<64x64xf32>, vector<8x64xf32> -> vector<8x64xf32>
    %c0_1005 = arith.constant 0 : index
    %c8_1006 = arith.constant 8 : index
    %c0_1007 = arith.constant 0 : index
    %658 = vector.load %arg8[%c0_1005, %c8_1006, %c0_1007] : memref<1x32x64xf32, #tpu.memory_space<vmem>>, vector<1x8x64xf32>
    %659 = vector.shape_cast %658 : vector<1x8x64xf32> to vector<8x64xf32>
    %660 = arith.addf %659, %657 : vector<8x64xf32>
    %c0_1008 = arith.constant 0 : index
    %c8_1009 = arith.constant 8 : index
    %c0_1010 = arith.constant 0 : index
    %661 = vector.load %arg8[%c0_1008, %c8_1009, %c0_1010] : memref<1x32x64xf32, #tpu.memory_space<vmem>>, vector<1x8x64xf32>
    %662 = vector.shape_cast %661 : vector<1x8x64xf32> to vector<8x64xf32>
    %663 = vector.shape_cast %660 : vector<8x64xf32> to vector<1x8x64xf32>
    tpu.vector_store %arg8[%c0_1008, %c8_1009, %c0_1010], %663 {strides = array<i32>} : memref<1x32x64xf32, #tpu.memory_space<vmem>>, vector<1x8x64xf32>,
    %c448_1011 = arith.constant 448 : index
    %c0_1012 = arith.constant 0 : index
    %664 = vector.load %arg6[%c448_1011, %c0_1012] : memref<576x64xf32, #tpu.memory_space<vmem>>, vector<64x64xf32>
    %c16_1013 = arith.constant 16 : index
    %c0_1014 = arith.constant 0 : index
    %665 = vector.load %arg12[%c16_1013, %c0_1014] : memref<32x64xf32, #tpu.memory_space<vmem>>, vector<16x64xf32>
    %cst_1015 = arith.constant dense<0.000000e+00> : vector<16x64xf32>
    %666 = tpu.matmul %665, %664, %cst_1015 {dimension_numbers = #tpu.dot_dimension_numbers<[1], [0], [0], [1], [0, 0, 1, 1], [], []>} : vector<16x64xf32>, vector<64x64xf32>, vector<16x64xf32> -> vector<16x64xf32>
    %c0_1016 = arith.constant 0 : index
    %c0_1017 = arith.constant 0 : index
    %c0_1018 = arith.constant 0 : index
    %667 = vector.load %arg8[%c0_1016, %c0_1017, %c0_1018] : memref<1x32x64xf32, #tpu.memory_space<vmem>>, vector<1x16x64xf32>
    %668 = vector.shape_cast %667 : vector<1x16x64xf32> to vector<16x64xf32>
    %669 = arith.addf %668, %666 : vector<16x64xf32>
    %c0_1019 = arith.constant 0 : index
    %c0_1020 = arith.constant 0 : index
    %c0_1021 = arith.constant 0 : index
    %670 = vector.load %arg8[%c0_1019, %c0_1020, %c0_1021] : memref<1x32x64xf32, #tpu.memory_space<vmem>>, vector<1x16x64xf32>
    %671 = vector.shape_cast %670 : vector<1x16x64xf32> to vector<16x64xf32>
    %672 = vector.shape_cast %669 : vector<16x64xf32> to vector<1x16x64xf32>
    tpu.vector_store %arg8[%c0_1019, %c0_1020, %c0_1021], %672 {strides = array<i32>} : memref<1x32x64xf32, #tpu.memory_space<vmem>>, vector<1x16x64xf32>,
    %c512 = arith.constant 512 : index
    %c0_1022 = arith.constant 0 : index
    %673 = vector.load %arg6[%c512, %c0_1022] : memref<576x64xf32, #tpu.memory_space<vmem>>, vector<64x64xf32>
    %c24_1023 = arith.constant 24 : index
    %c0_1024 = arith.constant 0 : index
    %674 = vector.load %arg12[%c24_1023, %c0_1024] : memref<32x64xf32, #tpu.memory_space<vmem>>, vector<8x64xf32>
    %cst_1025 = arith.constant dense<0.000000e+00> : vector<8x64xf32>
    %675 = tpu.matmul %674, %673, %cst_1025 {dimension_numbers = #tpu.dot_dimension_numbers<[1], [0], [0], [1], [0, 0, 1, 1], [], []>} : vector<8x64xf32>, vector<64x64xf32>, vector<8x64xf32> -> vector<8x64xf32>
    %c0_1026 = arith.constant 0 : index
    %c0_1027 = arith.constant 0 : index
    %c0_1028 = arith.constant 0 : index
    %676 = vector.load %arg8[%c0_1026, %c0_1027, %c0_1028] : memref<1x32x64xf32, #tpu.memory_space<vmem>>, vector<1x8x64xf32>
    %677 = vector.shape_cast %676 : vector<1x8x64xf32> to vector<8x64xf32>
    %678 = arith.addf %677, %675 : vector<8x64xf32>
    %c0_1029 = arith.constant 0 : index
    %c0_1030 = arith.constant 0 : index
    %c0_1031 = arith.constant 0 : index
    %679 = vector.load %arg8[%c0_1029, %c0_1030, %c0_1031] : memref<1x32x64xf32, #tpu.memory_space<vmem>>, vector<1x8x64xf32>
    %680 = vector.shape_cast %679 : vector<1x8x64xf32> to vector<8x64xf32>
    %681 = vector.shape_cast %678 : vector<8x64xf32> to vector<1x8x64xf32>
    tpu.vector_store %arg8[%c0_1029, %c0_1030, %c0_1031], %681 {strides = array<i32>} : memref<1x32x64xf32, #tpu.memory_space<vmem>>, vector<1x8x64xf32>,
    %c0_1032 = arith.constant 0 : index
    %c0_1033 = arith.constant 0 : index
    %c0_1034 = arith.constant 0 : index
    %682 = vector.load %arg8[%c0_1032, %c0_1033, %c0_1034] : memref<1x32x64xf32, #tpu.memory_space<vmem>>, vector<1x32x64xf32>
    %683 = vector.shape_cast %682 : vector<1x32x64xf32> to vector<32x64xf32>
    %c0_1035 = arith.constant 0 : index
    %c0_1036 = arith.constant 0 : index
    %684 = vector.load %arg7[%c0_1035, %c0_1036] : memref<1x64xf32, #tpu.memory_space<vmem>>, vector<1x64xf32>
    %685 = vector.broadcast %684 : vector<1x64xf32> to vector<32x64xf32>
    %686 = arith.addf %683, %685 : vector<32x64xf32>
    %cst_1037 = arith.constant 0.000000e+00 : f32
    %687 = vector.broadcast %cst_1037 : f32 to vector<32x64xf32>
    %688 = arith.maximumf %686, %687 : vector<32x64xf32>
    %c0_1038 = arith.constant 0 : index
    %c0_1039 = arith.constant 0 : index
    %c0_1040 = arith.constant 0 : index
    %689 = vector.load %arg8[%c0_1038, %c0_1039, %c0_1040] : memref<1x32x64xf32, #tpu.memory_space<vmem>>, vector<1x32x64xf32>
    %690 = vector.shape_cast %689 : vector<1x32x64xf32> to vector<32x64xf32>
    %691 = vector.shape_cast %688 : vector<32x64xf32> to vector<1x32x64xf32>
    tpu.vector_store %arg8[%c0_1038, %c0_1039, %c0_1040], %691 {strides = array<i32>} : memref<1x32x64xf32, #tpu.memory_space<vmem>>, vector<1x32x64xf32>,
    return
  }
  func.func @transform_0(%arg0: i32) -> (i32, i32, i32) {
    %c0_i32 = arith.constant 0 : i32
    %c0_i32_0 = arith.constant 0 : i32
    %c0_i32_1 = arith.constant 0 : i32
    return %c0_i32, %arg0, %c0_i32_0 : i32, i32, i32
  }
  func.func @transform_1(%arg0: i32) -> (i32, i32) {
    %c0_i32 = arith.constant 0 : i32
    %c0_i32_0 = arith.constant 0 : i32
    %c0_i32_1 = arith.constant 0 : i32
    return %c0_i32, %c0_i32_0 : i32, i32
  }
  func.func @transform_2(%arg0: i32) -> (i32, i32) {
    %c0_i32 = arith.constant 0 : i32
    %c0_i32_0 = arith.constant 0 : i32
    %c0_i32_1 = arith.constant 0 : i32
    return %c0_i32, %c0_i32_0 : i32, i32
  }
  func.func @transform_3(%arg0: i32) -> (i32, i32) {
    %c0_i32 = arith.constant 0 : i32
    %c0_i32_0 = arith.constant 0 : i32
    %c0_i32_1 = arith.constant 0 : i32
    return %c0_i32, %c0_i32_0 : i32, i32
  }
  func.func @transform_4(%arg0: i32) -> (i32, i32) {
    %c0_i32 = arith.constant 0 : i32
    %c0_i32_0 = arith.constant 0 : i32
    %c0_i32_1 = arith.constant 0 : i32
    return %c0_i32, %c0_i32_0 : i32, i32
  }
  func.func @transform_5(%arg0: i32) -> (i32, i32) {
    %c0_i32 = arith.constant 0 : i32
    %c0_i32_0 = arith.constant 0 : i32
    %c0_i32_1 = arith.constant 0 : i32
    return %c0_i32, %c0_i32_0 : i32, i32
  }
  func.func @transform_6(%arg0: i32) -> (i32, i32) {
    %c0_i32 = arith.constant 0 : i32
    %c0_i32_0 = arith.constant 0 : i32
    %c0_i32_1 = arith.constant 0 : i32
    return %c0_i32, %c0_i32_0 : i32, i32
  }
  func.func @transform_7(%arg0: i32) -> (i32, i32, i32) {
    %c0_i32 = arith.constant 0 : i32
    %c0_i32_0 = arith.constant 0 : i32
    %c0_i32_1 = arith.constant 0 : i32
    return %arg0, %c0_i32, %c0_i32_0 : i32, i32, i32
  }
}

</mosaic_0001>

<bundles_post_ra>
// kernel: cnn_forward.1
= control target key start
LH: loop header
LB: loop body
LE: loop exit
PB: predicated region body
PF: predicated region fallthrough
CT: control target
= control target key end

     0   :  { %vm26_vm0 = vcmask 261120   ;;  %vm28_vm1 = vcmask 523520   ;;  %v3199_v2 = vmov 0.0   ;;  %s3200_s28 = smov 4   ;;  %s3201_s29 = smov 36   ;;  %vm37_vm2 = vcmask 785920   ;;  %s4798_s0 = inlined_call_operand.vmem [shape: f32[20,8,80], index: 0, kind: input, shape index: {}]   ;;  %s4799_s1 = inlined_call_operand.vmem [shape: f32[256,32], index: 1, kind: input, shape index: {}]   ;;  %s4800_s2 = inlined_call_operand.vmem [shape: f32[1,32], index: 2, kind: input, shape index: {}]   ;;  %s4801_s3 = inlined_call_operand.vmem [shape: f32[512,64], index: 3, kind: input, shape index: {}]   ;;  %s4802_s5 = inlined_call_operand.vmem [shape: f32[576,64], index: 5, kind: input, shape index: {}]   ;;  %s4803_s4 = inlined_call_operand.vmem [shape: f32[1,64], index: 4, kind: input, shape index: {}]   ;;  %s4804_s7 = inlined_call_operand.vmem [shape: f32[1,32,64], index: 7, kind: output, shape index: {}]   ;;  %s4805_s6 = inlined_call_operand.vmem [shape: f32[1,64], index: 6, kind: input, shape index: {}]  }
   0x1   :  { %v3255_v0 = vld [vmem:[%s4798_s0 + $0x18] sm:$0xff]  ;;  %v3260_v1 = vld [vmem:[%s4798_s0] sm:$0xff]  ;;  %57 = vst.msk [vmem:[#allocation2 + $0x8] sm:$0xff] %vm26_vm0, %v3199_v2  ;;  %27 = vst.msk [vmem:[#allocation2] sm:$0xff] %vm26_vm0, %v3199_v2  ;;  %vm47_vm3 = vcmask 1048320   ;;  %s3202_s15 = smov 68  }
   0x2   :  { %90 = vst.msk [vmem:[#allocation2 + $0x10] sm:$0xff] %vm26_vm0, %v3199_v2  ;;  %133 = vst.msk [vmem:[#allocation2 + $0x20] sm:$0xff] %vm26_vm0, %v3199_v2  ;;  %61 = vrot.lane.b32.xlu0 %v3255_v0, %s3200_s28  ;;  %32 = vrot.lane.b32.xlu1 %v3260_v1, %s3201_s29  ;;  %v3321_v3 = vld [vmem:[%s4798_s0 + $0x20] sm:$0xff]  ;;  %v3326_v4 = vld [vmem:[%s4798_s0 + $0x28] sm:$0xff]  ;;  %s3203_s26 = smov 100   ;;  %s3204_s14 = smov 116  }
   0x3   :  { %176 = vst.msk [vmem:[#allocation2 + $0x30] sm:$0xff] %vm26_vm0, %v3199_v2  ;;  %219 = vst.msk [vmem:[#allocation2 + $0x40] sm:$0xff] %vm26_vm0, %v3199_v2  ;;  %v894_v5 = vld [vmem:[%s4799_s1 + $0xf8] sm:$0xff]  ;;  %v893_v7 = vld [vmem:[%s4799_s1 + $0xf0] sm:$0xff]  ;;  %s3205_s22 = smov 20   ;;  %s3206_s9 = smov 52  }
   0x4   :  { %247 = vst.msk [vmem:[#allocation2 + $0x48] sm:$0xff] %vm26_vm0, %v3199_v2  ;;  %423 = vst.msk [vmem:[#allocation2 + $0x80] sm:$0xff] %vm26_vm0, %v3199_v2  ;;  %v878_v6 = vld [vmem:[%s4799_s1 + $0x78] sm:$0xff]  ;;  %v3360_v8 = vld [vmem:[%s4798_s0 + $0x8] sm:$0xff]  ;;  %2702 = vmatprep.subr.mxu0 %v894_v5  ;;  %s3207_s18 = smov 84   ;;  %vm64_vm4 = vcmask 261152  }
   0x5   :  { %451 = vst.msk [vmem:[#allocation2 + $0x88] sm:$0xff] %vm26_vm0, %v3199_v2  ;;  %627 = vst.msk [vmem:[#allocation2 + $0xc0] sm:$0xff] %vm26_vm0, %v3199_v2  ;;  %v3365_v9 = vld [vmem:[%s4798_s0 + $0x30] sm:$0xff]  ;;  %2703 = vmatpush3.msra.mxu0 %v878_v6  ;;  %v892_v11 = vld [vmem:[%s4799_s1 + $0xe8] sm:$0xff]  ;;  %vm35_vm5 = vcmask 523552   ;;  %vm45_vm6 = vcmask 785952  }
   0x6   :  { %655 = vst.msk [vmem:[#allocation2 + $0xc8] sm:$0xff] %vm26_vm0, %v3199_v2  ;;  %1079 = vst.msk [vmem:[#allocation4] sm:$0xff] %vm26_vm0, %v3199_v2  ;;  %70 = vrot.lane.b32.xlu0 %v3321_v3, %s3201_s29  ;;  %78 = vrot.lane.b32.xlu1 %v3326_v4, %s3202_s15  ;;  %v877_v10 = vld [vmem:[%s4799_s1 + $0x70] sm:$0xff]  ;;  %v876_v12 = vld [vmem:[%s4799_s1 + $0x68] sm:$0xff]  ;;  %vm55_vm7 = vcmask 1048352   ;;  %vm3211_vm8 = vmmov 0  }
   0x7   :  { %1083 = vst.msk [vmem:[#allocation4 + $0x8] sm:$0xff] %vm26_vm0, %v3199_v2  ;;  %1102 = vst.msk [vmem:[#allocation4 + $0x10] sm:$0xff] %vm26_vm0, %v3199_v2  ;;  %2704 = vmatprep.subr.mxu0 %v893_v7  ;;  %v3383_v13 = vld [vmem:[%s4798_s0 + $0x10] sm:$0xff]  ;;  %v891_v14 = vld [vmem:[%s4799_s1 + $0xe0] sm:$0xff]  ;;  %vm1560_vm9 = vcmask 523264  }
   0x8   :  { %1121 = vst.msk [vmem:[#allocation4 + $0x18] sm:$0xff] %vm26_vm0, %v3199_v2  ;;  %1140 = vst.msk [vmem:[#allocation4 + $0x20] sm:$0xff] %vm26_vm0, %v3199_v2  ;;  %2705 = vmatpush3.msra.mxu0 %v877_v10  ;;  %v875_v15 = vld [vmem:[%s4799_s1 + $0x60] sm:$0xff]  ;;  %v890_v16 = vld [vmem:[%s4799_s1 + $0xd8] sm:$0xff] }
   0x9   :  { %1189 = vst.msk [vmem:[#allocation4 + $0x40] sm:$0xff] %vm26_vm0, %v3199_v2  ;;  %1208 = vst.msk [vmem:[#allocation4 + $0x48] sm:$0xff] %vm26_vm0, %v3199_v2  ;;  %2706 = vmatprep.subr.mxu0 %v892_v11  ;;  %v874_v17 = vld [vmem:[%s4799_s1 + $0x58] sm:$0xff]  ;;  %v889_v18 = vld [vmem:[%s4799_s1 + $0xd0] sm:$0xff] }
   0xa   :  { %1227 = vst.msk [vmem:[#allocation4 + $0x50] sm:$0xff] %vm26_vm0, %v3199_v2  ;;  %1246 = vst.msk [vmem:[#allocation4 + $0x58] sm:$0xff] %vm26_vm0, %v3199_v2  ;;  %42 = vrot.lane.b32.xlu0 %v3360_v8, %s3202_s15  ;;  %86 = vrot.lane.b32.xlu1 %v3365_v9, %s3203_s26  ;;  %v873_v19 = vld [vmem:[%s4799_s1 + $0x50] sm:$0xff]  ;;  %v888_v20 = vld [vmem:[%s4799_s1 + $0xc8] sm:$0xff] }
   0xb   :  { %1295 = vst.msk [vmem:[#allocation4 + $0x78] sm:$0xff] %vm26_vm0, %v3199_v2  ;;  %2707 = vmatpush3.msra.mxu0 %v876_v12  ;;  %v872_v21 = vld [vmem:[%s4799_s1 + $0x48] sm:$0xff]  ;;  %v887_v22 = vld [vmem:[%s4799_s1 + $0xc0] sm:$0xff]  ;;  %v886_v24 = vld [vmem:[%s4799_s1 + $0xb8] sm:$0xff] }
   0xc   :  { %29 = vst.msk [vmem:[#allocation2] sm:$0xff] %vm28_vm1, %v3199_v2  ;;  %1080 = vst.msk [vmem:[#allocation4] sm:$0xff] %vm28_vm1, %v3199_v2  ;;  %2708 = vmatprep.subr.mxu0 %v891_v14  ;;  %v871_v23 = vld [vmem:[%s4799_s1 + $0x40] sm:$0xff]  ;;  %v870_v25 = vld [vmem:[%s4799_s1 + $0x38] sm:$0xff] }
   0xd   :  { %1141 = vst.msk [vmem:[#allocation4 + $0x20] sm:$0xff] %vm28_vm1, %v3199_v2  ;;  %1247 = vst.msk [vmem:[#allocation4 + $0x58] sm:$0xff] %vm28_vm1, %v3199_v2  ;;  %2709 = vmatpush3.msra.mxu0 %v875_v15  ;;  %v885_v26 = vld [vmem:[%s4799_s1 + $0xb0] sm:$0xff]  ;;  %v884_v28 = vld [vmem:[%s4799_s1 + $0xa8] sm:$0xff] }
   0xe   :  { %1296 = vst.msk [vmem:[#allocation4 + $0x78] sm:$0xff] %vm28_vm1, %v3199_v2  ;;  %52 = vrot.lane.b32.xlu0 %v3383_v13, %s3203_s26  ;;  %111 = vrot.lane.b32.xlu1 %v3255_v0, %s3204_s14  ;;  %v869_v27 = vld [vmem:[%s4799_s1 + $0x30] sm:$0xff]  ;;  %v868_v29 = vld [vmem:[%s4799_s1 + $0x28] sm:$0xff] }
   0xf   :  { %1081 = vst.msk [vmem:[#allocation4] sm:$0xff] %vm37_vm2, %v3199_v2  ;;  %1142 = vst.msk [vmem:[#allocation4 + $0x20] sm:$0xff] %vm37_vm2, %v3199_v2  ;;  %2710 = vmatprep.subr.mxu0 %v890_v16  ;;  %v883_v30 = vld [vmem:[%s4799_s1 + $0xa0] sm:$0xff]  ;;  %v882_v32 = vld [vmem:[%s4799_s1 + $0x98] sm:$0xff] }
  0x10   :  { %1248 = vst.msk [vmem:[#allocation4 + $0x58] sm:$0xff] %vm37_vm2, %v3199_v2  ;;  %1297 = vst.msk [vmem:[#allocation4 + $0x78] sm:$0xff] %vm37_vm2, %v3199_v2  ;;  %2711 = vmatpush3.msra.mxu0 %v874_v17  ;;  %v867_v31 = vld [vmem:[%s4799_s1 + $0x20] sm:$0xff]  ;;  %v866_v33 = vld [vmem:[%s4799_s1 + $0x18] sm:$0xff] }
  0x11   :  { %1082 = vst.msk [vmem:[#allocation4] sm:$0xff] %vm47_vm3, %v3199_v2  ;;  %1143 = vst.msk [vmem:[#allocation4 + $0x20] sm:$0xff] %vm47_vm3, %v3199_v2  ;;  %2712 = vmatprep.subr.mxu0 %v889_v18  ;;  %v881_v34 = vld [vmem:[%s4799_s1 + $0x90] sm:$0xff]  ;;  %v880_v36 = vld [vmem:[%s4799_s1 + $0x88] sm:$0xff] }
  0x12   :  { %1249 = vst.msk [vmem:[#allocation4 + $0x58] sm:$0xff] %vm47_vm3, %v3199_v2  ;;  %1298 = vst.msk [vmem:[#allocation4 + $0x78] sm:$0xff] %vm47_vm3, %v3199_v2  ;;  %117 = vrot.lane.b32.xlu0 %v3321_v3, %s3205_s22  ;;  %93 = vrot.lane.b32.xlu1 %v3260_v1, %s3205_s22  ;;  %v865_v35 = vld [vmem:[%s4799_s1 + $0x10] sm:$0xff]  ;;  %v864_v37 = vld [vmem:[%s4799_s1 + $0x8] sm:$0xff] }
  0x13   :  { %2713 = vmatpush3.msra.mxu0 %v873_v19  ;;  %v3492_v38 = vld [vmem:[%s4798_s0 + $0x38] sm:$0xff]  ;;  %v879_v39 = vld [vmem:[%s4799_s1 + $0x80] sm:$0xff]  ;;  %v3529_v42 = vld [vmem:[%s4798_s0 + $0x48] sm:$0xff] }
  0x14   :  { %2714 = vmatprep.subr.mxu0 %v888_v20  ;;  %v863_v40 = vld [vmem:[%s4799_s1] sm:$0xff]  ;;  %v3538_v43 = vld [vmem:[%s4798_s0 + $0x50] sm:$0xff]  ;;  %v3583_v44 = vld [vmem:[%s4798_s0 + $0x58] sm:$0xff] }
  0x15   :  { %2715 = vmatpush3.msra.mxu0 %v872_v21  ;;  %v3516_v41 = vld [vmem:[%s4798_s0 + $0x40] sm:$0xff]  ;;  %v3629_v52 = vld [vmem:[%s4798_s0 + $0x68] sm:$0xff]  ;;  %v3640_v55 = vld [vmem:[%s4798_s0 + $0x70] sm:$0xff] }
  0x16   :  { %123 = vrot.lane.b32.xlu0 %v3326_v4, %s3206_s9  ;;  %99 = vrot.lane.b32.xlu1 %v3360_v8, %s3206_s9  ;;  %v3606_v47 = vld [vmem:[%s4798_s0 + $0x60] sm:$0xff] }
  0x17   :  { %2716 = vmatprep.subr.mxu0 %v887_v22 }
  0x18   :  { %2717 = vmatpush3.msra.mxu0 %v871_v23 }
  0x19   :  { %2718 = vmatprep.subr.mxu0 %v886_v24 }
  0x1a   :  { %129 = vrot.lane.b32.xlu0 %v3365_v9, %s3207_s18  ;;  %105 = vrot.lane.b32.xlu1 %v3383_v13, %s3207_s18 }
  0x1b   :  { %2719 = vmatpush3.msra.mxu0 %v870_v25 }
  0x1c   :  { %2720 = vmatprep.subr.mxu0 %v885_v26  ;;  %v3735_v26 = vld [vmem:[%s4798_s0 + $0x78] sm:$0xff] }
  0x1d   :  { %2721 = vmatpush3.msra.mxu0 %v869_v27 }
  0x1e   :  { %154 = vrot.lane.b32.xlu0 %v3255_v0, %s3203_s26  ;;  %160 = vrot.lane.b32.xlu1 %v3321_v3, %s3200_s28 }
  0x1f   :  { %2722 = vmatprep.subr.mxu0 %v884_v28 }
  0x20   :  { %2723 = vmatpush3.msra.mxu0 %v868_v29 }
  0x21   :  { %2724 = vmatprep.subr.mxu0 %v883_v30  ;;  %v3746_v30 = vld [vmem:[%s4798_s0 + $0x80] sm:$0xff] }
  0x22   :  { %136 = vrot.lane.b32.xlu0 %v3260_v1, %s3200_s28  ;;  %166 = vrot.lane.b32.xlu1 %v3326_v4, %s3201_s29 }
  0x23   :  { %2725 = vmatpush3.msra.mxu0 %v867_v31 }
  0x24   :  { %2726 = vmatprep.subr.mxu0 %v882_v32 }
  0x25   :  { %2727 = vmatpush3.msra.mxu0 %v866_v33  ;;  %v3757_v33 = vld [vmem:[%s4798_s0 + $0x88] sm:$0xff] }
  0x26   :  { %142 = vrot.lane.b32.xlu0 %v3360_v8, %s3201_s29  ;;  %172 = vrot.lane.b32.xlu1 %v3365_v9, %s3202_s15 }
  0x27   :  { %2728 = vmatprep.subr.mxu0 %v881_v34 }
  0x28   :  { %2729 = vmatpush3.msra.mxu0 %v865_v35 }
  0x29   :  { %2730 = vmatprep.subr.mxu0 %v880_v36 }
  0x2a   :  { %148 = vrot.lane.b32.xlu0 %v3383_v13, %s3202_s15  ;;  %197 = vrot.lane.b32.xlu1 %v3255_v0, %s3207_s18 }
  0x2b   :  { %2731 = vmatpush3.msra.mxu0 %v864_v37 }
  0x2c   :  { %2732 = vmatprep.subr.mxu0 %v879_v39 }
  0x2d   :  { %2733 = vmatpush3.msra.mxu0 %v863_v40 }
  0x2e   :  { %203 = vrot.lane.b32.xlu0 %v3321_v3, %s3204_s14  ;;  %251 = vrot.lane.b32.xlu1 %v3492_v38, %s3200_s28 }
  0x2f   :  { %2996 = vmatprep.subr.mxu0 %v3199_v2 }
  0x32   :  { %179 = vrot.lane.b32.xlu0 %v3260_v1, %s3204_s14  ;;  %209 = vrot.lane.b32.xlu1 %v3326_v4, %s3205_s22 }
  0x36   :  { %222 = vrot.lane.b32.xlu0 %v3255_v0, %s3200_s28  ;;  %185 = vrot.lane.b32.xlu1 %v3360_v8, %s3205_s22 }
  0x3a   :  { %215 = vrot.lane.b32.xlu0 %v3365_v9, %s3206_s9  ;;  %259 = vrot.lane.b32.xlu1 %v3516_v41, %s3201_s29 }
  0x3e   :  { %191 = vrot.lane.b32.xlu0 %v3383_v13, %s3206_s9  ;;  %229 = vrot.lane.b32.xlu1 %v3321_v3, %s3201_s29 }
  0x42   :  { %267 = vrot.lane.b32.xlu0 %v3529_v42, %s3202_s15  ;;  %236 = vrot.lane.b32.xlu1 %v3326_v4, %s3202_s15 }
  0x46   :  { %275 = vrot.lane.b32.xlu0 %v3538_v43, %s3203_s26  ;;  %243 = vrot.lane.b32.xlu1 %v3365_v9, %s3203_s26 }
  0x4a   :  { %305 = vrot.lane.b32.xlu0 %v3492_v38, %s3204_s14  ;;  %281 = vrot.lane.b32.xlu1 %v3255_v0, %s3204_s14 }
  0x4e   :  { %311 = vrot.lane.b32.xlu0 %v3516_v41, %s3205_s22  ;;  %287 = vrot.lane.b32.xlu1 %v3321_v3, %s3205_s22 }
  0x52   :  { %317 = vrot.lane.b32.xlu0 %v3529_v42, %s3206_s9  ;;  %293 = vrot.lane.b32.xlu1 %v3326_v4, %s3206_s9 }
  0x56   :  { %323 = vrot.lane.b32.xlu0 %v3538_v43, %s3207_s18  ;;  %299 = vrot.lane.b32.xlu1 %v3365_v9, %s3207_s18 }
  0x5a   :  { %353 = vrot.lane.b32.xlu0 %v3492_v38, %s3203_s26  ;;  %329 = vrot.lane.b32.xlu1 %v3255_v0, %s3203_s26 }
  0x5e   :  { %359 = vrot.lane.b32.xlu0 %v3516_v41, %s3200_s28  ;;  %335 = vrot.lane.b32.xlu1 %v3321_v3, %s3200_s28 }
  0x62   :  { %365 = vrot.lane.b32.xlu0 %v3529_v42, %s3201_s29  ;;  %341 = vrot.lane.b32.xlu1 %v3326_v4, %s3201_s29 }
  0x66   :  { %371 = vrot.lane.b32.xlu0 %v3538_v43, %s3202_s15  ;;  %347 = vrot.lane.b32.xlu1 %v3365_v9, %s3202_s15 }
  0x6a   :  { %401 = vrot.lane.b32.xlu0 %v3492_v38, %s3207_s18  ;;  %377 = vrot.lane.b32.xlu1 %v3255_v0, %s3207_s18 }
  0x6e   :  { %407 = vrot.lane.b32.xlu0 %v3516_v41, %s3204_s14  ;;  %455 = vrot.lane.b32.xlu1 %v3583_v44, %s3200_s28 }
  0x72   :  { %383 = vrot.lane.b32.xlu0 %v3321_v3, %s3204_s14  ;;  %413 = vrot.lane.b32.xlu1 %v3529_v42, %s3205_s22 }
  0x74   :  { %v62_v45 = vpop.permute.xlu0 %61  ;;  %v33_v46 = vpop.permute.xlu1 %32 }
  0x75   :  { %65 = vst.msk [vmem:[#allocation2 + $0x8] sm:$0xff] %vm64_vm4, %v62_v45 }
  0x76   :  { %36 = vst.msk [vmem:[#allocation2] sm:$0xff] %vm35_vm5, %v33_v46  ;;  %426 = vrot.lane.b32.xlu0 %v3492_v38, %s3200_s28  ;;  %389 = vrot.lane.b32.xlu1 %v3326_v4, %s3205_s22 }
  0x77   :  { %66 = vst.msk [vmem:[#allocation2 + $0x8] sm:$0xff] %vm28_vm1, %v3199_v2 }
  0x78   :  { %38 = vst.msk [vmem:[#allocation2] sm:$0xff] %vm37_vm2, %v3199_v2  ;;  %v71_v48 = vpop.permute.xlu0 %70  ;;  %v79_v49 = vpop.permute.xlu1 %78 }
  0x79   :  { %73 = vst.msk [vmem:[#allocation2 + $0x8] sm:$0xff] %vm35_vm5, %v71_v48 }
  0x7a   :  { %74 = vst.msk [vmem:[#allocation2 + $0x8] sm:$0xff] %vm37_vm2, %v3199_v2  ;;  %419 = vrot.lane.b32.xlu0 %v3538_v43, %s3206_s9  ;;  %463 = vrot.lane.b32.xlu1 %v3606_v47, %s3201_s29 }
  0x7b   :  { %81 = vst.msk [vmem:[#allocation2 + $0x8] sm:$0xff] %vm45_vm6, %v79_v49 }
  0x7c   :  { %v43_v50 = vpop.permute.xlu0 %42  ;;  %82 = vst.msk [vmem:[#allocation2 + $0x8] sm:$0xff] %vm47_vm3, %v3199_v2  ;;  %v87_v51 = vpop.permute.xlu1 %86 }
  0x7d   :  { %46 = vst.msk [vmem:[#allocation2] sm:$0xff] %vm45_vm6, %v43_v50 }
  0x7e   :  { %89 = vst.msk [vmem:[#allocation2 + $0x8] sm:$0xff] %vm55_vm7, %v87_v51  ;;  %395 = vrot.lane.b32.xlu0 %v3365_v9, %s3206_s9  ;;  %433 = vrot.lane.b32.xlu1 %v3516_v41, %s3201_s29 }
  0x7f   :  { %48 = vst.msk [vmem:[#allocation2] sm:$0xff] %vm47_vm3, %v3199_v2 }
  0x80   :  { %v53_v53 = vpop.permute.xlu0 %52  ;;  %v112_v54 = vpop.permute.xlu1 %111 }
  0x81   :  { %56 = vst.msk [vmem:[#allocation2] sm:$0xff] %vm55_vm7, %v53_v53 }
  0x82   :  { %114 = vst.msk [vmem:[#allocation2 + $0x18] sm:$0xff] %vm26_vm0, %v112_v54  ;;  %471 = vrot.lane.b32.xlu0 %v3629_v52, %s3202_s15  ;;  %440 = vrot.lane.b32.xlu1 %v3529_v42, %s3202_s15 }
  0x84   :  { %v118_v56 = vpop.permute.xlu0 %117  ;;  %v94_v57 = vpop.permute.xlu1 %93 }
  0x85   :  { %v832_v58 = vld [vmem:[#allocation2 + $0x8] sm:$0xff]  ;;  %120 = vst.msk [vmem:[#allocation2 + $0x18] sm:$0xff] %vm28_vm1, %v118_v56  ;;  %96 = vst.msk [vmem:[#allocation2 + $0x10] sm:$0xff] %vm28_vm1, %v94_v57 }
  0x86   :  { %966 = vmatprep.mubr.f32.mxu0 %v832_v58  ;;  %479 = vrot.lane.b32.xlu0 %v3640_v55, %s3203_s26 }
  0x87   :  { %447 = vrot.lane.b32.xlu1 %v3538_v43, %s3203_s26 }
  0x88   :  { %v124_v59 = vpop.permute.xlu0 %123  ;;  %v831_v60 = vld [vmem:[#allocation2] sm:$0xff]  ;;  %v100_v61 = vpop.permute.xlu1 %99 }
  0x89   :  { %126 = vst.msk [vmem:[#allocation2 + $0x18] sm:$0xff] %vm37_vm2, %v124_v59  ;;  %967 = vmatmul.mubr.f32.vlgmr.msra.gmra.mxu0 %v831_v60  ;;  %102 = vst.msk [vmem:[#allocation2 + $0x10] sm:$0xff] %vm37_vm2, %v100_v61 }
  0x8a   :  { %509 = vrot.lane.b32.xlu0 %v3583_v44, %s3204_s14 }
  0x8b   :  { %485 = vrot.lane.b32.xlu1 %v3492_v38, %s3204_s14 }
  0x8c   :  { %v130_v62 = vpop.permute.xlu0 %129  ;;  %v106_v63 = vpop.permute.xlu1 %105 }
  0x8d   :  { %132 = vst.msk [vmem:[#allocation2 + $0x18] sm:$0xff] %vm47_vm3, %v130_v62  ;;  %108 = vst.msk [vmem:[#allocation2 + $0x10] sm:$0xff] %vm47_vm3, %v106_v63 }
  0x8e   :  { %515 = vrot.lane.b32.xlu0 %v3606_v47, %s3205_s22 }
  0x8f   :  { %491 = vrot.lane.b32.xlu1 %v3516_v41, %s3205_s22 }
  0x90   :  { %v155_v0 = vpop.permute.xlu0 %154  ;;  %v161_v1 = vpop.permute.xlu1 %160 }
  0x91   :  { %157 = vst.msk [vmem:[#allocation2 + $0x28] sm:$0xff] %vm26_vm0, %v155_v0 }
  0x92   :  { %163 = vst.msk [vmem:[#allocation2 + $0x28] sm:$0xff] %vm28_vm1, %v161_v1  ;;  %521 = vrot.lane.b32.xlu0 %v3629_v52, %s3206_s9 }
  0x93   :  { %497 = vrot.lane.b32.xlu1 %v3529_v42, %s3206_s9 }
  0x94   :  { %v137_v3 = vpop.permute.xlu0 %136  ;;  %v834_v4 = vld [vmem:[#allocation2 + $0x18] sm:$0xff]  ;;  %v167_v5 = vpop.permute.xlu1 %166  ;;  %v833_v6 = vld [vmem:[#allocation2 + $0x10] sm:$0xff] }
  0x95   :  { %139 = vst.msk [vmem:[#allocation2 + $0x20] sm:$0xff] %vm28_vm1, %v137_v3  ;;  %971 = vmatprep.mubr.f32.mxu0 %v834_v4 }
  0x96   :  { %169 = vst.msk [vmem:[#allocation2 + $0x28] sm:$0xff] %vm37_vm2, %v167_v5  ;;  %527 = vrot.lane.b32.xlu0 %v3640_v55, %s3207_s18  ;;  %972 = vmatmul.mubr.f32.gmra.mxu0 %v833_v6 }
  0x97   :  { %503 = vrot.lane.b32.xlu1 %v3538_v43, %s3207_s18 }
  0x98   :  { %v143_v7 = vpop.permute.xlu0 %142  ;;  %v173_v8 = vpop.permute.xlu1 %172 }
  0x99   :  { %145 = vst.msk [vmem:[#allocation2 + $0x20] sm:$0xff] %vm37_vm2, %v143_v7 }
  0x9a   :  { %175 = vst.msk [vmem:[#allocation2 + $0x28] sm:$0xff] %vm47_vm3, %v173_v8  ;;  %557 = vrot.lane.b32.xlu0 %v3583_v44, %s3203_s26 }
  0x9b   :  { %533 = vrot.lane.b32.xlu1 %v3492_v38, %s3203_s26 }
  0x9c   :  { %v149_v9 = vpop.permute.xlu0 %148  ;;  %v198_v10 = vpop.permute.xlu1 %197 }
  0x9d   :  { %151 = vst.msk [vmem:[#allocation2 + $0x20] sm:$0xff] %vm47_vm3, %v149_v9 }
  0x9e   :  { %200 = vst.msk [vmem:[#allocation2 + $0x38] sm:$0xff] %vm26_vm0, %v198_v10  ;;  %563 = vrot.lane.b32.xlu0 %v3606_v47, %s3200_s28 }
  0x9f   :  { %539 = vrot.lane.b32.xlu1 %v3516_v41, %s3200_s28 }
  0xa0   :  { %v204_v11 = vpop.permute.xlu0 %203  ;;  %v252_v12 = vpop.permute.xlu1 %251 }
  0xa1   :  { %v836_v13 = vld [vmem:[#allocation2 + $0x28] sm:$0xff]  ;;  %206 = vst.msk [vmem:[#allocation2 + $0x38] sm:$0xff] %vm28_vm1, %v204_v11 }
  0xa2   :  { %254 = vst.msk [vmem:[#allocation2 + $0x48] sm:$0xff] %vm64_vm4, %v252_v12  ;;  %976 = vmatprep.mubr.f32.mxu0 %v836_v13  ;;  %569 = vrot.lane.b32.xlu0 %v3629_v52, %s3201_s29 }
  0xa3   :  { %255 = vst.msk [vmem:[#allocation2 + $0x48] sm:$0xff] %vm28_vm1, %v3199_v2  ;;  %545 = vrot.lane.b32.xlu1 %v3529_v42, %s3201_s29 }
  0xa4   :  { %v180_v14 = vpop.permute.xlu0 %179  ;;  %v835_v15 = vld [vmem:[#allocation2 + $0x20] sm:$0xff]  ;;  %v210_v16 = vpop.permute.xlu1 %209 }
  0xa5   :  { %182 = vst.msk [vmem:[#allocation2 + $0x30] sm:$0xff] %vm28_vm1, %v180_v14  ;;  %977 = vmatmul.mubr.f32.gmra.mxu0 %v835_v15 }
  0xa6   :  { %212 = vst.msk [vmem:[#allocation2 + $0x38] sm:$0xff] %vm37_vm2, %v210_v16  ;;  %575 = vrot.lane.b32.xlu0 %v3640_v55, %s3202_s15 }
  0xa7   :  { %551 = vrot.lane.b32.xlu1 %v3538_v43, %s3202_s15 }
  0xa8   :  { %v223_v17 = vpop.permute.xlu0 %222  ;;  %v186_v18 = vpop.permute.xlu1 %185 }
  0xa9   :  { %225 = vst.msk [vmem:[#allocation2 + $0x40] sm:$0xff] %vm64_vm4, %v223_v17 }
  0xaa   :  { %188 = vst.msk [vmem:[#allocation2 + $0x30] sm:$0xff] %vm37_vm2, %v186_v18  ;;  %605 = vrot.lane.b32.xlu0 %v3583_v44, %s3207_s18 }
  0xab   :  { %226 = vst.msk [vmem:[#allocation2 + $0x40] sm:$0xff] %vm28_vm1, %v3199_v2  ;;  %581 = vrot.lane.b32.xlu1 %v3492_v38, %s3207_s18  ;;  %v3768_v38 = vld [vmem:[%s4798_s0 + $0x90] sm:$0xff] }
  0xac   :  { %v216_v19 = vpop.permute.xlu0 %215  ;;  %v260_v20 = vpop.permute.xlu1 %259 }
  0xad   :  { %218 = vst.msk [vmem:[#allocation2 + $0x38] sm:$0xff] %vm47_vm3, %v216_v19 }
  0xae   :  { %262 = vst.msk [vmem:[#allocation2 + $0x48] sm:$0xff] %vm35_vm5, %v260_v20  ;;  %611 = vrot.lane.b32.xlu0 %v3606_v47, %s3204_s14 }
  0xaf   :  { %263 = vst.msk [vmem:[#allocation2 + $0x48] sm:$0xff] %vm37_vm2, %v3199_v2  ;;  %587 = vrot.lane.b32.xlu1 %v3516_v41, %s3204_s14 }
  0xb0   :  { %v192_v21 = vpop.permute.xlu0 %191  ;;  %v230_v22 = vpop.permute.xlu1 %229 }
  0xb1   :  { %194 = vst.msk [vmem:[#allocation2 + $0x30] sm:$0xff] %vm47_vm3, %v192_v21 }
  0xb2   :  { %232 = vst.msk [vmem:[#allocation2 + $0x40] sm:$0xff] %vm35_vm5, %v230_v22  ;;  %617 = vrot.lane.b32.xlu0 %v3629_v52, %s3205_s22 }
  0xb3   :  { %233 = vst.msk [vmem:[#allocation2 + $0x40] sm:$0xff] %vm37_vm2, %v3199_v2  ;;  %593 = vrot.lane.b32.xlu1 %v3529_v42, %s3205_s22 }
  0xb4   :  { %v268_v23 = vpop.permute.xlu0 %267  ;;  %v838_v24 = vld [vmem:[#allocation2 + $0x38] sm:$0xff]  ;;  %v237_v25 = vpop.permute.xlu1 %236 }
  0xb5   :  { %270 = vst.msk [vmem:[#allocation2 + $0x48] sm:$0xff] %vm45_vm6, %v268_v23  ;;  %981 = vmatprep.mubr.f32.mxu0 %v838_v24  ;;  %239 = vst.msk [vmem:[#allocation2 + $0x40] sm:$0xff] %vm45_vm6, %v237_v25 }
  0xb6   :  { %271 = vst.msk [vmem:[#allocation2 + $0x48] sm:$0xff] %vm47_vm3, %v3199_v2  ;;  %240 = vst.msk [vmem:[#allocation2 + $0x40] sm:$0xff] %vm47_vm3, %v3199_v2  ;;  %623 = vrot.lane.b32.xlu0 %v3640_v55, %s3206_s9 }
  0xb7   :  { %599 = vrot.lane.b32.xlu1 %v3538_v43, %s3206_s9 }
  0xb8   :  { %v276_v27 = vpop.permute.xlu0 %275  ;;  %v837_v28 = vld [vmem:[#allocation2 + $0x30] sm:$0xff]  ;;  %v244_v29 = vpop.permute.xlu1 %243 }
  0xb9   :  { %278 = vst.msk [vmem:[#allocation2 + $0x48] sm:$0xff] %vm55_vm7, %v276_v27  ;;  %982 = vmatmul.mubr.f32.gmra.mxu0 %v837_v28  ;;  %246 = vst.msk [vmem:[#allocation2 + $0x40] sm:$0xff] %vm55_vm7, %v244_v29 }
  0xba   :  { %659 = vrot.lane.b32.xlu0 %v3735_v26, %s3200_s28 }
  0xbb   :  { %630 = vrot.lane.b32.xlu1 %v3583_v44, %s3200_s28 }
  0xbc   :  { %v306_v31 = vpop.permute.xlu0 %305  ;;  %v282_v32 = vpop.permute.xlu1 %281 }
  0xbd   :  { %308 = vst.msk [vmem:[#allocation2 + $0x58] sm:$0xff] %vm26_vm0, %v306_v31  ;;  %284 = vst.msk [vmem:[#allocation2 + $0x50] sm:$0xff] %vm26_vm0, %v282_v32 }
  0xbe   :  { %667 = vrot.lane.b32.xlu0 %v3746_v30, %s3201_s29 }
  0xbf   :  { %637 = vrot.lane.b32.xlu1 %v3606_v47, %s3201_s29 }
  0xc0   :  { %v312_v34 = vpop.permute.xlu0 %311  ;;  %v840_v35 = vld [vmem:[#allocation2 + $0x48] sm:$0xff]  ;;  %v288_v36 = vpop.permute.xlu1 %287  ;;  %v839_v37 = vld [vmem:[#allocation2 + $0x40] sm:$0xff] }
  0xc1   :  { %314 = vst.msk [vmem:[#allocation2 + $0x58] sm:$0xff] %vm28_vm1, %v312_v34  ;;  %986 = vmatprep.mubr.f32.mxu0 %v840_v35  ;;  %290 = vst.msk [vmem:[#allocation2 + $0x50] sm:$0xff] %vm28_vm1, %v288_v36 }
  0xc2   :  { %675 = vrot.lane.b32.xlu0 %v3757_v33, %s3202_s15  ;;  %987 = vmatmul.mubr.f32.gmra.mxu0 %v839_v37 }
  0xc3   :  { %644 = vrot.lane.b32.xlu1 %v3629_v52, %s3202_s15 }
  0xc4   :  { %v318_v39 = vpop.permute.xlu0 %317  ;;  %v294_v40 = vpop.permute.xlu1 %293 }
  0xc5   :  { %320 = vst.msk [vmem:[#allocation2 + $0x58] sm:$0xff] %vm37_vm2, %v318_v39  ;;  %296 = vst.msk [vmem:[#allocation2 + $0x50] sm:$0xff] %vm37_vm2, %v294_v40 }
  0xc6   :  { %683 = vrot.lane.b32.xlu0 %v3768_v38, %s3203_s26 }
  0xc7   :  { %651 = vrot.lane.b32.xlu1 %v3640_v55, %s3203_s26 }
  0xc8   :  { %v324_v41 = vpop.permute.xlu0 %323  ;;  %v300_v42 = vpop.permute.xlu1 %299 }
  0xc9   :  { %326 = vst.msk [vmem:[#allocation2 + $0x58] sm:$0xff] %vm47_vm3, %v324_v41  ;;  %302 = vst.msk [vmem:[#allocation2 + $0x50] sm:$0xff] %vm47_vm3, %v300_v42 }
  0xca   :  { %713 = vrot.lane.b32.xlu0 %v3735_v26, %s3204_s14 }
  0xcb   :  { %689 = vrot.lane.b32.xlu1 %v3583_v44, %s3204_s14 }
  0xcc   :  { %v354_v43 = vpop.permute.xlu0 %353  ;;  %v330_v45 = vpop.permute.xlu1 %329 }
  0xcd   :  { %356 = vst.msk [vmem:[#allocation2 + $0x68] sm:$0xff] %vm26_vm0, %v354_v43  ;;  %332 = vst.msk [vmem:[#allocation2 + $0x60] sm:$0xff] %vm26_vm0, %v330_v45 }
  0xce   :  { %719 = vrot.lane.b32.xlu0 %v3746_v30, %s3205_s22 }
  0xcf   :  { %695 = vrot.lane.b32.xlu1 %v3606_v47, %s3205_s22 }
  0xd0   :  { %v360_v46 = vpop.permute.xlu0 %359  ;;  %v842_v48 = vld [vmem:[#allocation2 + $0x58] sm:$0xff]  ;;  %v336_v49 = vpop.permute.xlu1 %335  ;;  %v841_v50 = vld [vmem:[#allocation2 + $0x50] sm:$0xff] }
  0xd1   :  { %362 = vst.msk [vmem:[#allocation2 + $0x68] sm:$0xff] %vm28_vm1, %v360_v46  ;;  %991 = vmatprep.mubr.f32.mxu0 %v842_v48  ;;  %338 = vst.msk [vmem:[#allocation2 + $0x60] sm:$0xff] %vm28_vm1, %v336_v49 }
  0xd2   :  { %725 = vrot.lane.b32.xlu0 %v3757_v33, %s3206_s9  ;;  %992 = vmatmul.mubr.f32.gmra.mxu0 %v841_v50 }
  0xd3   :  { %701 = vrot.lane.b32.xlu1 %v3629_v52, %s3206_s9 }
  0xd4   :  { %v366_v51 = vpop.permute.xlu0 %365  ;;  %v342_v53 = vpop.permute.xlu1 %341 }
  0xd5   :  { %368 = vst.msk [vmem:[#allocation2 + $0x68] sm:$0xff] %vm37_vm2, %v366_v51  ;;  %344 = vst.msk [vmem:[#allocation2 + $0x60] sm:$0xff] %vm37_vm2, %v342_v53 }
  0xd6   :  { %731 = vrot.lane.b32.xlu0 %v3768_v38, %s3207_s18 }
  0xd7   :  { %707 = vrot.lane.b32.xlu1 %v3640_v55, %s3207_s18 }
  0xd8   :  { %v372_v54 = vpop.permute.xlu0 %371  ;;  %v348_v56 = vpop.permute.xlu1 %347 }
  0xd9   :  { %374 = vst.msk [vmem:[#allocation2 + $0x68] sm:$0xff] %vm47_vm3, %v372_v54  ;;  %350 = vst.msk [vmem:[#allocation2 + $0x60] sm:$0xff] %vm47_vm3, %v348_v56 }
  0xda   :  { %761 = vrot.lane.b32.xlu0 %v3735_v26, %s3203_s26 }
  0xdb   :  { %737 = vrot.lane.b32.xlu1 %v3583_v44, %s3203_s26 }
  0xdc   :  { %v402_v57 = vpop.permute.xlu0 %401  ;;  %v378_v58 = vpop.permute.xlu1 %377 }
  0xdd   :  { %404 = vst.msk [vmem:[#allocation2 + $0x78] sm:$0xff] %vm26_vm0, %v402_v57  ;;  %380 = vst.msk [vmem:[#allocation2 + $0x70] sm:$0xff] %vm26_vm0, %v378_v58 }
  0xde   :  { %767 = vrot.lane.b32.xlu0 %v3746_v30, %s3200_s28 }
  0xdf   :  { %743 = vrot.lane.b32.xlu1 %v3606_v47, %s3200_s28 }
  0xe0   :  { %v408_v59 = vpop.permute.xlu0 %407  ;;  %v844_v60 = vld [vmem:[#allocation2 + $0x68] sm:$0xff]  ;;  %v456_v61 = vpop.permute.xlu1 %455  ;;  %v843_v62 = vld [vmem:[#allocation2 + $0x60] sm:$0xff] }
  0xe1   :  { %410 = vst.msk [vmem:[#allocation2 + $0x78] sm:$0xff] %vm28_vm1, %v408_v59  ;;  %996 = vmatprep.mubr.f32.mxu0 %v844_v60 }
  0xe2   :  { %458 = vst.msk [vmem:[#allocation2 + $0x88] sm:$0xff] %vm64_vm4, %v456_v61  ;;  %773 = vrot.lane.b32.xlu0 %v3757_v33, %s3201_s29  ;;  %997 = vmatmul.mubr.f32.gmra.mxu0 %v843_v62 }
  0xe3   :  { %459 = vst.msk [vmem:[#allocation2 + $0x88] sm:$0xff] %vm28_vm1, %v3199_v2  ;;  %749 = vrot.lane.b32.xlu1 %v3629_v52, %s3201_s29  ;;  %s3209_s29 = smov 64  }
  0xe4   :  { %v384_v63 = vpop.permute.xlu0 %383  ;;  %v414_v0 = vpop.permute.xlu1 %413 }
  0xe5   :  { %386 = vst.msk [vmem:[#allocation2 + $0x70] sm:$0xff] %vm28_vm1, %v384_v63 }
  0xe6   :  { %416 = vst.msk [vmem:[#allocation2 + $0x78] sm:$0xff] %vm37_vm2, %v414_v0  ;;  %779 = vrot.lane.b32.xlu0 %v3768_v38, %s3202_s15 }
  0xe7   :  { %755 = vrot.lane.b32.xlu1 %v3640_v55, %s3202_s15  ;;  %s3210_s15 = smov 96  }
  0xe8   :  { %v427_v1 = vpop.permute.xlu0 %426  ;;  %v390_v3 = vpop.permute.xlu1 %389 }
  0xe9   :  { %429 = vst.msk [vmem:[#allocation2 + $0x80] sm:$0xff] %vm64_vm4, %v427_v1  ;;  %v3917_v1 = vld [vmem:[%s4800_s2] ss:$0 sm:$0xff]  ;;  %s3208_s2 = smov 32  }
  0xea   :  { %392 = vst.msk [vmem:[#allocation2 + $0x70] sm:$0xff] %vm37_vm2, %v390_v3  ;;  %809 = vrot.lane.b32.xlu0 %v3735_v26, %s3207_s18 }
  0xeb   :  { %430 = vst.msk [vmem:[#allocation2 + $0x80] sm:$0xff] %vm28_vm1, %v3199_v2  ;;  %785 = vrot.lane.b32.xlu1 %v3583_v44, %s3207_s18 }
  0xec   :  { %v420_v4 = vpop.permute.xlu0 %419  ;;  %v464_v5 = vpop.permute.xlu1 %463 }
  0xed   :  { %422 = vst.msk [vmem:[#allocation2 + $0x78] sm:$0xff] %vm47_vm3, %v420_v4 }
  0xee   :  { %466 = vst.msk [vmem:[#allocation2 + $0x88] sm:$0xff] %vm35_vm5, %v464_v5  ;;  %815 = vrot.lane.b32.xlu0 %v3746_v30, %s3204_s14 }
  0xef   :  { %467 = vst.msk [vmem:[#allocation2 + $0x88] sm:$0xff] %vm37_vm2, %v3199_v2  ;;  %791 = vrot.lane.b32.xlu1 %v3606_v47, %s3204_s14 }
  0xf0   :  { %v396_v6 = vpop.permute.xlu0 %395  ;;  %v434_v7 = vpop.permute.xlu1 %433 }
  0xf1   :  { %398 = vst.msk [vmem:[#allocation2 + $0x70] sm:$0xff] %vm47_vm3, %v396_v6 }
  0xf2   :  { %436 = vst.msk [vmem:[#allocation2 + $0x80] sm:$0xff] %vm35_vm5, %v434_v7  ;;  %821 = vrot.lane.b32.xlu0 %v3757_v33, %s3205_s22 }
  0xf3   :  { %437 = vst.msk [vmem:[#allocation2 + $0x80] sm:$0xff] %vm37_vm2, %v3199_v2  ;;  %797 = vrot.lane.b32.xlu1 %v3629_v52, %s3205_s22 }
  0xf4   :  { %v472_v44 = vpop.permute.xlu0 %471  ;;  %v846_v8 = vld [vmem:[#allocation2 + $0x78] sm:$0xff]  ;;  %v441_v9 = vpop.permute.xlu1 %440 }
  0xf5   :  { %474 = vst.msk [vmem:[#allocation2 + $0x88] sm:$0xff] %vm45_vm6, %v472_v44  ;;  %1001 = vmatprep.mubr.f32.mxu0 %v846_v8  ;;  %443 = vst.msk [vmem:[#allocation2 + $0x80] sm:$0xff] %vm45_vm6, %v441_v9 }
  0xf6   :  { %475 = vst.msk [vmem:[#allocation2 + $0x88] sm:$0xff] %vm47_vm3, %v3199_v2  ;;  %444 = vst.msk [vmem:[#allocation2 + $0x80] sm:$0xff] %vm47_vm3, %v3199_v2  ;;  %827 = vrot.lane.b32.xlu0 %v3768_v38, %s3206_s9 }
  0xf7   :  { %803 = vrot.lane.b32.xlu1 %v3640_v55, %s3206_s9 }
  0xf8   :  { %v480_v47 = vpop.permute.xlu0 %479  ;;  %v845_v52 = vld [vmem:[#allocation2 + $0x70] sm:$0xff] }
  0xf9   :  { %v448_v10 = vpop.permute.xlu1 %447  ;;  %482 = vst.msk [vmem:[#allocation2 + $0x88] sm:$0xff] %vm55_vm7, %v480_v47  ;;  %1002 = vmatmul.mubr.f32.gmra.mxu0 %v845_v52 }
  0xfa   :  { %450 = vst.msk [vmem:[#allocation2 + $0x80] sm:$0xff] %vm55_vm7, %v448_v10 }
  0xfc   :  { %v510_v11 = vpop.permute.xlu0 %509 }
  0xfd   :  { %v486_v12 = vpop.permute.xlu1 %485  ;;  %512 = vst.msk [vmem:[#allocation2 + $0x98] sm:$0xff] %vm26_vm0, %v510_v11 }
  0xfe   :  { %488 = vst.msk [vmem:[#allocation2 + $0x90] sm:$0xff] %vm26_vm0, %v486_v12 }
 0x100   :  { %v516_v13 = vpop.permute.xlu0 %515  ;;  %v848_v14 = vld [vmem:[#allocation2 + $0x88] sm:$0xff] }
 0x101   :  { %v492_v15 = vpop.permute.xlu1 %491  ;;  %v847_v16 = vld [vmem:[#allocation2 + $0x80] sm:$0xff]  ;;  %518 = vst.msk [vmem:[#allocation2 + $0x98] sm:$0xff] %vm28_vm1, %v516_v13  ;;  %1006 = vmatprep.mubr.f32.mxu0 %v848_v14 }
 0x102   :  { %494 = vst.msk [vmem:[#allocation2 + $0x90] sm:$0xff] %vm28_vm1, %v492_v15  ;;  %1007 = vmatmul.mubr.f32.gmra.mxu0 %v847_v16 }
 0x104   :  { %v522_v55 = vpop.permute.xlu0 %521 }
 0x105   :  { %v498_v17 = vpop.permute.xlu1 %497  ;;  %524 = vst.msk [vmem:[#allocation2 + $0x98] sm:$0xff] %vm37_vm2, %v522_v55 }
 0x106   :  { %500 = vst.msk [vmem:[#allocation2 + $0x90] sm:$0xff] %vm37_vm2, %v498_v17 }
 0x108   :  { %v528_v18 = vpop.permute.xlu0 %527 }
 0x109   :  { %530 = vst.msk [vmem:[#allocation2 + $0x98] sm:$0xff] %vm47_vm3, %v528_v18  ;;  %v504_v19 = vpop.permute.xlu1 %503 }
 0x10a   :  { %506 = vst.msk [vmem:[#allocation2 + $0x90] sm:$0xff] %vm47_vm3, %v504_v19 }
 0x10c   :  { %v558_v20 = vpop.permute.xlu0 %557 }
 0x10d   :  { %560 = vst.msk [vmem:[#allocation2 + $0xa8] sm:$0xff] %vm26_vm0, %v558_v20  ;;  %v534_v21 = vpop.permute.xlu1 %533 }
 0x10e   :  { %536 = vst.msk [vmem:[#allocation2 + $0xa0] sm:$0xff] %vm26_vm0, %v534_v21 }
 0x110   :  { %v564_v22 = vpop.permute.xlu0 %563  ;;  %v850_v23 = vld [vmem:[#allocation2 + $0x98] sm:$0xff] }
 0x111   :  { %566 = vst.msk [vmem:[#allocation2 + $0xa8] sm:$0xff] %vm28_vm1, %v564_v22  ;;  %1011 = vmatprep.mubr.f32.mxu0 %v850_v23  ;;  %v540_v24 = vpop.permute.xlu1 %539  ;;  %v849_v25 = vld [vmem:[#allocation2 + $0x90] sm:$0xff] }
 0x112   :  { %542 = vst.msk [vmem:[#allocation2 + $0xa0] sm:$0xff] %vm28_vm1, %v540_v24  ;;  %1012 = vmatmul.mubr.f32.gmra.mxu0 %v849_v25 }
 0x114   :  { %v570_v26 = vpop.permute.xlu0 %569 }
 0x115   :  { %572 = vst.msk [vmem:[#allocation2 + $0xa8] sm:$0xff] %vm37_vm2, %v570_v26  ;;  %v546_v27 = vpop.permute.xlu1 %545 }
 0x116   :  { %548 = vst.msk [vmem:[#allocation2 + $0xa0] sm:$0xff] %vm37_vm2, %v546_v27 }
 0x118   :  { %v576_v28 = vpop.permute.xlu0 %575 }
 0x119   :  { %578 = vst.msk [vmem:[#allocation2 + $0xa8] sm:$0xff] %vm47_vm3, %v576_v28  ;;  %v552_v29 = vpop.permute.xlu1 %551 }
 0x11a   :  { %554 = vst.msk [vmem:[#allocation2 + $0xa0] sm:$0xff] %vm47_vm3, %v552_v29 }
 0x11c   :  { %v606_v30 = vpop.permute.xlu0 %605 }
 0x11d   :  { %608 = vst.msk [vmem:[#allocation2 + $0xb8] sm:$0xff] %vm26_vm0, %v606_v30  ;;  %v582_v31 = vpop.permute.xlu1 %581 }
 0x11e   :  { %584 = vst.msk [vmem:[#allocation2 + $0xb0] sm:$0xff] %vm26_vm0, %v582_v31 }
 0x120   :  { %v612_v32 = vpop.permute.xlu0 %611  ;;  %v852_v33 = vld [vmem:[#allocation2 + $0xa8] sm:$0xff] }
 0x121   :  { %614 = vst.msk [vmem:[#allocation2 + $0xb8] sm:$0xff] %vm28_vm1, %v612_v32  ;;  %1016 = vmatprep.mubr.f32.mxu0 %v852_v33  ;;  %v588_v34 = vpop.permute.xlu1 %587  ;;  %v851_v35 = vld [vmem:[#allocation2 + $0xa0] sm:$0xff] }
 0x122   :  { %590 = vst.msk [vmem:[#allocation2 + $0xb0] sm:$0xff] %vm28_vm1, %v588_v34  ;;  %1017 = vmatmul.mubr.f32.gmra.mxu0 %v851_v35 }
 0x124   :  { %v618_v36 = vpop.permute.xlu0 %617 }
 0x125   :  { %620 = vst.msk [vmem:[#allocation2 + $0xb8] sm:$0xff] %vm37_vm2, %v618_v36  ;;  %v594_v37 = vpop.permute.xlu1 %593 }
 0x126   :  { %596 = vst.msk [vmem:[#allocation2 + $0xb0] sm:$0xff] %vm37_vm2, %v594_v37 }
 0x128   :  { %v624_v38 = vpop.permute.xlu0 %623 }
 0x129   :  { %626 = vst.msk [vmem:[#allocation2 + $0xb8] sm:$0xff] %vm47_vm3, %v624_v38  ;;  %v600_v39 = vpop.permute.xlu1 %599 }
 0x12a   :  { %602 = vst.msk [vmem:[#allocation2 + $0xb0] sm:$0xff] %vm47_vm3, %v600_v39 }
 0x12c   :  { %v660_v40 = vpop.permute.xlu0 %659 }
 0x12d   :  { %662 = vst.msk [vmem:[#allocation2 + $0xc8] sm:$0xff] %vm64_vm4, %v660_v40  ;;  %v631_v41 = vpop.permute.xlu1 %630 }
 0x12e   :  { %663 = vst.msk [vmem:[#allocation2 + $0xc8] sm:$0xff] %vm28_vm1, %v3199_v2 }
 0x12f   :  { %633 = vst.msk [vmem:[#allocation2 + $0xc0] sm:$0xff] %vm64_vm4, %v631_v41 }
 0x130   :  { %634 = vst.msk [vmem:[#allocation2 + $0xc0] sm:$0xff] %vm28_vm1, %v3199_v2  ;;  %v668_v42 = vpop.permute.xlu0 %667  ;;  %v854_v43 = vld [vmem:[#allocation2 + $0xb8] sm:$0xff] }
 0x131   :  { %670 = vst.msk [vmem:[#allocation2 + $0xc8] sm:$0xff] %vm35_vm5, %v668_v42  ;;  %1021 = vmatprep.mubr.f32.mxu0 %v854_v43  ;;  %v638_v45 = vpop.permute.xlu1 %637  ;;  %v853_v46 = vld [vmem:[#allocation2 + $0xb0] sm:$0xff] }
 0x132   :  { %671 = vst.msk [vmem:[#allocation2 + $0xc8] sm:$0xff] %vm37_vm2, %v3199_v2  ;;  %1022 = vmatmul.mubr.f32.gmra.mxu0 %v853_v46 }
 0x133   :  { %640 = vst.msk [vmem:[#allocation2 + $0xc0] sm:$0xff] %vm35_vm5, %v638_v45 }
 0x134   :  { %641 = vst.msk [vmem:[#allocation2 + $0xc0] sm:$0xff] %vm37_vm2, %v3199_v2  ;;  %v676_v48 = vpop.permute.xlu0 %675 }
 0x135   :  { %678 = vst.msk [vmem:[#allocation2 + $0xc8] sm:$0xff] %vm45_vm6, %v676_v48  ;;  %v645_v49 = vpop.permute.xlu1 %644 }
 0x136   :  { %679 = vst.msk [vmem:[#allocation2 + $0xc8] sm:$0xff] %vm47_vm3, %v3199_v2 }
 0x137   :  { %647 = vst.msk [vmem:[#allocation2 + $0xc0] sm:$0xff] %vm45_vm6, %v645_v49 }
 0x138   :  { %648 = vst.msk [vmem:[#allocation2 + $0xc0] sm:$0xff] %vm47_vm3, %v3199_v2  ;;  %v684_v50 = vpop.permute.xlu0 %683 }
 0x139   :  { %686 = vst.msk [vmem:[#allocation2 + $0xc8] sm:$0xff] %vm55_vm7, %v684_v50  ;;  %v652_v51 = vpop.permute.xlu1 %651 }
 0x13a   :  { %654 = vst.msk [vmem:[#allocation2 + $0xc0] sm:$0xff] %vm55_vm7, %v652_v51 }
 0x13c   :  { %v714_v53 = vpop.permute.xlu0 %713 }
 0x13d   :  { %716 = vst.msk [vmem:[#allocation2 + $0xd8] sm:$0xff] %vm26_vm0, %v714_v53  ;;  %v690_v54 = vpop.permute.xlu1 %689 }
 0x13e   :  { %692 = vst.msk [vmem:[#allocation2 + $0xd0] sm:$0xff] %vm26_vm0, %v690_v54 }
 0x140   :  { %v720_v56 = vpop.permute.xlu0 %719  ;;  %v856_v57 = vld [vmem:[#allocation2 + $0xc8] sm:$0xff] }
 0x141   :  { %722 = vst.msk [vmem:[#allocation2 + $0xd8] sm:$0xff] %vm28_vm1, %v720_v56  ;;  %1026 = vmatprep.mubr.f32.mxu0 %v856_v57  ;;  %v696_v58 = vpop.permute.xlu1 %695  ;;  %v855_v59 = vld [vmem:[#allocation2 + $0xc0] sm:$0xff] }
 0x142   :  { %698 = vst.msk [vmem:[#allocation2 + $0xd0] sm:$0xff] %vm28_vm1, %v696_v58  ;;  %1027 = vmatmul.mubr.f32.gmra.mxu0 %v855_v59 }
 0x144   :  { %v726_v60 = vpop.permute.xlu0 %725 }
 0x145   :  { %728 = vst.msk [vmem:[#allocation2 + $0xd8] sm:$0xff] %vm37_vm2, %v726_v60  ;;  %v702_v61 = vpop.permute.xlu1 %701 }
 0x146   :  { %704 = vst.msk [vmem:[#allocation2 + $0xd0] sm:$0xff] %vm37_vm2, %v702_v61 }
 0x148   :  { %v732_v62 = vpop.permute.xlu0 %731 }
 0x149   :  { %734 = vst.msk [vmem:[#allocation2 + $0xd8] sm:$0xff] %vm47_vm3, %v732_v62  ;;  %v2734_v63 = vpop.f32.mrf.mxu0  ;;  %v708_v0 = vpop.permute.xlu1 %707 }
 0x14a   :  { %710 = vst.msk [vmem:[#allocation2 + $0xd0] sm:$0xff] %vm47_vm3, %v708_v0 }
 0x14b   :  { %v2735_v3 = vpop.f32.mrf.mxu0 }
 0x14c   :  { %v2736_v4 = vadd.f32 %v2735_v3, %v2734_v63  ;;  %v762_v5 = vpop.permute.xlu0 %761 }
 0x14d   :  { %764 = vst.msk [vmem:[#allocation2 + $0xe8] sm:$0xff] %vm26_vm0, %v762_v5  ;;  %v738_v6 = vpop.permute.xlu1 %737 }
 0x14e   :  { %v969_v7 = vadd.f32 %v2736_v4, %v3917_v1  ;;  %740 = vst.msk [vmem:[#allocation2 + $0xe0] sm:$0xff] %vm26_vm0, %v738_v6 }
 0x150   :  { %v1047_v44 = vmax.f32 %v969_v7, 0.0  ;;  %v768_v8 = vpop.permute.xlu0 %767  ;;  %v858_v9 = vld [vmem:[#allocation2 + $0xd8] sm:$0xff] }
 0x151   :  { %770 = vst.msk [vmem:[#allocation2 + $0xe8] sm:$0xff] %vm28_vm1, %v768_v8  ;;  %1031 = vmatprep.mubr.f32.mxu0 %v858_v9  ;;  %v744_v47 = vpop.permute.xlu1 %743  ;;  %v857_v52 = vld [vmem:[#allocation2 + $0xd0] sm:$0xff]  ;;  %v1346_v9 = vld [vmem:[%s4801_s3 + $0xf8] sm:$0xff] }
 0x152   :  { %1063 = vst.msk [vmem:[#allocation3] sm:$0xff] %vm26_vm0, %v1047_v44  ;;  %1032 = vmatmul.mubr.f32.gmra.mxu0 %v857_v52  ;;  %2782 = vmatprep.subr.mxu1 %v1346_v9  ;;  %v1330_v52 = vld [vmem:[%s4801_s3 + $0x78] sm:$0xff] }
 0x153   :  { %746 = vst.msk [vmem:[#allocation2 + $0xe0] sm:$0xff] %vm28_vm1, %v744_v47  ;;  %2783 = vmatpush3.msra.mxu1 %v1330_v52 }
 0x154   :  { %v774_v10 = vpop.permute.xlu0 %773 }
 0x155   :  { %776 = vst.msk [vmem:[#allocation2 + $0xe8] sm:$0xff] %vm37_vm2, %v774_v10  ;;  %v750_v11 = vpop.permute.xlu1 %749 }
 0x156   :  { %752 = vst.msk [vmem:[#allocation2 + $0xe0] sm:$0xff] %vm37_vm2, %v750_v11  ;;  %v2737_v12 = vpop.f32.mrf.mxu0  ;;  %v1345_v11 = vld [vmem:[%s4801_s3 + $0xf0] sm:$0xff] }
 0x157   :  { %2784 = vmatprep.subr.mxu1 %v1345_v11  ;;  %v1359_v11 = vld [vmem:[%s4801_s3 + $0x160] sm:$0xff] }
 0x158   :  { %v780_v13 = vpop.permute.xlu0 %779  ;;  %v2738_v14 = vpop.f32.mrf.mxu0 }
 0x159   :  { %782 = vst.msk [vmem:[#allocation2 + $0xe8] sm:$0xff] %vm47_vm3, %v780_v13  ;;  %v2739_v15 = vadd.f32 %v2738_v14, %v2737_v12  ;;  %v756_v16 = vpop.permute.xlu1 %755  ;;  %v1084_v55 = vld [vmem:[#allocation3] sm:$0xff]  ;;  %v1329_v12 = vld [vmem:[%s4801_s3 + $0x70] sm:$0xff]  ;;  %v1344_v13 = vld [vmem:[%s4801_s3 + $0xe8] sm:$0xff] }
 0x15a   :  { %758 = vst.msk [vmem:[#allocation2 + $0xe0] sm:$0xff] %vm47_vm3, %v756_v16  ;;  %1086 = vrot.lane.b32.xlu0 %v1084_v55, %s3208_s2  ;;  %v1328_v14 = vld [vmem:[%s4801_s3 + $0x68] sm:$0xff]  ;;  %2785 = vmatpush3.msra.mxu1 %v1329_v12 }
 0x15b   :  { %v974_v17 = vadd.f32 %v2739_v15, %v3917_v1  ;;  %2786 = vmatprep.subr.mxu1 %v1344_v13  ;;  %v1374_v13 = vld [vmem:[%s4801_s3 + $0x1d8] sm:$0xff] }
 0x15c   :  { %v810_v18 = vpop.permute.xlu0 %809  ;;  %2787 = vmatpush3.msra.mxu1 %v1328_v14  ;;  %v1358_v14 = vld [vmem:[%s4801_s3 + $0x158] sm:$0xff] }
 0x15d   :  { %v1048_v19 = vmax.f32 %v974_v17, 0.0  ;;  %812 = vst.msk [vmem:[#allocation2 + $0xf8] sm:$0xff] %vm26_vm0, %v810_v18  ;;  %v786_v20 = vpop.permute.xlu1 %785  ;;  %v1343_v17 = vld [vmem:[%s4801_s3 + $0xe0] sm:$0xff] }
 0x15e   :  { %788 = vst.msk [vmem:[#allocation2 + $0xf0] sm:$0xff] %vm26_vm0, %v786_v20  ;;  %2788 = vmatprep.subr.mxu1 %v1343_v17  ;;  %v1327_v18 = vld [vmem:[%s4801_s3 + $0x60] sm:$0xff]  ;;  %v1326_v20 = vld [vmem:[%s4801_s3 + $0x58] sm:$0xff]  ;;  %v1372_v17 = vld [vmem:[%s4801_s3 + $0x1c8] sm:$0xff] }
 0x15f   :  { %1064 = vst.msk [vmem:[#allocation3 + $0x8] sm:$0xff] %vm26_vm0, %v1048_v19  ;;  %v1342_v19 = vld [vmem:[%s4801_s3 + $0xd8] sm:$0xff]  ;;  %2789 = vmatpush3.msra.mxu1 %v1327_v18 }
 0x160   :  { %v816_v21 = vpop.permute.xlu0 %815  ;;  %v860_v22 = vld [vmem:[#allocation2 + $0xe8] sm:$0xff]  ;;  %2790 = vmatprep.subr.mxu1 %v1342_v19 }
 0x161   :  { %818 = vst.msk [vmem:[#allocation2 + $0xf8] sm:$0xff] %vm28_vm1, %v816_v21  ;;  %1036 = vmatprep.mubr.f32.mxu0 %v860_v22  ;;  %v792_v23 = vpop.permute.xlu1 %791  ;;  %v859_v24 = vld [vmem:[#allocation2 + $0xe0] sm:$0xff]  ;;  %v1341_v21 = vld [vmem:[%s4801_s3 + $0xd0] sm:$0xff]  ;;  %2791 = vmatpush3.msra.mxu1 %v1326_v20  ;;  %v1356_v19 = vld [vmem:[%s4801_s3 + $0x148] sm:$0xff] }
 0x162   :  { %794 = vst.msk [vmem:[#allocation2 + $0xf0] sm:$0xff] %vm28_vm1, %v792_v23  ;;  %1037 = vmatmul.mubr.f32.gmra.mxu0 %v859_v24  ;;  %v1325_v23 = vld [vmem:[%s4801_s3 + $0x50] sm:$0xff]  ;;  %v1340_v24 = vld [vmem:[%s4801_s3 + $0xc8] sm:$0xff]  ;;  %2792 = vmatprep.subr.mxu1 %v1341_v21  ;;  %v1371_v20 = vld [vmem:[%s4801_s3 + $0x1c0] sm:$0xff] }
 0x163   :  { %2793 = vmatpush3.msra.mxu1 %v1325_v23  ;;  %v1355_v21 = vld [vmem:[%s4801_s3 + $0x140] sm:$0xff]  ;;  %v1354_v23 = vld [vmem:[%s4801_s3 + $0x138] sm:$0xff] }
 0x164   :  { %v822_v25 = vpop.permute.xlu0 %821  ;;  %2794 = vmatprep.subr.mxu1 %v1340_v24  ;;  %v1369_v24 = vld [vmem:[%s4801_s3 + $0x1b0] sm:$0xff] }
 0x165   :  { %824 = vst.msk [vmem:[#allocation2 + $0xf8] sm:$0xff] %vm37_vm2, %v822_v25  ;;  %v2740_v26 = vpop.f32.mrf.mxu0  ;;  %v798_v27 = vpop.permute.xlu1 %797  ;;  %v1324_v25 = vld [vmem:[%s4801_s3 + $0x48] sm:$0xff] }
 0x166   :  { %800 = vst.msk [vmem:[#allocation2 + $0xf0] sm:$0xff] %vm37_vm2, %v798_v27  ;;  %v1090_v28 = vld [vmem:[#allocation3 + $0x8] sm:$0xff]  ;;  %v1323_v27 = vld [vmem:[%s4801_s3 + $0x40] sm:$0xff]  ;;  %2795 = vmatpush3.msra.mxu1 %v1324_v25 }
 0x167   :  { %v2741_v29 = vpop.f32.mrf.mxu0  ;;  %1092 = vrot.lane.b32.xlu1 %v1090_v28, %s3209_s29  ;;  %1145 = vst.msk [vmem:[#allocation4 + $0x28] sm:$0xff] %vm26_vm0, %v1090_v28  ;;  %v1338_v28 = vld [vmem:[%s4801_s3 + $0xb8] sm:$0xff] }
 0x168   :  { %v2742_v30 = vadd.f32 %v2741_v29, %v2740_v26  ;;  %v828_v31 = vpop.permute.xlu0 %827  ;;  %v1339_v26 = vld [vmem:[%s4801_s3 + $0xc0] sm:$0xff] }
 0x169   :  { %830 = vst.msk [vmem:[#allocation2 + $0xf8] sm:$0xff] %vm47_vm3, %v828_v31  ;;  %v804_v32 = vpop.permute.xlu1 %803  ;;  %2796 = vmatprep.subr.mxu1 %v1339_v26  ;;  %v1322_v31 = vld [vmem:[%s4801_s3 + $0x38] sm:$0xff] }
 0x16a   :  { %v979_v33 = vadd.f32 %v2742_v30, %v3917_v1  ;;  %806 = vst.msk [vmem:[#allocation2 + $0xf0] sm:$0xff] %vm47_vm3, %v804_v32  ;;  %2797 = vmatpush3.msra.mxu1 %v1323_v27  ;;  %v1353_v27 = vld [vmem:[%s4801_s3 + $0x130] sm:$0xff] }
 0x16b   :  { %2798 = vmatprep.subr.mxu1 %v1338_v28  ;;  %v1368_v28 = vld [vmem:[%s4801_s3 + $0x1a8] sm:$0xff] }
 0x16c   :  { %v1049_v34 = vmax.f32 %v979_v33, 0.0  ;;  %2799 = vmatpush3.msra.mxu1 %v1322_v31 }
 0x16e   :  { %1065 = vst.msk [vmem:[#allocation3 + $0x10] sm:$0xff] %vm26_vm0, %v1049_v34  ;;  %v1337_v34 = vld [vmem:[%s4801_s3 + $0xb0] sm:$0xff] }
 0x16f   :  { %2800 = vmatprep.subr.mxu1 %v1337_v34  ;;  %v1352_v34 = vld [vmem:[%s4801_s3 + $0x128] sm:$0xff] }
 0x170   :  { %v862_v35 = vld [vmem:[#allocation2 + $0xf8] sm:$0xff] }
 0x171   :  { %1041 = vmatprep.mubr.f32.mxu0 %v862_v35  ;;  %v861_v36 = vld [vmem:[#allocation2 + $0xf0] sm:$0xff] }
 0x172   :  { %1042 = vmatmul.mubr.f32.gmra.mxu0 %v861_v36  ;;  %v1321_v35 = vld [vmem:[%s4801_s3 + $0x30] sm:$0xff]  ;;  %v1336_v36 = vld [vmem:[%s4801_s3 + $0xa8] sm:$0xff] }
 0x173   :  { %2801 = vmatpush3.msra.mxu1 %v1321_v35  ;;  %v1367_v35 = vld [vmem:[%s4801_s3 + $0x1a0] sm:$0xff]  ;;  %3012 = vmatprep.mubr.msk.f32.mxu0 %vm3211_vm8, %v3199_v2 }
 0x174   :  { %2802 = vmatprep.subr.mxu1 %v1336_v36 }
 0x175   :  { %v1096_v37 = vld [vmem:[#allocation3 + $0x10] sm:$0xff] }
 0x176   :  { %1098 = vrot.lane.b32.xlu0 %v1096_v37, %s3210_s15  ;;  %1148 = vrot.lane.b32.xlu1 %v1096_v37, %s3208_s2  ;;  %v1320_v37 = vld [vmem:[%s4801_s3 + $0x28] sm:$0xff] }
 0x177   :  { %2803 = vmatpush3.msra.mxu1 %v1320_v37  ;;  %v1351_v37 = vld [vmem:[%s4801_s3 + $0x120] sm:$0xff] }
 0x179   :  { %v2743_v38 = vpop.f32.mrf.mxu0 }
 0x17b   :  { %v2744_v39 = vpop.f32.mrf.mxu0 }
 0x17c   :  { %v2745_v40 = vadd.f32 %v2744_v39, %v2743_v38 }
 0x17e   :  { %v984_v41 = vadd.f32 %v2745_v40, %v3917_v1 }
 0x180   :  { %v1050_v42 = vmax.f32 %v984_v41, 0.0  ;;  %v1335_v41 = vld [vmem:[%s4801_s3 + $0xa0] sm:$0xff] }
 0x181   :  { %2804 = vmatprep.subr.mxu1 %v1335_v41  ;;  %v1350_v41 = vld [vmem:[%s4801_s3 + $0x118] sm:$0xff] }
 0x182   :  { %1066 = vst.msk [vmem:[#allocation3 + $0x18] sm:$0xff] %vm26_vm0, %v1050_v42  ;;  %v2746_v43 = vpop.f32.mrf.mxu0  ;;  %v1319_v42 = vld [vmem:[%s4801_s3 + $0x20] sm:$0xff] }
 0x183   :  { %2805 = vmatpush3.msra.mxu1 %v1319_v42  ;;  %v1365_v42 = vld [vmem:[%s4801_s3 + $0x190] sm:$0xff] }
 0x184   :  { %v2747_v45 = vpop.f32.mrf.mxu0 }
 0x185   :  { %v2748_v46 = vadd.f32 %v2747_v45, %v2746_v43  ;;  %v1334_v43 = vld [vmem:[%s4801_s3 + $0x98] sm:$0xff] }
 0x186   :  { %v1318_v45 = vld [vmem:[%s4801_s3 + $0x18] sm:$0xff]  ;;  %2806 = vmatprep.subr.mxu1 %v1334_v43  ;;  %v1349_v43 = vld [vmem:[%s4801_s3 + $0x110] sm:$0xff] }
 0x187   :  { %v989_v48 = vadd.f32 %v2748_v46, %v3917_v1  ;;  %v1333_v46 = vld [vmem:[%s4801_s3 + $0x90] sm:$0xff]  ;;  %2807 = vmatpush3.msra.mxu1 %v1318_v45  ;;  %v1364_v45 = vld [vmem:[%s4801_s3 + $0x188] sm:$0xff] }
 0x188   :  { %2808 = vmatprep.subr.mxu1 %v1333_v46  ;;  %v1348_v46 = vld [vmem:[%s4801_s3 + $0x108] sm:$0xff] }
 0x189   :  { %v1051_v49 = vmax.f32 %v989_v48, 0.0  ;;  %v1152_v50 = vld [vmem:[#allocation3 + $0x18] sm:$0xff]  ;;  %v1317_v48 = vld [vmem:[%s4801_s3 + $0x10] sm:$0xff] }
 0x18a   :  { %1154 = vrot.lane.b32.xlu0 %v1152_v50, %s3209_s29  ;;  %v1316_v50 = vld [vmem:[%s4801_s3 + $0x8] sm:$0xff]  ;;  %2809 = vmatpush3.msra.mxu1 %v1317_v48  ;;  %v1363_v48 = vld [vmem:[%s4801_s3 + $0x180] sm:$0xff] }
 0x18b   :  { %1067 = vst.msk [vmem:[#allocation3 + $0x20] sm:$0xff] %vm26_vm0, %v1051_v49  ;;  %v1332_v49 = vld [vmem:[%s4801_s3 + $0x88] sm:$0xff] }
 0x18c   :  { %2810 = vmatprep.subr.mxu1 %v1332_v49  ;;  %v1347_v49 = vld [vmem:[%s4801_s3 + $0x100] sm:$0xff] }
 0x18d   :  { %2811 = vmatpush3.msra.mxu1 %v1316_v50 }
 0x192   :  { %v2749_v51 = vpop.f32.mrf.mxu0  ;;  %v1190_v53 = vld [vmem:[#allocation3 + $0x20] sm:$0xff] }
 0x193   :  { %1192 = vrot.lane.b32.xlu0 %v1190_v53, %s3208_s2 }
 0x194   :  { %v2750_v54 = vpop.f32.mrf.mxu0 }
 0x195   :  { %v2751_v56 = vadd.f32 %v2750_v54, %v2749_v51  ;;  %v1331_v51 = vld [vmem:[%s4801_s3 + $0x80] sm:$0xff]  ;;  %v1378_v54 = vld [vmem:[%s4801_s3 + $0x1f8] sm:$0xff] }
 0x196   :  { %2812 = vmatprep.subr.mxu1 %v1331_v51 }
 0x197   :  { %v994_v57 = vadd.f32 %v2751_v56, %v3917_v1  ;;  %1105 = vrot.lane.b32.xlu0 %v1190_v53, %s3208_s2  ;;  %v1315_v53 = vld [vmem:[%s4801_s3] sm:$0xff] }
 0x198   :  { %2813 = vmatpush3.msra.mxu1 %v1315_v53 }
 0x199   :  { %v1052_v58 = vmax.f32 %v994_v57, 0.0  ;;  %2826 = vmatprep.subr.mxu1 %v1378_v54 }
 0x19b   :  { %1068 = vst.msk [vmem:[#allocation3 + $0x28] sm:$0xff] %vm26_vm0, %v1052_v58 }
 0x1a2   :  { %v2752_v59 = vpop.f32.mrf.mxu0  ;;  %v1196_v60 = vld [vmem:[#allocation3 + $0x28] sm:$0xff] }
 0x1a3   :  { %1198 = vrot.lane.b32.xlu0 %v1196_v60, %s3209_s29  ;;  %1251 = vst.msk [vmem:[#allocation4 + $0x60] sm:$0xff] %vm26_vm0, %v1196_v60  ;;  %1160 = vst.msk [vmem:[#allocation4 + $0x30] sm:$0xff] %vm26_vm0, %v1196_v60 }
 0x1a4   :  { %v2753_v61 = vpop.f32.mrf.mxu0 }
 0x1a5   :  { %v2754_v62 = vadd.f32 %v2753_v61, %v2752_v59 }
 0x1a7   :  { %v999_v63 = vadd.f32 %v2754_v62, %v3917_v1  ;;  %1111 = vrot.lane.b32.xlu0 %v1196_v60, %s3209_s29 }
 0x1a9   :  { %v1053_v0 = vmax.f32 %v999_v63, 0.0 }
 0x1ab   :  { %1069 = vst.msk [vmem:[#allocation3 + $0x30] sm:$0xff] %vm26_vm0, %v1053_v0  ;;  %v1299_v0 = vld [vmem:[#allocation4] sm:$0xff] }
 0x1b2   :  { %v1202_v3 = vld [vmem:[#allocation3 + $0x30] sm:$0xff] }
 0x1b3   :  { %1204 = vrot.lane.b32.xlu0 %v1202_v3, %s3210_s15 }
 0x1b7   :  { %1254 = vrot.lane.b32.xlu0 %v1202_v3, %s3208_s2 }
 0x1b9   :  { %v2755_v4 = vpop.f32.mrf.mxu0 }
 0x1bb   :  { %1117 = vrot.lane.b32.xlu0 %v1202_v3, %s3210_s15  ;;  %v2756_v5 = vpop.f32.mrf.mxu0 }
 0x1bc   :  { %v2757_v6 = vadd.f32 %v2756_v5, %v2755_v4  ;;  %v1362_v4 = vld [vmem:[%s4801_s3 + $0x178] sm:$0xff]  ;;  %v1377_v5 = vld [vmem:[%s4801_s3 + $0x1f0] sm:$0xff] }
 0x1be   :  { %v1004_v7 = vadd.f32 %v2757_v6, %v3917_v1 }
 0x1c0   :  { %v1054_v44 = vmax.f32 %v1004_v7, 0.0 }
 0x1c2   :  { %1070 = vst.msk [vmem:[#allocation3 + $0x38] sm:$0xff] %vm26_vm0, %v1054_v44  ;;  %v2758_v8 = vpop.f32.mrf.mxu0  ;;  %v1361_v44 = vld [vmem:[%s4801_s3 + $0x170] sm:$0xff] }
 0x1c4   :  { %v2759_v47 = vpop.f32.mrf.mxu0 }
 0x1c5   :  { %v2760_v10 = vadd.f32 %v2759_v47, %v2758_v8  ;;  %v1376_v8 = vld [vmem:[%s4801_s3 + $0x1e8] sm:$0xff] }
 0x1c6   :  { %v1360_v47 = vld [vmem:[%s4801_s3 + $0x168] sm:$0xff] }
 0x1c7   :  { %v1009_v15 = vadd.f32 %v2760_v10, %v3917_v1  ;;  %v1375_v10 = vld [vmem:[%s4801_s3 + $0x1e0] sm:$0xff] }
 0x1c9   :  { %v1055_v16 = vmax.f32 %v1009_v15, 0.0  ;;  %v1258_v55 = vld [vmem:[#allocation3 + $0x38] sm:$0xff] }
 0x1ca   :  { %1260 = vrot.lane.b32.xlu0 %v1258_v55, %s3209_s29 }
 0x1cb   :  { %1071 = vst.msk [vmem:[#allocation3 + $0x40] sm:$0xff] %vm26_vm0, %v1055_v16  ;;  %v1373_v16 = vld [vmem:[%s4801_s3 + $0x1d0] sm:$0xff] }
 0x1cc   :  { %v1087_v22 = vpop.permute.xlu0 %1086 }
 0x1cd   :  { %1089 = vst.msk [vmem:[#allocation4 + $0x8] sm:$0xff] %vm28_vm1, %v1087_v22  ;;  %v1370_v22 = vld [vmem:[%s4801_s3 + $0x1b8] sm:$0xff] }
 0x1ce   :  { %1163 = vrot.lane.b32.xlu0 %v1202_v3, %s3208_s2 }
 0x1d2   :  { %1169 = vrot.lane.b32.xlu0 %v1258_v55, %s3209_s29  ;;  %v2761_v29 = vpop.f32.mrf.mxu0  ;;  %v1209_v30 = vld [vmem:[#allocation3 + $0x40] sm:$0xff]  ;;  %v1357_v55 = vld [vmem:[%s4801_s3 + $0x150] sm:$0xff] }
 0x1d3   :  { %1211 = vrot.lane.b32.xlu1 %v1209_v30, %s3208_s2 }
 0x1d4   :  { %v2762_v32 = vpop.f32.mrf.mxu0 }
 0x1d5   :  { %v2763_v33 = vadd.f32 %v2762_v32, %v2761_v29 }
 0x1d7   :  { %v1014_v38 = vadd.f32 %v2763_v33, %v3917_v1  ;;  %1124 = vrot.lane.b32.xlu1 %v1209_v30, %s3208_s2  ;;  %v1303_v30 = vld [vmem:[#allocation4 + $0x20] sm:$0xff] }
 0x1d9   :  { %v1056_v39 = vmax.f32 %v1014_v38, 0.0  ;;  %v1093_v40 = vpop.permute.xlu1 %1092  ;;  %v1366_v38 = vld [vmem:[%s4801_s3 + $0x198] sm:$0xff] }
 0x1da   :  { %1095 = vst.msk [vmem:[#allocation4 + $0x8] sm:$0xff] %vm37_vm2, %v1093_v40 }
 0x1db   :  { %1072 = vst.msk [vmem:[#allocation3 + $0x48] sm:$0xff] %vm26_vm0, %v1056_v39 }
 0x1e2   :  { %v2764_v56 = vpop.f32.mrf.mxu0  ;;  %v1215_v57 = vld [vmem:[#allocation3 + $0x48] sm:$0xff] }
 0x1e3   :  { %1217 = vrot.lane.b32.xlu1 %v1215_v57, %s3209_s29  ;;  %1266 = vst.msk [vmem:[#allocation4 + $0x68] sm:$0xff] %vm26_vm0, %v1215_v57  ;;  %1175 = vst.msk [vmem:[#allocation4 + $0x38] sm:$0xff] %vm26_vm0, %v1215_v57 }
 0x1e4   :  { %v2765_v58 = vpop.f32.mrf.mxu0 }
 0x1e5   :  { %v2766_v59 = vadd.f32 %v2765_v58, %v2764_v56 }
 0x1e7   :  { %v1019_v60 = vadd.f32 %v2766_v59, %v3917_v1  ;;  %1130 = vrot.lane.b32.xlu1 %v1215_v57, %s3209_s29 }
 0x1e8   :  { %v1099_v61 = vpop.permute.xlu0 %1098  ;;  %v1149_v62 = vpop.permute.xlu1 %1148 }
 0x1e9   :  { %v1057_v63 = vmax.f32 %v1019_v60, 0.0  ;;  %1101 = vst.msk [vmem:[#allocation4 + $0x8] sm:$0xff] %vm47_vm3, %v1099_v61 }
 0x1ea   :  { %1151 = vst.msk [vmem:[#allocation4 + $0x28] sm:$0xff] %vm28_vm1, %v1149_v62 }
 0x1eb   :  { %1073 = vst.msk [vmem:[#allocation3 + $0x50] sm:$0xff] %vm26_vm0, %v1057_v63 }
 0x1f0   :  { %v1300_v3 = vld [vmem:[#allocation4 + $0x8] sm:$0xff] }
 0x1f1   :  { %1450 = vmatprep.mubr.f32.mxu1 %v1300_v3 }
 0x1f2   :  { %v2767_v6 = vpop.f32.mrf.mxu0  ;;  %v4090_v7 = vld [vmem:[#allocation3 + $0x50] sm:$0xff]  ;;  %1451 = vmatmul.mubr.f32.vlgmr.msra.gmra.mxu1 %v1299_v0 }
 0x1f3   :  { %1223 = vrot.lane.b32.xlu1 %v4090_v7, %s3210_s15  ;;  %2827 = vmatpush3.msra.mxu1 %v1362_v4 }
 0x1f4   :  { %v2768_v9 = vpop.f32.mrf.mxu0  ;;  %2828 = vmatprep.subr.mxu1 %v1377_v5 }
 0x1f5   :  { %v2769_v52 = vadd.f32 %v2768_v9, %v2767_v6  ;;  %2829 = vmatpush3.msra.mxu1 %v1361_v44 }
 0x1f6   :  { %2830 = vmatprep.subr.mxu1 %v1376_v8 }
 0x1f7   :  { %v1024_v12 = vadd.f32 %v2769_v52, %v3917_v1  ;;  %1269 = vrot.lane.b32.xlu1 %v4090_v7, %s3208_s2  ;;  %2831 = vmatpush3.msra.mxu1 %v1360_v47 }
 0x1f8   :  { %2832 = vmatprep.subr.mxu1 %v1375_v10 }
 0x1f9   :  { %v1058_v15 = vmax.f32 %v1024_v12, 0.0  ;;  %2833 = vmatpush3.msra.mxu1 %v1359_v11 }
 0x1fa   :  { %2834 = vmatprep.subr.mxu1 %v1374_v13 }
 0x1fb   :  { %1074 = vst.msk [vmem:[#allocation3 + $0x58] sm:$0xff] %vm26_vm0, %v1058_v15  ;;  %1136 = vrot.lane.b32.xlu1 %v4090_v7, %s3210_s15  ;;  %2835 = vmatpush3.msra.mxu1 %v1358_v14 }
 0x1fc   :  { %v1155_v18 = vpop.permute.xlu0 %1154  ;;  %2836 = vmatprep.subr.mxu1 %v1373_v16 }
 0x1fd   :  { %1157 = vst.msk [vmem:[#allocation4 + $0x28] sm:$0xff] %vm37_vm2, %v1155_v18  ;;  %2837 = vmatpush3.msra.mxu1 %v1357_v55 }
 0x1fe   :  { %1158 = vst.msk [vmem:[#allocation4 + $0x28] sm:$0xff] %vm47_vm3, %v3199_v2  ;;  %2838 = vmatprep.subr.mxu1 %v1372_v17 }
 0x1ff   :  { %2839 = vmatpush3.msra.mxu1 %v1356_v19 }
 0x200   :  { %2840 = vmatprep.subr.mxu1 %v1371_v20 }
 0x201   :  { %2841 = vmatpush3.msra.mxu1 %v1355_v21 }
 0x202   :  { %v2770_v25 = vpop.f32.mrf.mxu0  ;;  %v1273_v26 = vld [vmem:[#allocation3 + $0x58] sm:$0xff]  ;;  %2842 = vmatprep.subr.mxu1 %v1370_v22 }
 0x203   :  { %1275 = vrot.lane.b32.xlu1 %v1273_v26, %s3209_s29  ;;  %2843 = vmatpush3.msra.mxu1 %v1354_v23 }
 0x204   :  { %v2771_v29 = vpop.f32.mrf.mxu0  ;;  %2844 = vmatprep.subr.mxu1 %v1369_v24 }
 0x205   :  { %v2772_v31 = vadd.f32 %v2771_v29, %v2770_v25  ;;  %v1193_v32 = vpop.permute.xlu0 %1192  ;;  %v1304_v33 = vld [vmem:[#allocation4 + $0x28] sm:$0xff]  ;;  %2845 = vmatpush3.msra.mxu1 %v1353_v27 }
 0x206   :  { %1195 = vst.msk [vmem:[#allocation4 + $0x40] sm:$0xff] %vm28_vm1, %v1193_v32  ;;  %1455 = vmatprep.mubr.f32.mxu1 %v1304_v33  ;;  %2846 = vmatprep.subr.mxu1 %v1368_v28 }
 0x207   :  { %v1029_v36 = vadd.f32 %v2772_v31, %v3917_v1  ;;  %1178 = vrot.lane.b32.xlu1 %v4090_v7, %s3208_s2  ;;  %1456 = vmatmul.mubr.f32.gmra.mxu1 %v1303_v30  ;;  %v1310_v31 = vld [vmem:[#allocation4 + $0x58] sm:$0xff] }
 0x208   :  { %2847 = vmatpush3.msra.mxu1 %v1352_v34 }
 0x209   :  { %v1059_v39 = vmax.f32 %v1029_v36, 0.0  ;;  %v1106_v40 = vpop.permute.xlu0 %1105  ;;  %2848 = vmatprep.subr.mxu1 %v1367_v35  ;;  %v1314_v35 = vld [vmem:[#allocation4 + $0x78] sm:$0xff] }
 0x20a   :  { %1108 = vst.msk [vmem:[#allocation4 + $0x10] sm:$0xff] %vm28_vm1, %v1106_v40  ;;  %2849 = vmatpush3.msra.mxu1 %v1351_v37  ;;  %v1684_v40 = vld [vmem:[%s4802_s5 + $0x30] sm:$0xff] }
 0x20b   :  { %1075 = vst.msk [vmem:[#allocation3 + $0x60] sm:$0xff] %vm26_vm0, %v1059_v39  ;;  %1184 = vrot.lane.b32.xlu1 %v1273_v26, %s3209_s29  ;;  %2850 = vmatprep.subr.mxu1 %v1366_v38  ;;  %v1685_v39 = vld [vmem:[%s4802_s5 + $0x38] sm:$0xff] }
 0x20c   :  { %2851 = vmatpush3.msra.mxu1 %v1350_v41  ;;  %2997 = vmatpush3.msra.mxu0 %v1685_v39  ;;  %v1683_v41 = vld [vmem:[%s4802_s5 + $0x28] sm:$0xff]  ;;  %v4429_v39 = vld [vmem:[%s4802_s5 + $0xd0] sm:$0xff] }
 0x20d   :  { %2852 = vmatprep.subr.mxu1 %v1365_v42  ;;  %2998 = vmatprep.subr.mxu0 %v3199_v2  ;;  %v1682_v42 = vld [vmem:[%s4802_s5 + $0x20] sm:$0xff] }
 0x20e   :  { %2853 = vmatpush3.msra.mxu1 %v1349_v43  ;;  %2999 = vmatpush3.msra.mxu0 %v1684_v40  ;;  %v1681_v43 = vld [vmem:[%s4802_s5 + $0x18] sm:$0xff] }
 0x20f   :  { %2854 = vmatprep.subr.mxu1 %v1364_v45  ;;  %3000 = vmatprep.subr.mxu0 %v3199_v2  ;;  %v1680_v45 = vld [vmem:[%s4802_s5 + $0x10] sm:$0xff] }
 0x210   :  { %2855 = vmatpush3.msra.mxu1 %v1348_v46  ;;  %3001 = vmatpush3.msra.mxu0 %v1683_v41  ;;  %v1679_v46 = vld [vmem:[%s4802_s5 + $0x8] sm:$0xff] }
 0x211   :  { %2856 = vmatprep.subr.mxu1 %v1363_v48  ;;  %3002 = vmatprep.subr.mxu0 %v3199_v2  ;;  %v1678_v48 = vld [vmem:[%s4802_s5] sm:$0xff]  ;;  %v4436_v41 = vld [vmem:[%s4802_s5 + $0xc8] sm:$0xff] }
 0x212   :  { %v2773_v50 = vpop.f32.mrf.mxu0  ;;  %v1228_v51 = vld [vmem:[#allocation3 + $0x60] sm:$0xff]  ;;  %2857 = vmatpush3.msra.mxu1 %v1347_v49  ;;  %3003 = vmatpush3.msra.mxu0 %v1682_v42  ;;  %v1572_v49 = vld [vmem:[%s4802_s5 + $0x138] sm:$0xff] }
 0x213   :  { %1230 = vrot.lane.b32.xlu1 %v1228_v51, %s3208_s2  ;;  %3004 = vmatprep.subr.mxu0 %v3199_v2  ;;  %v1570_v51 = vld [vmem:[%s4802_s5 + $0x128] sm:$0xff] }
 0x214   :  { %v2774_v53 = vpop.f32.mrf.mxu0  ;;  %3005 = vmatpush3.msra.mxu0 %v1681_v43  ;;  %2974 = vmatprep.subr.mxu1 %v1572_v49 }
 0x215   :  { %v2775_v54 = vadd.f32 %v2774_v53, %v2773_v50  ;;  %v1199_v56 = vpop.permute.xlu0 %1198  ;;  %3006 = vmatprep.subr.mxu0 %v3199_v2  ;;  %v1571_v50 = vld [vmem:[%s4802_s5 + $0x130] sm:$0xff]  ;;  %v1569_v53 = vld [vmem:[%s4802_s5 + $0x120] sm:$0xff] }
 0x216   :  { %1201 = vst.msk [vmem:[#allocation4 + $0x40] sm:$0xff] %vm37_vm2, %v1199_v56  ;;  %3007 = vmatpush3.msra.mxu0 %v1680_v45  ;;  %v1567_v56 = vld [vmem:[%s4802_s5 + $0x110] sm:$0xff] }
 0x217   :  { %v1034_v57 = vadd.f32 %v2775_v54, %v3917_v1  ;;  %3008 = vmatprep.subr.mxu0 %v3199_v2  ;;  %v1568_v54 = vld [vmem:[%s4802_s5 + $0x118] sm:$0xff] }
 0x218   :  { %3009 = vmatpush3.msra.mxu0 %v1679_v46  ;;  %v4444_v46 = vld [vmem:[%s4802_s5 + $0xc0] sm:$0xff] }
 0x219   :  { %v1060_v58 = vmax.f32 %v1034_v57, 0.0  ;;  %v1112_v59 = vpop.permute.xlu0 %1111  ;;  %3010 = vmatprep.subr.mxu0 %v3199_v2  ;;  %v1566_v57 = vld [vmem:[%s4802_s5 + $0x108] sm:$0xff] }
 0x21a   :  { %1114 = vst.msk [vmem:[#allocation4 + $0x10] sm:$0xff] %vm37_vm2, %v1112_v59  ;;  %3011 = vmatpush3.msra.mxu0 %v1678_v48  ;;  %v1770_v59 = vld [vmem:[%s4802_s5 + $0x78] sm:$0xff] }
 0x21b   :  { %1076 = vst.msk [vmem:[#allocation3 + $0x68] sm:$0xff] %vm26_vm0, %v1060_v58  ;;  %3034 = vmatprep.subr.mxu0 %v3199_v2  ;;  %v1565_v58 = vld [vmem:[%s4802_s5 + $0x100] sm:$0xff] }
 0x222   :  { %v2776_v60 = vpop.f32.mrf.mxu0  ;;  %v1234_v61 = vld [vmem:[#allocation3 + $0x68] sm:$0xff] }
 0x223   :  { %1236 = vrot.lane.b32.xlu0 %v1234_v61, %s3209_s29  ;;  %1281 = vst.msk [vmem:[#allocation4 + $0x70] sm:$0xff] %vm26_vm0, %v1234_v61 }
 0x224   :  { %v2777_v62 = vpop.f32.mrf.mxu0 }
 0x225   :  { %v2778_v63 = vadd.f32 %v2777_v62, %v2776_v60  ;;  %v1205_v0 = vpop.permute.xlu0 %1204 }
 0x226   :  { %1207 = vst.msk [vmem:[#allocation4 + $0x40] sm:$0xff] %vm47_vm3, %v1205_v0 }
 0x227   :  { %v1039_v3 = vadd.f32 %v2778_v63, %v3917_v1 }
 0x229   :  { %v1061_v4 = vmax.f32 %v1039_v3, 0.0  ;;  %v1255_v5 = vpop.permute.xlu0 %1254 }
 0x22a   :  { %1257 = vst.msk [vmem:[#allocation4 + $0x60] sm:$0xff] %vm28_vm1, %v1255_v5 }
 0x22b   :  { %1077 = vst.msk [vmem:[#allocation3 + $0x70] sm:$0xff] %vm26_vm0, %v1061_v4 }
 0x22d   :  { %v1118_v6 = vpop.permute.xlu0 %1117  ;;  %v1307_v20 = vld [vmem:[#allocation4 + $0x40] sm:$0xff] }
 0x22e   :  { %1120 = vst.msk [vmem:[#allocation4 + $0x10] sm:$0xff] %vm47_vm3, %v1118_v6 }
 0x232   :  { %v2779_v7 = vpop.f32.mrf.mxu0  ;;  %v1282_v44 = vld [vmem:[#allocation3 + $0x70] sm:$0xff] }
 0x233   :  { %1284 = vrot.lane.b32.xlu0 %v1282_v44, %s3208_s2  ;;  %1242 = vrot.lane.b32.xlu1 %v1282_v44, %s3210_s15 }
 0x234   :  { %v2780_v8 = vpop.f32.mrf.mxu0 }
 0x235   :  { %v2781_v9 = vadd.f32 %v2780_v8, %v2779_v7  ;;  %v1301_v27 = vld [vmem:[#allocation4 + $0x10] sm:$0xff]  ;;  %v4315_v7 = vld [vmem:[%s4803_s4] ss:$0 sm:$0xff] }
 0x237   :  { %v1044_v47 = vadd.f32 %v2781_v9, %v3917_v1 }
 0x239   :  { %v1062_v52 = vmax.f32 %v1044_v47, 0.0 }
 0x23b   :  { %1078 = vst.msk [vmem:[#allocation3 + $0x78] sm:$0xff] %vm26_vm0, %v1062_v52 }
 0x23c   :  { %v1261_v10 = vpop.permute.xlu0 %1260 }
 0x23d   :  { %1263 = vst.msk [vmem:[#allocation4 + $0x60] sm:$0xff] %vm37_vm2, %v1261_v10 }
 0x23e   :  { %1264 = vst.msk [vmem:[#allocation4 + $0x60] sm:$0xff] %vm47_vm3, %v3199_v2 }
 0x240   :  { %v1164_v11 = vpop.permute.xlu0 %1163 }
 0x241   :  { %1166 = vst.msk [vmem:[#allocation4 + $0x30] sm:$0xff] %vm28_vm1, %v1164_v11 }
 0x242   :  { %v1288_v12 = vld [vmem:[#allocation3 + $0x78] sm:$0xff] }
 0x243   :  { %1290 = vrot.lane.b32.xlu1 %v1288_v12, %s3209_s29 }
 0x244   :  { %v1170_v13 = vpop.permute.xlu0 %1169 }
 0x245   :  { %1172 = vst.msk [vmem:[#allocation4 + $0x30] sm:$0xff] %vm37_vm2, %v1170_v13  ;;  %v1212_v14 = vpop.permute.xlu1 %1211  ;;  %v1311_v24 = vld [vmem:[#allocation4 + $0x60] sm:$0xff] }
 0x246   :  { %1173 = vst.msk [vmem:[#allocation4 + $0x30] sm:$0xff] %vm47_vm3, %v3199_v2 }
 0x247   :  { %1214 = vst.msk [vmem:[#allocation4 + $0x48] sm:$0xff] %vm28_vm1, %v1212_v14 }
 0x249   :  { %v1125_v1 = vpop.permute.xlu1 %1124 }
 0x24a   :  { %1127 = vst.msk [vmem:[#allocation4 + $0x18] sm:$0xff] %vm28_vm1, %v1125_v1 }
 0x24d   :  { %v1305_v29 = vld [vmem:[#allocation4 + $0x30] sm:$0xff] }
 0x255   :  { %v1218_v15 = vpop.permute.xlu1 %1217 }
 0x256   :  { %1220 = vst.msk [vmem:[#allocation4 + $0x48] sm:$0xff] %vm37_vm2, %v1218_v15 }
 0x259   :  { %v1131_v16 = vpop.permute.xlu1 %1130 }
 0x25a   :  { %1133 = vst.msk [vmem:[#allocation4 + $0x18] sm:$0xff] %vm37_vm2, %v1131_v16 }
 0x265   :  { %v1224_v55 = vpop.permute.xlu1 %1223 }
 0x266   :  { %1226 = vst.msk [vmem:[#allocation4 + $0x48] sm:$0xff] %vm47_vm3, %v1224_v55  ;;  %v1867_v55 = vld [vmem:[%s4802_s5 + $0xb8] sm:$0xff] }
 0x269   :  { %v1270_v17 = vpop.permute.xlu1 %1269 }
 0x26a   :  { %1272 = vst.msk [vmem:[#allocation4 + $0x68] sm:$0xff] %vm28_vm1, %v1270_v17 }
 0x26d   :  { %v1137_v18 = vpop.permute.xlu1 %1136  ;;  %v1308_v19 = vld [vmem:[#allocation4 + $0x48] sm:$0xff] }
 0x26e   :  { %1139 = vst.msk [vmem:[#allocation4 + $0x18] sm:$0xff] %vm47_vm3, %v1137_v18  ;;  %1460 = vmatprep.mubr.f32.mxu1 %v1308_v19  ;;  %v1866_v18 = vld [vmem:[%s4802_s5 + $0xb0] sm:$0xff]  ;;  %v1865_v19 = vld [vmem:[%s4802_s5 + $0xa8] sm:$0xff] }
 0x26f   :  { %1461 = vmatmul.mubr.f32.gmra.mxu1 %v1307_v20 }
 0x275   :  { %v1276_v21 = vpop.permute.xlu1 %1275  ;;  %v1302_v26 = vld [vmem:[#allocation4 + $0x18] sm:$0xff] }
 0x276   :  { %1278 = vst.msk [vmem:[#allocation4 + $0x68] sm:$0xff] %vm37_vm2, %v1276_v21  ;;  %v1769_v21 = vld [vmem:[%s4802_s5 + $0x70] sm:$0xff] }
 0x277   :  { %1279 = vst.msk [vmem:[#allocation4 + $0x68] sm:$0xff] %vm47_vm3, %v3199_v2 }
 0x279   :  { %v1179_v22 = vpop.permute.xlu1 %1178 }
 0x27a   :  { %1181 = vst.msk [vmem:[#allocation4 + $0x38] sm:$0xff] %vm28_vm1, %v1179_v22  ;;  %v1864_v22 = vld [vmem:[%s4802_s5 + $0xa0] sm:$0xff] }
 0x27d   :  { %v1185_v23 = vpop.permute.xlu1 %1184 }
 0x27e   :  { %1187 = vst.msk [vmem:[#allocation4 + $0x38] sm:$0xff] %vm37_vm2, %v1185_v23  ;;  %v1312_v25 = vld [vmem:[#allocation4 + $0x68] sm:$0xff] }
 0x27f   :  { %1188 = vst.msk [vmem:[#allocation4 + $0x38] sm:$0xff] %vm47_vm3, %v3199_v2  ;;  %1465 = vmatprep.mubr.f32.mxu1 %v1312_v25  ;;  %v1768_v23 = vld [vmem:[%s4802_s5 + $0x68] sm:$0xff]  ;;  %v1767_v25 = vld [vmem:[%s4802_s5 + $0x60] sm:$0xff] }
 0x280   :  { %1466 = vmatmul.mubr.f32.gmra.mxu1 %v1311_v24  ;;  %v1863_v24 = vld [vmem:[%s4802_s5 + $0x98] sm:$0xff] }
 0x281   :  { %1535 = vmatprep.mubr.f32.mxu1 %v1302_v26  ;;  %v1862_v26 = vld [vmem:[%s4802_s5 + $0x90] sm:$0xff] }
 0x284   :  { %1536 = vmatmul.mubr.f32.vlgmr.msra.gmra.mxu1 %v1301_v27  ;;  %v1766_v27 = vld [vmem:[%s4802_s5 + $0x58] sm:$0xff] }
 0x285   :  { %v1231_v28 = vpop.permute.xlu1 %1230  ;;  %2975 = vmatpush3.msra.mxu1 %v1572_v49 }
 0x286   :  { %1233 = vst.msk [vmem:[#allocation4 + $0x50] sm:$0xff] %vm28_vm1, %v1231_v28  ;;  %v1306_v30 = vld [vmem:[#allocation4 + $0x38] sm:$0xff]  ;;  %2976 = vmatprep.subr.mxu1 %v1571_v50  ;;  %v1861_v28 = vld [vmem:[%s4802_s5 + $0x88] sm:$0xff] }
 0x287   :  { %1540 = vmatprep.mubr.f32.mxu1 %v1306_v30  ;;  %2977 = vmatpush3.msra.mxu1 %v1571_v50  ;;  %v1860_v30 = vld [vmem:[%s4802_s5 + $0x80] sm:$0xff]  ;;  %v4454_v50 = vld [vmem:[%s4802_s5 + $0x178] sm:$0xff] }
 0x288   :  { %1541 = vmatmul.mubr.f32.gmra.mxu1 %v1305_v29  ;;  %2978 = vmatprep.subr.mxu1 %v1570_v51  ;;  %v1765_v29 = vld [vmem:[%s4802_s5 + $0x50] sm:$0xff] }
 0x289   :  { %1545 = vmatprep.mubr.f32.mxu1 %v1310_v31  ;;  %2979 = vmatpush3.msra.mxu1 %v1570_v51  ;;  %v4382_v31 = vld [vmem:[%s4802_s5 + $0xf8] sm:$0xff] }
 0x28a   :  { %2980 = vmatprep.subr.mxu1 %v1569_v53 }
 0x28b   :  { %2981 = vmatpush3.msra.mxu1 %v1569_v53 }
 0x28c   :  { %2982 = vmatprep.subr.mxu1 %v1568_v54 }
 0x28d   :  { %2983 = vmatpush3.msra.mxu1 %v1568_v54 }
 0x28e   :  { %2984 = vmatprep.subr.mxu1 %v1567_v56 }
 0x28f   :  { %2985 = vmatpush3.msra.mxu1 %v1567_v56  ;;  %v4467_v56 = vld [vmem:[%s4802_s5 + $0x170] sm:$0xff] }
 0x290   :  { %2986 = vmatprep.subr.mxu1 %v1566_v57 }
 0x291   :  { %2987 = vmatpush3.msra.mxu1 %v1566_v57 }
 0x292   :  { %2988 = vmatprep.subr.mxu1 %v1565_v58 }
 0x293   :  { %2989 = vmatpush3.msra.mxu1 %v1565_v58  ;;  %v4476_v58 = vld [vmem:[%s4802_s5 + $0x168] sm:$0xff] }
 0x294   :  { %3015 = vmatprep.subr.mxu1 %v1770_v59 }
 0x295   :  { %v1237_v32 = vpop.permute.xlu0 %1236 }
 0x296   :  { %1239 = vst.msk [vmem:[#allocation4 + $0x50] sm:$0xff] %vm37_vm2, %v1237_v32  ;;  %v1764_v32 = vld [vmem:[%s4802_s5 + $0x48] sm:$0xff] }
 0x2a5   :  { %v1285_v33 = vpop.permute.xlu0 %1284  ;;  %v1243_v34 = vpop.permute.xlu1 %1242 }
 0x2a6   :  { %1287 = vst.msk [vmem:[#allocation4 + $0x70] sm:$0xff] %vm28_vm1, %v1285_v33  ;;  %v4393_v33 = vld [vmem:[%s4802_s5 + $0xf0] sm:$0xff] }
 0x2a7   :  { %1245 = vst.msk [vmem:[#allocation4 + $0x50] sm:$0xff] %vm47_vm3, %v1243_v34  ;;  %v1763_v34 = vld [vmem:[%s4802_s5 + $0x40] sm:$0xff] }
 0x2ae   :  { %v1309_v36 = vld [vmem:[#allocation4 + $0x50] sm:$0xff] }
 0x2af   :  { %1546 = vmatmul.mubr.f32.gmra.mxu1 %v1309_v36  ;;  %v4412_v36 = vld [vmem:[%s4802_s5 + $0xe0] sm:$0xff] }
 0x2b0   :  { %1550 = vmatprep.mubr.f32.mxu1 %v1314_v35  ;;  %v4405_v35 = vld [vmem:[%s4802_s5 + $0xe8] sm:$0xff] }
 0x2b2   :  { %v2814_v60 = vpop.f32.mrf.mxu1 }
 0x2b4   :  { %v2815_v61 = vpop.f32.mrf.mxu1 }
 0x2b5   :  { %v1291_v37 = vpop.permute.xlu1 %1290  ;;  %v2816_v5 = vadd.f32 %v2815_v61, %v2814_v60  ;;  %v4484_v61 = vld [vmem:[%s4802_s5 + $0x160] sm:$0xff] }
 0x2b6   :  { %1293 = vst.msk [vmem:[#allocation4 + $0x70] sm:$0xff] %vm37_vm2, %v1291_v37  ;;  %v4419_v37 = vld [vmem:[%s4802_s5 + $0xd8] sm:$0xff] }
 0x2b7   :  { %1294 = vst.msk [vmem:[#allocation4 + $0x70] sm:$0xff] %vm47_vm3, %v3199_v2  ;;  %v1453_v8 = vadd.f32 %v2816_v5, %v4315_v7  ;;  %v4513_v5 = vld [vmem:[%s4802_s5 + $0x140] sm:$0xff] }
 0x2be   :  { %v1313_v38 = vld [vmem:[#allocation4 + $0x70] sm:$0xff] }
 0x2bf   :  { %1551 = vmatmul.mubr.f32.gmra.mxu1 %v1313_v38 }
 0x2c7   :  { %v2817_v62 = vpop.f32.mrf.mxu1 }
 0x2c9   :  { %v2818_v63 = vpop.f32.mrf.mxu1 }
 0x2ca   :  { %v2819_v9 = vadd.f32 %v2818_v63, %v2817_v62  ;;  %v4491_v63 = vld [vmem:[%s4802_s5 + $0x158] sm:$0xff] }
 0x2cc   :  { %v1458_v11 = vadd.f32 %v2819_v9, %v4315_v7  ;;  %v2358_v9 = vld [vmem:[%s4802_s5 + $0x1e0] sm:$0xff] }
 0x32f   :  { %v4304_v0 = vpop.f32.mrf.mxu1 }
 0x331   :  { %v4306_v3 = vpop.f32.mrf.mxu1 }
 0x332   :  { %v2822_v38 = vadd.f32 %v4306_v3, %v4304_v0  ;;  %v4498_v3 = vld [vmem:[%s4802_s5 + $0x150] sm:$0xff] }
 0x334   :  { %v1463_v43 = vadd.f32 %v2822_v38, %v4315_v7 }
 0x340   :  { %v4308_v4 = vpop.f32.mrf.mxu1 }
 0x342   :  { %v4310_v6 = vpop.f32.mrf.mxu1 }
 0x343   :  { %v2825_v51 = vadd.f32 %v4310_v6, %v4308_v4  ;;  %v4506_v4 = vld [vmem:[%s4802_s5 + $0x148] sm:$0xff]  ;;  %v2361_v6 = vld [vmem:[%s4802_s5 + $0x1f8] sm:$0xff] }
 0x344   :  { %v2858_v44 = vpop.f32.mrf.mxu1 }
 0x346   :  { %v2859_v47 = vpop.f32.mrf.mxu1 }
 0x347   :  { %v2860_v52 = vadd.f32 %v2859_v47, %v2858_v44  ;;  %v2360_v44 = vld [vmem:[%s4802_s5 + $0x1f0] sm:$0xff]  ;;  %v2357_v47 = vld [vmem:[%s4802_s5 + $0x1d8] sm:$0xff] }
 0x348   :  { %v2861_v10 = vpop.f32.mrf.mxu1 }
 0x349   :  { %v1538_v12 = vadd.f32 %v2860_v52, %v1453_v8  ;;  %v2359_v8 = vld [vmem:[%s4802_s5 + $0x1e8] sm:$0xff]  ;;  %v2356_v52 = vld [vmem:[%s4802_s5 + $0x1d0] sm:$0xff] }
 0x34a   :  { %v2862_v13 = vpop.f32.mrf.mxu1 }
 0x34b   :  { %v1556_v14 = vmax.f32 %v1538_v12, 0.0  ;;  %v2863_v1 = vadd.f32 %v2862_v13, %v2861_v10  ;;  %v2355_v10 = vld [vmem:[%s4802_s5 + $0x1c8] sm:$0xff]  ;;  %v2276_v12 = vld [vmem:[%s4802_s5 + $0x1b8] sm:$0xff]  ;;  %v2275_v13 = vld [vmem:[%s4802_s5 + $0x1b0] sm:$0xff] }
 0x34d   :  { %1561 = vst.msk [vmem:[#allocation5] sm:$0xff] %vm1560_vm9, %v1556_v14  ;;  %v1543_v15 = vadd.f32 %v2863_v1, %v1458_v11  ;;  %v2354_v11 = vld [vmem:[%s4802_s5 + $0x1c0] sm:$0xff]  ;;  %v2274_v14 = vld [vmem:[%s4802_s5 + $0x1a8] sm:$0xff] }
 0x34e   :  { %v2273_v1 = vld [vmem:[%s4802_s5 + $0x1a0] sm:$0xff] }
 0x34f   :  { %v1557_v16 = vmax.f32 %v1543_v15, 0.0  ;;  %v2272_v15 = vld [vmem:[%s4802_s5 + $0x198] sm:$0xff] }
 0x351   :  { %1562 = vst.msk [vmem:[#allocation5 + $0x8] sm:$0xff] %vm1560_vm9, %v1557_v16  ;;  %v2271_v16 = vld [vmem:[%s4802_s5 + $0x190] sm:$0xff] }
 0x354   :  { %v4324_v17 = vld [vmem:[#allocation5] sm:$0xff] }
 0x355   :  { %2990 = vmatprep.mubr.msk.f32.mxu1 %vm1560_vm9, %v4324_v17  ;;  %3013 = vmatmul.mubr.msk.f32.vlgmr.msra.gmra.mxu0 %vm1560_vm9, %v4324_v17 }
 0x356   :  { %3035 = vmatpush3.msra.mxu0 %v1867_v55  ;;  %3050 = vmatprep.mubr.msk.f32.mxu0 %vm3211_vm8, %v3199_v2  ;;  %v2270_v55 = vld [vmem:[%s4802_s5 + $0x188] sm:$0xff] }
 0x357   :  { %3036 = vmatprep.subr.mxu0 %v3199_v2 }
 0x358   :  { %3037 = vmatpush3.msra.mxu0 %v1866_v18  ;;  %v4339_v20 = vld [vmem:[#allocation5 + $0x8] sm:$0xff]  ;;  %v2458_v18 = vld [vmem:[%s4802_s5 + $0x238] sm:$0xff] }
 0x359   :  { %3038 = vmatprep.subr.mxu0 %v3199_v2  ;;  %2991 = vmatmul.mubr.msk.f32.vlgmr.msra.gmra.mxu1 %vm1560_vm9, %v4339_v20 }
 0x35a   :  { %3039 = vmatpush3.msra.mxu0 %v1865_v19  ;;  %3016 = vmatpush3.msra.mxu1 %v1770_v59  ;;  %v1468_v59 = vadd.f32 %v2825_v51, %v4315_v7  ;;  %v2457_v19 = vld [vmem:[%s4802_s5 + $0x230] sm:$0xff] }
 0x35b   :  { %3040 = vmatprep.subr.mxu0 %v3199_v2  ;;  %3017 = vmatprep.subr.mxu1 %v1769_v21 }
 0x35c   :  { %3041 = vmatpush3.msra.mxu0 %v1864_v22  ;;  %3018 = vmatpush3.msra.mxu1 %v1769_v21  ;;  %v2455_v21 = vld [vmem:[%s4802_s5 + $0x220] sm:$0xff]  ;;  %v2454_v22 = vld [vmem:[%s4802_s5 + $0x218] sm:$0xff] }
 0x35d   :  { %3042 = vmatprep.subr.mxu0 %v3199_v2  ;;  %3019 = vmatprep.subr.mxu1 %v1768_v23 }
 0x35e   :  { %3043 = vmatpush3.msra.mxu0 %v1863_v24  ;;  %3020 = vmatpush3.msra.mxu1 %v1768_v23  ;;  %v2453_v23 = vld [vmem:[%s4802_s5 + $0x210] sm:$0xff]  ;;  %v2452_v24 = vld [vmem:[%s4802_s5 + $0x208] sm:$0xff] }
 0x35f   :  { %3044 = vmatprep.subr.mxu0 %v3199_v2  ;;  %3021 = vmatprep.subr.mxu1 %v1767_v25 }
 0x360   :  { %3045 = vmatpush3.msra.mxu0 %v1862_v26  ;;  %3022 = vmatpush3.msra.mxu1 %v1767_v25  ;;  %v2451_v25 = vld [vmem:[%s4802_s5 + $0x200] sm:$0xff] }
 0x361   :  { %3046 = vmatprep.subr.mxu0 %v3199_v2  ;;  %3023 = vmatprep.subr.mxu1 %v1766_v27 }
 0x362   :  { %3047 = vmatpush3.msra.mxu0 %v1861_v28  ;;  %3024 = vmatpush3.msra.mxu1 %v1766_v27 }
 0x363   :  { %3048 = vmatprep.subr.mxu0 %v3199_v2  ;;  %3025 = vmatprep.subr.mxu1 %v1765_v29 }
 0x364   :  { %3049 = vmatpush3.msra.mxu0 %v1860_v30  ;;  %3026 = vmatpush3.msra.mxu1 %v1765_v29 }
 0x365   :  { %3072 = vmatprep.subr.mxu0 %v3199_v2  ;;  %3051 = vmatmul.mubr.msk.f32.vlgmr.msra.gmra.mxu0 %vm1560_vm9, %v4339_v20 }
 0x366   :  { %3073 = vmatpush3.msra.mxu0 %v4382_v31  ;;  %3088 = vmatprep.mubr.msk.f32.mxu0 %vm3211_vm8, %v3199_v2 }
 0x367   :  { %3074 = vmatprep.subr.mxu0 %v3199_v2  ;;  %3027 = vmatprep.subr.mxu1 %v1764_v32 }
 0x368   :  { %3075 = vmatpush3.msra.mxu0 %v4393_v33  ;;  %3028 = vmatpush3.msra.mxu1 %v1764_v32 }
 0x369   :  { %3076 = vmatprep.subr.mxu0 %v3199_v2  ;;  %3029 = vmatprep.subr.mxu1 %v1763_v34 }
 0x36a   :  { %3077 = vmatpush3.msra.mxu0 %v4405_v35  ;;  %3030 = vmatpush3.msra.mxu1 %v1763_v34 }
 0x36b   :  { %3078 = vmatprep.subr.mxu0 %v3199_v2  ;;  %3053 = vmatprep.subr.mxu1 %v3199_v2 }
 0x36c   :  { %3079 = vmatpush3.msra.mxu0 %v4412_v36 }
 0x36d   :  { %3080 = vmatprep.subr.mxu0 %v3199_v2 }
 0x36e   :  { %3081 = vmatpush3.msra.mxu0 %v4419_v37 }
 0x36f   :  { %v2864_v40 = vpop.f32.mrf.mxu1  ;;  %3082 = vmatprep.subr.mxu0 %v3199_v2 }
 0x370   :  { %3083 = vmatpush3.msra.mxu0 %v4429_v39 }
 0x371   :  { %v2865_v42 = vpop.f32.mrf.mxu1  ;;  %3084 = vmatprep.subr.mxu0 %v3199_v2 }
 0x372   :  { %v2866_v45 = vadd.f32 %v2865_v42, %v2864_v40  ;;  %3085 = vmatpush3.msra.mxu0 %v4436_v41 }
 0x373   :  { %3086 = vmatprep.subr.mxu0 %v3199_v2 }
 0x374   :  { %v1548_v48 = vadd.f32 %v2866_v45, %v1463_v43  ;;  %3087 = vmatpush3.msra.mxu0 %v4444_v46 }
 0x375   :  { %3110 = vmatprep.subr.mxu0 %v3199_v2 }
 0x376   :  { %v1558_v49 = vmax.f32 %v1548_v48, 0.0 }
 0x378   :  { %1563 = vst.msk [vmem:[#allocation5 + $0x10] sm:$0xff] %vm1560_vm9, %v1558_v49 }
 0x37f   :  { %v4458_v53 = vld [vmem:[#allocation5 + $0x10] sm:$0xff]  ;;  %v2867_v54 = vpop.f32.mrf.mxu1 }
 0x380   :  { %2993 = vmatprep.mubr.msk.f32.mxu1 %vm1560_vm9, %v4458_v53  ;;  %3089 = vmatmul.mubr.msk.f32.vlgmr.msra.gmra.mxu0 %vm1560_vm9, %v4458_v53 }
 0x381   :  { %3111 = vmatpush3.msra.mxu0 %v4454_v50  ;;  %3126 = vmatprep.mubr.msk.f32.mxu0 %vm3211_vm8, %v3199_v2  ;;  %v2868_v57 = vpop.f32.mrf.mxu1 }
 0x382   :  { %3112 = vmatprep.subr.mxu0 %v3199_v2  ;;  %v2869_v60 = vadd.f32 %v2868_v57, %v2867_v54 }
 0x383   :  { %3113 = vmatpush3.msra.mxu0 %v4467_v56 }
 0x384   :  { %3114 = vmatprep.subr.mxu0 %v3199_v2  ;;  %v1553_v62 = vadd.f32 %v2869_v60, %v1468_v59  ;;  %v2701_v59 = vld [vmem:[%s4805_s6] ss:$0 sm:$0xff] }
 0x385   :  { %3115 = vmatpush3.msra.mxu0 %v4476_v58 }
 0x386   :  { %3116 = vmatprep.subr.mxu0 %v3199_v2  ;;  %v1559_v0 = vmax.f32 %v1553_v62, 0.0 }
 0x387   :  { %3117 = vmatpush3.msra.mxu0 %v4484_v61 }
 0x388   :  { %3118 = vmatprep.subr.mxu0 %v3199_v2  ;;  %1564 = vst.msk [vmem:[#allocation5 + $0x18] sm:$0xff] %vm1560_vm9, %v1559_v0 }
 0x389   :  { %3119 = vmatpush3.msra.mxu0 %v4491_v63 }
 0x38a   :  { %3120 = vmatprep.subr.mxu0 %v3199_v2 }
 0x38b   :  { %3121 = vmatpush3.msra.mxu0 %v4498_v3 }
 0x38c   :  { %3122 = vmatprep.subr.mxu0 %v3199_v2 }
 0x38d   :  { %3123 = vmatpush3.msra.mxu0 %v4506_v4 }
 0x38e   :  { %3124 = vmatprep.subr.mxu0 %v3199_v2 }
 0x38f   :  { %3125 = vmatpush3.msra.mxu0 %v4513_v5  ;;  %v4521_v7 = vld [vmem:[#allocation5 + $0x18] sm:$0xff] }
 0x390   :  { %3148 = vmatprep.subr.mxu0 %v2361_v6  ;;  %2994 = vmatmul.mubr.msk.f32.gmra.mxu1 %vm1560_vm9, %v4521_v7 }
 0x391   :  { %3127 = vmatmul.mubr.msk.f32.vlgmr.msra.gmra.mxu0 %vm1560_vm9, %v4521_v7  ;;  %3031 = vmatprep.mubr.msk.f32.mxu1 %vm1560_vm9, %v4324_v17 }
 0x392   :  { %3149 = vmatpush3.msra.mxu0 %v2361_v6  ;;  %3164 = vmatprep.mubr.msk.f32.mxu0 %vm1560_vm9, %v4458_v53 }
 0x393   :  { %3150 = vmatprep.subr.mxu0 %v2360_v44 }
 0x394   :  { %3151 = vmatpush3.msra.mxu0 %v2360_v44  ;;  %3032 = vmatmul.mubr.msk.f32.vlgmr.msra.gmra.mxu1 %vm1560_vm9, %v4339_v20 }
 0x395   :  { %3152 = vmatprep.subr.mxu0 %v2359_v8  ;;  %3054 = vmatpush3.msra.mxu1 %v4382_v31 }
 0x396   :  { %3153 = vmatpush3.msra.mxu0 %v2359_v8  ;;  %3055 = vmatprep.subr.mxu1 %v3199_v2 }
 0x397   :  { %3154 = vmatprep.subr.mxu0 %v2358_v9  ;;  %3056 = vmatpush3.msra.mxu1 %v4393_v33 }
 0x398   :  { %3155 = vmatpush3.msra.mxu0 %v2358_v9  ;;  %3057 = vmatprep.subr.mxu1 %v3199_v2 }
 0x399   :  { %3156 = vmatprep.subr.mxu0 %v2357_v47  ;;  %3058 = vmatpush3.msra.mxu1 %v4405_v35 }
 0x39a   :  { %3157 = vmatpush3.msra.mxu0 %v2357_v47  ;;  %3059 = vmatprep.subr.mxu1 %v3199_v2 }
 0x39b   :  { %3158 = vmatprep.subr.mxu0 %v2356_v52  ;;  %3060 = vmatpush3.msra.mxu1 %v4412_v36 }
 0x39c   :  { %3159 = vmatpush3.msra.mxu0 %v2356_v52  ;;  %3061 = vmatprep.subr.mxu1 %v3199_v2 }
 0x39d   :  { %3160 = vmatprep.subr.mxu0 %v2355_v10  ;;  %3062 = vmatpush3.msra.mxu1 %v4419_v37 }
 0x39e   :  { %3161 = vmatpush3.msra.mxu0 %v2355_v10  ;;  %3063 = vmatprep.subr.mxu1 %v3199_v2 }
 0x39f   :  { %3162 = vmatprep.subr.mxu0 %v2354_v11  ;;  %3064 = vmatpush3.msra.mxu1 %v4429_v39 }
 0x3a0   :  { %3163 = vmatpush3.msra.mxu0 %v2354_v11  ;;  %3065 = vmatprep.subr.mxu1 %v3199_v2 }
 0x3a1   :  { %3165 = vmatmul.mubr.msk.f32.vlgmr.msra.gmra.mxu0 %vm1560_vm9, %v4521_v7  ;;  %3066 = vmatpush3.msra.mxu1 %v4436_v41 }
 0x3a2   :  { %3069 = vmatprep.mubr.msk.f32.mxu1 %vm3211_vm8, %v3199_v2  ;;  %3067 = vmatprep.subr.mxu1 %v3199_v2 }
 0x3a3   :  { %3068 = vmatpush3.msra.mxu1 %v4444_v46 }
 0x3a4   :  { %3070 = vmatmul.mubr.msk.f32.vlgmr.msra.gmra.mxu1 %vm1560_vm9, %v4324_v17  ;;  %3091 = vmatprep.subr.mxu1 %v3199_v2  ;;  %v2269_v17 = vld [vmem:[%s4802_s5 + $0x180] sm:$0xff] }
 0x3a5   :  { %3092 = vmatpush3.msra.mxu1 %v4454_v50  ;;  %3107 = vmatprep.mubr.msk.f32.mxu1 %vm3211_vm8, %v3199_v2 }
 0x3a6   :  { %3093 = vmatprep.subr.mxu1 %v3199_v2 }
 0x3a7   :  { %3094 = vmatpush3.msra.mxu1 %v4467_v56 }
 0x3a8   :  { %3095 = vmatprep.subr.mxu1 %v3199_v2 }
 0x3a9   :  { %3096 = vmatpush3.msra.mxu1 %v4476_v58 }
 0x3aa   :  { %3097 = vmatprep.subr.mxu1 %v3199_v2 }
 0x3ab   :  { %3098 = vmatpush3.msra.mxu1 %v4484_v61 }
 0x3ac   :  { %3099 = vmatprep.subr.mxu1 %v3199_v2 }
 0x3ad   :  { %3100 = vmatpush3.msra.mxu1 %v4491_v63 }
 0x3ae   :  { %3101 = vmatprep.subr.mxu1 %v3199_v2 }
 0x3af   :  { %3102 = vmatpush3.msra.mxu1 %v4498_v3 }
 0x3b0   :  { %3103 = vmatprep.subr.mxu1 %v3199_v2 }
 0x3b1   :  { %3104 = vmatpush3.msra.mxu1 %v4506_v4 }
 0x3b2   :  { %3105 = vmatprep.subr.mxu1 %v3199_v2 }
 0x3b3   :  { %3106 = vmatpush3.msra.mxu1 %v4513_v5 }
 0x3b4   :  { %3108 = vmatmul.mubr.msk.f32.vlgmr.msra.gmra.mxu1 %vm1560_vm9, %v4339_v20  ;;  %3129 = vmatprep.subr.mxu1 %v3199_v2  ;;  %v2456_v20 = vld [vmem:[%s4802_s5 + $0x228] sm:$0xff] }
 0x3b5   :  { %3130 = vmatpush3.msra.mxu1 %v2276_v12  ;;  %3145 = vmatprep.mubr.msk.f32.mxu1 %vm3211_vm8, %v3199_v2 }
 0x3b6   :  { %3131 = vmatprep.subr.mxu1 %v3199_v2 }
 0x3b7   :  { %3132 = vmatpush3.msra.mxu1 %v2275_v13 }
 0x3b8   :  { %3133 = vmatprep.subr.mxu1 %v3199_v2 }
 0x3b9   :  { %3134 = vmatpush3.msra.mxu1 %v2274_v14 }
 0x3ba   :  { %3135 = vmatprep.subr.mxu1 %v3199_v2 }
 0x3bb   :  { %3136 = vmatpush3.msra.mxu1 %v2273_v1 }
 0x3bc   :  { %3137 = vmatprep.subr.mxu1 %v3199_v2 }
 0x3bd   :  { %3138 = vmatpush3.msra.mxu1 %v2272_v15 }
 0x3be   :  { %3139 = vmatprep.subr.mxu1 %v3199_v2 }
 0x3bf   :  { %3140 = vmatpush3.msra.mxu1 %v2271_v16 }
 0x3c0   :  { %3141 = vmatprep.subr.mxu1 %v3199_v2 }
 0x3c1   :  { %3142 = vmatpush3.msra.mxu1 %v2270_v55 }
 0x3c2   :  { %3143 = vmatprep.subr.mxu1 %v3199_v2 }
 0x3c3   :  { %3144 = vmatpush3.msra.mxu1 %v2269_v17 }
 0x3c4   :  { %3146 = vmatmul.mubr.msk.f32.vlgmr.msra.gmra.mxu1 %vm1560_vm9, %v4458_v53  ;;  %3167 = vmatprep.subr.mxu1 %v3199_v2 }
 0x3c5   :  { %3168 = vmatpush3.msra.mxu1 %v2458_v18  ;;  %3183 = vmatprep.mubr.msk.f32.mxu1 %vm3211_vm8, %v3199_v2 }
 0x3c6   :  { %3169 = vmatprep.subr.mxu1 %v3199_v2 }
 0x3c7   :  { %3170 = vmatpush3.msra.mxu1 %v2457_v19 }
 0x3c8   :  { %3171 = vmatprep.subr.mxu1 %v3199_v2 }
 0x3c9   :  { %3172 = vmatpush3.msra.mxu1 %v2456_v20 }
 0x3ca   :  { %3173 = vmatprep.subr.mxu1 %v3199_v2 }
 0x3cb   :  { %3174 = vmatpush3.msra.mxu1 %v2455_v21 }
 0x3cc   :  { %3175 = vmatprep.subr.mxu1 %v3199_v2 }
 0x3cd   :  { %3176 = vmatpush3.msra.mxu1 %v2454_v22 }
 0x3ce   :  { %3177 = vmatprep.subr.mxu1 %v3199_v2 }
 0x3cf   :  { %3178 = vmatpush3.msra.mxu1 %v2453_v23 }
 0x3d0   :  { %3179 = vmatprep.subr.mxu1 %v3199_v2 }
 0x3d1   :  { %3180 = vmatpush3.msra.mxu1 %v2452_v24 }
 0x3d2   :  { %3181 = vmatprep.subr.mxu1 %v3199_v2 }
 0x3d3   :  { %3182 = vmatpush3.msra.mxu1 %v2451_v25 }
 0x3d4   :  { %3184 = vmatmul.mubr.msk.f32.vlgmr.msra.gmra.mxu1 %vm1560_vm9, %v4521_v7 }
 0x415   :  { %v1756_v26 = vpop.f32.mrf.mxu0 }
 0x417   :  { %v3014_v27 = vpop.f32.mrf.mxu0 }
 0x419   :  { %v2992_v28 = vpop.f32.mrf.mxu1 }
 0x41a   :  { %1675 = vst.msk [vmem:[%s4804_s7 + $0x8] sm:$0xff] %vm1560_vm9, %v2992_v28 }
 0x41b   :  { %v1655_v29 = vpop.f32.mrf.mxu1 }
 0x41c   :  { %1674 = vst.msk [vmem:[%s4804_s7] sm:$0xff] %vm1560_vm9, %v1655_v29 }
 0x421   :  { %v2027_v49 = vld [vmem:[%s4804_s7 + $0x8] sm:$0xff] }
 0x423   :  { %v2189_v61 = vld [vmem:[%s4804_s7] sm:$0xff] }
 0x425   :  { %v1938_v30 = vpop.f32.mrf.mxu0 }
 0x427   :  { %v3052_v2 = vpop.f32.mrf.mxu0 }
 0x440   :  { %v2100_v31 = vpop.f32.mrf.mxu0 }
 0x442   :  { %v3090_v32 = vpop.f32.mrf.mxu0 }
 0x450   :  { %v2995_v33 = vpop.f32.mrf.mxu1 }
 0x451   :  { %v2262_v34 = vpop.f32.mrf.mxu0  ;;  %1677 = vst.msk [vmem:[%s4804_s7 + $0x18] sm:$0xff] %vm1560_vm9, %v2995_v33 }
 0x452   :  { %v1665_v35 = vpop.f32.mrf.mxu1 }
 0x453   :  { %v3128_v36 = vpop.f32.mrf.mxu0  ;;  %1676 = vst.msk [vmem:[%s4804_s7 + $0x10] sm:$0xff] %vm1560_vm9, %v1665_v35 }
 0x454   :  { %v3033_v37 = vpop.f32.mrf.mxu1 }
 0x456   :  { %v1845_v40 = vpop.f32.mrf.mxu1 }
 0x458   :  { %v1760_v38 = vld [vmem:[%s4804_s7 + $0x18] sm:$0xff] }
 0x459   :  { %v1761_v39 = vadd.f32 %v1760_v38, %v1756_v26 }
 0x45a   :  { %v1854_v41 = vld [vmem:[%s4804_s7 + $0x10] sm:$0xff] }
 0x45b   :  { %1762 = vst.msk [vmem:[%s4804_s7 + $0x18] sm:$0xff] %vm1560_vm9, %v1761_v39  ;;  %v1856_v42 = vadd.f32 %v1854_v41, %v1845_v40 }
 0x45d   :  { %1858 = vst.msk [vmem:[%s4804_s7 + $0x10] sm:$0xff] %vm1560_vm9, %v1856_v42 }
 0x461   :  { %v3166_v7 = vpop.f32.mrf.mxu0 }
 0x462   :  { %v1855_v43 = vld [vmem:[%s4804_s7 + $0x18] sm:$0xff] }
 0x463   :  { %v1857_v45 = vadd.f32 %v3033_v37, %v1855_v43  ;;  %v2436_v8 = vpop.f32.mrf.mxu0 }
 0x464   :  { %v1942_v46 = vld [vmem:[%s4804_s7 + $0x10] sm:$0xff]  ;;  %v2023_v48 = vpop.f32.mrf.mxu1 }
 0x465   :  { %1859 = vst.msk [vmem:[%s4804_s7 + $0x18] sm:$0xff] %vm1560_vm9, %v1857_v45  ;;  %v1943_v50 = vadd.f32 %v1942_v46, %v1938_v30  ;;  %v2028_v51 = vadd.f32 %v2027_v49, %v2023_v48 }
 0x466   :  { %v3071_v53 = vpop.f32.mrf.mxu1 }
 0x467   :  { %1944 = vst.msk [vmem:[%s4804_s7 + $0x10] sm:$0xff] %vm1560_vm9, %v1943_v50  ;;  %2029 = vst.msk [vmem:[%s4804_s7 + $0x8] sm:$0xff] %vm1560_vm9, %v2028_v51 }
 0x46c   :  { %v2104_v54 = vld [vmem:[%s4804_s7 + $0x18] sm:$0xff] }
 0x46d   :  { %v2105_v56 = vadd.f32 %v2104_v54, %v2100_v31 }
 0x46e   :  { %v2266_v57 = vld [vmem:[%s4804_s7 + $0x10] sm:$0xff]  ;;  %v2351_v10 = vld [vmem:[%s4804_s7 + $0x8] sm:$0xff] }
 0x46f   :  { %2106 = vst.msk [vmem:[%s4804_s7 + $0x18] sm:$0xff] %vm1560_vm9, %v2105_v56  ;;  %v2267_v58 = vadd.f32 %v2266_v57, %v2262_v34 }
 0x471   :  { %2268 = vst.msk [vmem:[%s4804_s7 + $0x10] sm:$0xff] %vm1560_vm9, %v2267_v58 }
 0x474   :  { %v2185_v60 = vpop.f32.mrf.mxu1 }
 0x475   :  { %v2190_v62 = vadd.f32 %v2189_v61, %v2185_v60 }
 0x476   :  { %v2539_v63 = vld [vmem:[%s4804_s7 + $0x18] sm:$0xff]  ;;  %v3109_v0 = vpop.f32.mrf.mxu1 }
 0x477   :  { %v2550_v3 = vadd.f32 %v2701_v59, %v2539_v63  ;;  %2191 = vst.msk [vmem:[%s4804_s7] sm:$0xff] %vm1560_vm9, %v2190_v62 }
 0x478   :  { %v2538_v4 = vld [vmem:[%s4804_s7 + $0x10] sm:$0xff] }
 0x479   :  { %v2554_v5 = vmax.f32 %v2550_v3, 0.0  ;;  %v2549_v6 = vadd.f32 %v2701_v59, %v2538_v4 }
 0x47b   :  { %2558 = vst.msk [vmem:[%s4804_s7 + $0x18] sm:$0xff] %vm1560_vm9, %v2554_v5  ;;  %v2553_v44 = vmax.f32 %v2549_v6, 0.0 }
 0x47d   :  { %2557 = vst.msk [vmem:[%s4804_s7 + $0x10] sm:$0xff] %vm1560_vm9, %v2553_v44 }
 0x47e   :  { %v2445_v9 = vld [vmem:[%s4804_s7] sm:$0xff] }
 0x47f   :  { %v2447_v47 = vadd.f32 %v2445_v9, %v2436_v8 }
 0x481   :  { %2449 = vst.msk [vmem:[%s4804_s7] sm:$0xff] %vm1560_vm9, %v2447_v47 }
 0x484   :  { %v2347_v52 = vpop.f32.mrf.mxu1 }
 0x485   :  { %v2352_v11 = vadd.f32 %v2351_v10, %v2347_v52 }
 0x486   :  { %v3147_v12 = vpop.f32.mrf.mxu1 }
 0x487   :  { %2353 = vst.msk [vmem:[%s4804_s7 + $0x8] sm:$0xff] %vm1560_vm9, %v2352_v11 }
 0x488   :  { %v2533_v15 = vld [vmem:[%s4804_s7] sm:$0xff] }
 0x48e   :  { %v2446_v13 = vld [vmem:[%s4804_s7 + $0x8] sm:$0xff] }
 0x48f   :  { %v2448_v14 = vadd.f32 %v3166_v7, %v2446_v13 }
 0x491   :  { %2450 = vst.msk [vmem:[%s4804_s7 + $0x8] sm:$0xff] %vm1560_vm9, %v2448_v14 }
 0x494   :  { %v2529_v1 = vpop.f32.mrf.mxu1 }
 0x495   :  { %v2534_v16 = vadd.f32 %v2533_v15, %v2529_v1 }
 0x496   :  { %v3185_v55 = vpop.f32.mrf.mxu1 }
 0x497   :  { %2535 = vst.msk [vmem:[%s4804_s7] sm:$0xff] %vm1560_vm9, %v2534_v16 }
 0x498   :  { %v2537_v17 = vld [vmem:[%s4804_s7 + $0x8] sm:$0xff] }
 0x499   :  { %v2548_v18 = vadd.f32 %v2701_v59, %v2537_v17 }
 0x49b   :  { %v2552_v19 = vmax.f32 %v2548_v18, 0.0 }
 0x49d   :  { %2556 = vst.msk [vmem:[%s4804_s7 + $0x8] sm:$0xff] %vm1560_vm9, %v2552_v19 }
 0x49e   :  { %v2536_v20 = vld [vmem:[%s4804_s7] sm:$0xff] }
 0x49f   :  { %v2547_v21 = vadd.f32 %v2701_v59, %v2536_v20 }
 0x4a1   :  { %v2551_v22 = vmax.f32 %v2547_v21, 0.0 }
 0x4a3   :  { %2555 = vst.msk [vmem:[%s4804_s7] sm:$0xff] %vm1560_vm9, %v2551_v22 }

</bundles_post_ra>
